<compile_context>
chip_gen: v5e
topology: v5e:2x2
jax: 0.10.0
libtpu: 0.0.40
codegen_flags: <defaults>
</compile_context>

<pallas_src>
import functools

import numpy as np
import jax
import jax.numpy as jnp
from jax.experimental import pallas as pl
from jax.experimental.pallas import tpu as pltpu

EPS = 1e-5          # nn.GroupNorm default eps
NEG_SLOPE = 0.01    # nn.LeakyReLU default negative_slope


def find_group_number(channels, min_group_channels=4, max_group_channels=32):
    for num_groups in range(channels, 0, -1):
        gc = channels // num_groups
        if channels % num_groups == 0 and gc >= min_group_channels and gc <= max_group_channels:
            return num_groups
    return 1


def _bilinear_matrix(n_in, n_out):
    """(n_out, n_in) 1-D interpolation matrix, align_corners=True (PyTorch bilinear)."""
    if n_in == 1:
        return np.ones((n_out, 1), np.float32)
    m = np.zeros((n_out, n_in), np.float64)
    for i in range(n_out):
        s = 0.0 if n_out == 1 else i * (n_in - 1) / (n_out - 1)
        i0 = min(int(np.floor(s)), n_in - 1)
        i1 = min(i0 + 1, n_in - 1)
        f = s - i0
        m[i, i0] += 1.0 - f
        m[i, i1] += f
    return m.astype(np.float32)


def _upsample_kron(hin, win, hout, wout):
    """(Hin*Win, Hout*Wout) flattened separable bilinear upsample matrix (align_corners=True)."""
    uh = _bilinear_matrix(hin, hout)   # (hout, hin)
    uw = _bilinear_matrix(win, wout)   # (wout, win)
    k = np.einsum("oh,pw->hwop", uh, uw).reshape(hin * win, hout * wout)
    return k.astype(np.float32)


def _conv_masks(h, w):
    """(9, H*W) boundary-validity masks for the 3x3 taps (shift (ky-1, kx-1), zero padding)."""
    hh, ww = np.meshgrid(np.arange(h), np.arange(w), indexing="ij")
    m = np.zeros((9, h * w), np.float32)
    for ky in range(3):
        for kx in range(3):
            dy, dx = ky - 1, kx - 1
            ok = (hh + dy >= 0) & (hh + dy < h) & (ww + dx >= 0) & (ww + dx < w)
            m[ky * 3 + kx] = ok.reshape(-1).astype(np.float32)
    return m


# --------------------------------------------------------------------------------------
# Fused kernel: single grid step, channels-first (C, H*W), everything VMEM-resident.
# --------------------------------------------------------------------------------------
def _fused_kernel(below_ref, above_ref, kron_ref, mask_ref, gmat_ref,
                  up_w_ref, up_b_ref, up_g_ref, up_be_ref,
                  skip_w_ref, skip_b_ref, skip_g_ref, skip_be_ref,
                  m1_w_ref, m1_b_ref, m1_g_ref, m1_be_ref,
                  m2_w_ref, m2_b_ref, m2_g_ref, m2_be_ref,
                  o_ref, *, bsz, wimg, hw, inv_n):
    kron = kron_ref[...]          # (Hin*Win, H*W) f32
    mask = mask_ref[...]          # (9, H*W) f32 boundary masks
    gmat = gmat_ref[...]          # (C, C) same-group indicator (group reduce + broadcast)

    def gn_leaky(y, gamma, beta):
        """Per-sample GroupNorm (one-pass stats) + LeakyReLU on a (C, H*W) f32 slab."""
        s1 = jnp.sum(y, axis=1, keepdims=True)                     # (C, 1) lane reduce
        s2 = jnp.sum(y * y, axis=1, keepdims=True)                 # (C, 1)
        st = jnp.concatenate([s1, s2], axis=1)                     # (C, 2)
        gs = jnp.dot(gmat, st, preferred_element_type=jnp.float32) * inv_n   # (C, 2)
        mean = gs[:, 0:1]                                          # per-group mean, per channel
        inv = jax.lax.rsqrt(gs[:, 1:2] - mean * mean + EPS)        # per-group inv-std
        out = (y - mean) * (inv * gamma) + beta
        return jnp.where(out >= 0, out, NEG_SLOPE * out)

    def conv3x3(x, wt, bias):
        """3x3 conv, padding=1.  x: (Cin, H*W); wt: (Cout, 9*Cin); -> (Cout, H*W) f32.
        Taps are static lane rolls + boundary masks (no padded copies, no reshapes)."""
        pieces = []
        for ky in range(3):
            for kx in range(3):
                if ky == 1 and kx == 1:
                    pieces.append(x)                               # center tap: identity
                    continue
                off = (ky - 1) * wimg + (kx - 1)
                shifted = pltpu.roll(x, (-off) % hw, axis=1)       # XLU lane rotation
                pieces.append(shifted * mask[ky * 3 + kx:ky * 3 + kx + 1, :])
        patches = jnp.concatenate(pieces, axis=0)                  # (9*Cin, H*W)
        return jnp.dot(wt, patches, preferred_element_type=jnp.float32) + bias

    up_w = up_w_ref[...]
    up_b, up_g, up_be = up_b_ref[...], up_g_ref[...], up_be_ref[...]
    skip_w = skip_w_ref[...]
    skip_b, skip_g, skip_be = skip_b_ref[...], skip_g_ref[...], skip_be_ref[...]
    m1_w = m1_w_ref[...]
    m1_b, m1_g, m1_be = m1_b_ref[...], m1_g_ref[...], m1_be_ref[...]
    m2_w = m2_w_ref[...]
    m2_b, m2_g, m2_be = m2_b_ref[...], m2_g_ref[...], m2_be_ref[...]

    for bi in range(bsz):                                          # static unroll; B folded
        # UpBlock: 1x1 conv BEFORE the (commuting) upsample, then bias, GN, LeakyReLU.
        xb = below_ref[bi]                                         # (Cin, Hin*Win)
        c1 = jnp.dot(up_w, xb, preferred_element_type=jnp.float32)           # (Cout, Hin*Win)
        up = jnp.dot(c1, kron, preferred_element_type=jnp.float32) + up_b    # (Cout, H*W)
        x_up = gn_leaky(up, up_g, up_be)

        # merge_mode='concat' along channels, entirely in VMEM.
        xcat = jnp.concatenate([x_up, above_ref[bi]], axis=0)      # (2*Cout, H*W)

        # Skip_Block then Main_Processing_Block (2x), residual add after the final activation.
        x_skip = gn_leaky(conv3x3(xcat, skip_w, skip_b), skip_g, skip_be)
        h1 = gn_leaky(conv3x3(x_skip, m1_w, m1_b), m1_g, m1_be)
        y = gn_leaky(conv3x3(h1, m2_w, m2_b), m2_g, m2_be)
        o_ref[bi] = y + x_skip                                     # lane-dense (Cout, 256) store


# --------------------------------------------------------------------------------------
# Wrapper: NCHW in / NCHW out with only free contiguous reshapes outside the kernel.
# --------------------------------------------------------------------------------------
def up_convolution_block(below_nchw, above_nchw, embedding, params):
    del embedding  # adain_enabled=False, film_enabled=False -> embedding unused
    bsz, cin, hin, win = below_nchw.shape
    _, cout, hout, wout = above_nchw.shape
    hw_in = hin * win
    hw = hout * wout
    g = params["num_groups"]
    cg = cout // g

    below = below_nchw.reshape(bsz, cin, hw_in).astype(jnp.float32)    # free reshape (NCHW)
    above = above_nchw.reshape(bsz, cout, hw).astype(jnp.float32)      # free reshape (NCHW)

    # Trace-time constants.
    kron = jnp.asarray(_upsample_kron(hin, win, hout, wout))           # (Hin*Win, H*W)
    mask = jnp.asarray(_conv_masks(hout, wout))                        # (9, H*W)
    ch = np.arange(cout)
    gmat = jnp.asarray((ch[:, None] // cg == ch[None, :] // cg).astype(np.float32))  # (C, C)

    # Weights in channels-first matmul layout: (Cout, 9*Cin) / (Cout, Cin); vectors as (C, 1).
    up_wt = jnp.transpose(params["up_w"], (1, 0))                                   # (Cout, Cin)
    skip_wt = jnp.transpose(params["skip_w"], (2, 0, 1)).reshape(cout, 9 * 2 * cout)
    m1_wt = jnp.transpose(params["m1_w"], (2, 0, 1)).reshape(cout, 9 * cout)
    m2_wt = jnp.transpose(params["m2_w"], (2, 0, 1)).reshape(cout, 9 * cout)

    def cvec(v):
        return v.reshape(cout, 1).astype(jnp.float32)

    def _full(shape):
        return pl.BlockSpec(shape, lambda i: (0,) * len(shape))

    kern = functools.partial(_fused_kernel, bsz=bsz, wimg=wout, hw=hw,
                             inv_n=1.0 / float(hw * cg))

    out = pl.pallas_call(
        kern,
        out_shape=jax.ShapeDtypeStruct((bsz, cout, hw), jnp.float32),
        grid=(1,),                                                  # batch folded; one step
        in_specs=[
            _full((bsz, cin, hw_in)),                               # below (B, Cin, Hin*Win)
            _full((bsz, cout, hw)),                                 # above (B, Cout, H*W)
            _full((hw_in, hw)),                                     # upsample matrix
            _full((9, hw)),                                         # tap masks
            _full((cout, cout)),                                    # group indicator
            _full((cout, cin)),                                     # up 1x1 weight
            _full((cout, 1)), _full((cout, 1)), _full((cout, 1)),   # up b / gamma / beta
            _full((cout, 9 * 2 * cout)),                            # skip conv weight
            _full((cout, 1)), _full((cout, 1)), _full((cout, 1)),
            _full((cout, 9 * cout)),                                # main conv 1 weight
            _full((cout, 1)), _full((cout, 1)), _full((cout, 1)),
            _full((cout, 9 * cout)),                                # main conv 2 weight
            _full((cout, 1)), _full((cout, 1)), _full((cout, 1)),
        ],
        out_specs=_full((bsz, cout, hw)),                           # last dim 256: unmasked vst
    )(below, above, kron, mask, gmat,
      up_wt, cvec(params["up_b"]), cvec(params["up_g"]), cvec(params["up_be"]),
      skip_wt, cvec(params["skip_b"]), cvec(params["skip_g"]), cvec(params["skip_be"]),
      m1_wt, cvec(params["m1_b"]), cvec(params["m1_g"]), cvec(params["m1_be"]),
      m2_wt, cvec(params["m2_b"]), cvec(params["m2_g"]), cvec(params["m2_be"]))

    # nn.Dropout(0.5) is the identity at inference time.
    return out.reshape(bsz, cout, hout, wout)                       # free reshape back to NCHW


# --------------------------------------------------------------------------------------
# Pure-JAX reference (f32, HIGHEST-precision dots, module op order) for the sanity check.
# --------------------------------------------------------------------------------------
P_HIGH = jax.lax.Precision.HIGHEST


def _gn_act_ref(x, num_groups, gamma, beta):
    bsz, h, w, c = x.shape
    cg = c // num_groups
    xg = x.reshape(bsz, h, w, num_groups, cg)
    mean = jnp.mean(xg, axis=(1, 2, 4), keepdims=True)
    var = jnp.mean(jnp.square(xg - mean), axis=(1, 2, 4), keepdims=True)
    xn = ((xg - mean) * jax.lax.rsqrt(var + EPS)).reshape(bsz, h, w, c)
    y = xn * gamma.reshape(1, 1, 1, c) + beta.reshape(1, 1, 1, c)
    return jnp.where(y >= 0, y, NEG_SLOPE * y)


def _conv3x3_ref(x, w9, b):
    bsz, h, w, cin = x.shape
    cout = w9.shape[-1]
    xp = jnp.pad(x, ((0, 0), (1, 1), (1, 1), (0, 0)))
    out = jnp.zeros((bsz, h, w, cout), jnp.float32)
    for ky in range(3):
        for kx in range(3):
            out = out + jnp.einsum("bhwi,io->bhwo", xp[:, ky:ky + h, kx:kx + w, :],
                                   w9[ky * 3 + kx], precision=P_HIGH)
    return out + b.reshape(1, 1, 1, cout)


def reference_forward(below_nchw, above_nchw, params):
    below = jnp.transpose(below_nchw, (0, 2, 3, 1)).astype(jnp.float32)
    above = jnp.transpose(above_nchw, (0, 2, 3, 1)).astype(jnp.float32)
    _, hin, win, _ = below.shape
    hout, wout, cout = above.shape[1], above.shape[2], above.shape[3]
    g = params["num_groups"]
    uh = jnp.asarray(_bilinear_matrix(hin, hout))
    uw = jnp.asarray(_bilinear_matrix(win, wout))
    up = jnp.einsum("oh,bhwc->bowc", uh, below, precision=P_HIGH)
    up = jnp.einsum("pw,bowc->bopc", uw, up, precision=P_HIGH)
    up = jnp.einsum("bhwi,io->bhwo", up, params["up_w"], precision=P_HIGH) \
        + params["up_b"].reshape(1, 1, 1, cout)
    up = _gn_act_ref(up, g, params["up_g"], params["up_be"])
    x = jnp.concatenate([up, above], axis=-1)
    x_skip = _gn_act_ref(_conv3x3_ref(x, params["skip_w"], params["skip_b"]), g,
                         params["skip_g"], params["skip_be"])
    h1 = _gn_act_ref(_conv3x3_ref(x_skip, params["m1_w"], params["m1_b"]), g,
                     params["m1_g"], params["m1_be"])
    y = _gn_act_ref(_conv3x3_ref(h1, params["m2_w"], params["m2_b"]), g,
                    params["m2_g"], params["m2_be"])
    y = y + x_skip
    return jnp.transpose(y, (0, 3, 1, 2))


if __name__ == "__main__":
    B, IN_C, OUT_C = 2, 8, 4
    HIN = WIN = 8
    HOUT = WOUT = 16
    EMB = 64

    key = jax.random.PRNGKey(0)
    ks = jax.random.split(key, 20)
    below = jax.random.normal(ks[0], (B, IN_C, HIN, WIN), jnp.float32)       # NCHW
    above = jax.random.normal(ks[1], (B, OUT_C, HOUT, WOUT), jnp.float32)    # NCHW
    embedding = jax.random.normal(ks[2], (B, EMB), jnp.float32)

    n_groups = find_group_number(OUT_C)

    def conv_w(k, cin, cout):
        # stored (9, Cin, Cout) == torch (Cout, Cin, 3, 3) permuted to (ky*3+kx, Cin, Cout)
        return jax.random.normal(k, (9, cin, cout), jnp.float32) / jnp.sqrt(9.0 * cin)

    def vec(k, c, scale=0.1):
        return scale * jax.random.normal(k, (1, c), jnp.float32)

    def gam(k, c):
        return 1.0 + 0.1 * jax.random.normal(k, (1, c), jnp.float32)

    params = {
        "num_groups": n_groups,
        # UpBlock: Conv2d(IN_C, OUT_C, k=1) + GroupNorm
        "up_w": jax.random.normal(ks[3], (IN_C, OUT_C), jnp.float32) / jnp.sqrt(float(IN_C)),
        "up_b": vec(ks[4], OUT_C), "up_g": gam(ks[5], OUT_C), "up_be": vec(ks[6], OUT_C),
        # Skip_Block: Conv2d(2*OUT_C, OUT_C, k=3, pad=1) + GroupNorm
        "skip_w": conv_w(ks[7], 2 * OUT_C, OUT_C),
        "skip_b": vec(ks[8], OUT_C), "skip_g": gam(ks[9], OUT_C), "skip_be": vec(ks[10], OUT_C),
        # Main_Processing_Block: 2 x [Conv2d(OUT_C, OUT_C, k=3, pad=1) + GroupNorm]
        "m1_w": conv_w(ks[11], OUT_C, OUT_C),
        "m1_b": vec(ks[12], OUT_C), "m1_g": gam(ks[13], OUT_C), "m1_be": vec(ks[14], OUT_C),
        "m2_w": conv_w(ks[15], OUT_C, OUT_C),
        "m2_b": vec(ks[16], OUT_C), "m2_g": gam(ks[17], OUT_C), "m2_be": vec(ks[18], OUT_C),
    }

    fwd = jax.jit(lambda b, a, e: up_convolution_block(b, a, e, params))
    out = jax.block_until_ready(fwd(below, above, embedding))
    assert out.shape == (B, OUT_C, HOUT, WOUT), out.shape
    assert bool(jnp.all(jnp.isfinite(out)))

    ref = reference_forward(below, above, params)
    err = float(jnp.max(jnp.abs(out - ref)))
    assert err < 3e-2, f"max |pallas - reference| = {err}"
    print("KERNEL_OK")
</pallas_src>

<mosaic_0001>
module attributes {stable_mosaic.version = 11 : i64} {
  func.func @_fused_kernel(%arg0: i32, %arg1: memref<2x8x64xf32, #tpu.memory_space<vmem>>, %arg2: memref<2x4x256xf32, #tpu.memory_space<vmem>>, %arg3: memref<64x256xf32, #tpu.memory_space<vmem>>, %arg4: memref<9x256xf32, #tpu.memory_space<vmem>>, %arg5: memref<4x4xf32, #tpu.memory_space<vmem>>, %arg6: memref<4x8xf32, #tpu.memory_space<vmem>>, %arg7: memref<4x1xf32, #tpu.memory_space<vmem>>, %arg8: memref<4x1xf32, #tpu.memory_space<vmem>>, %arg9: memref<4x1xf32, #tpu.memory_space<vmem>>, %arg10: memref<4x72xf32, #tpu.memory_space<vmem>>, %arg11: memref<4x1xf32, #tpu.memory_space<vmem>>, %arg12: memref<4x1xf32, #tpu.memory_space<vmem>>, %arg13: memref<4x1xf32, #tpu.memory_space<vmem>>, %arg14: memref<4x36xf32, #tpu.memory_space<vmem>>, %arg15: memref<4x1xf32, #tpu.memory_space<vmem>>, %arg16: memref<4x1xf32, #tpu.memory_space<vmem>>, %arg17: memref<4x1xf32, #tpu.memory_space<vmem>>, %arg18: memref<4x36xf32, #tpu.memory_space<vmem>>, %arg19: memref<4x1xf32, #tpu.memory_space<vmem>>, %arg20: memref<4x1xf32, #tpu.memory_space<vmem>>, %arg21: memref<4x1xf32, #tpu.memory_space<vmem>>, %arg22: memref<2x4x256xf32, #tpu.memory_space<vmem>>) attributes {dimension_semantics = [#tpu.dimension_semantics<arbitrary>], iteration_bounds = array<i64: 1>, scalar_prefetch = 0 : i64, scratch_operands = 0 : i64, tpu.core_type = #tpu.core_type<tc>, window_params = [{pipeline_mode = #tpu.pipeline_mode<synchronous>, transform_indices = @transform_0, window_bounds = array<i64: 2, 8, 64>}, {pipeline_mode = #tpu.pipeline_mode<synchronous>, transform_indices = @transform_1, window_bounds = array<i64: 2, 4, 256>}, {pipeline_mode = #tpu.pipeline_mode<synchronous>, transform_indices = @transform_2, window_bounds = array<i64: 64, 256>}, {pipeline_mode = #tpu.pipeline_mode<synchronous>, transform_indices = @transform_3, window_bounds = array<i64: 9, 256>}, {pipeline_mode = #tpu.pipeline_mode<synchronous>, transform_indices = @transform_4, window_bounds = array<i64: 4, 4>}, {pipeline_mode = #tpu.pipeline_mode<synchronous>, transform_indices = @transform_5, window_bounds = array<i64: 4, 8>}, {pipeline_mode = #tpu.pipeline_mode<synchronous>, transform_indices = @transform_6, window_bounds = array<i64: 4, 1>}, {pipeline_mode = #tpu.pipeline_mode<synchronous>, transform_indices = @transform_7, window_bounds = array<i64: 4, 1>}, {pipeline_mode = #tpu.pipeline_mode<synchronous>, transform_indices = @transform_8, window_bounds = array<i64: 4, 1>}, {pipeline_mode = #tpu.pipeline_mode<synchronous>, transform_indices = @transform_9, window_bounds = array<i64: 4, 72>}, {pipeline_mode = #tpu.pipeline_mode<synchronous>, transform_indices = @transform_10, window_bounds = array<i64: 4, 1>}, {pipeline_mode = #tpu.pipeline_mode<synchronous>, transform_indices = @transform_11, window_bounds = array<i64: 4, 1>}, {pipeline_mode = #tpu.pipeline_mode<synchronous>, transform_indices = @transform_12, window_bounds = array<i64: 4, 1>}, {pipeline_mode = #tpu.pipeline_mode<synchronous>, transform_indices = @transform_13, window_bounds = array<i64: 4, 36>}, {pipeline_mode = #tpu.pipeline_mode<synchronous>, transform_indices = @transform_14, window_bounds = array<i64: 4, 1>}, {pipeline_mode = #tpu.pipeline_mode<synchronous>, transform_indices = @transform_15, window_bounds = array<i64: 4, 1>}, {pipeline_mode = #tpu.pipeline_mode<synchronous>, transform_indices = @transform_16, window_bounds = array<i64: 4, 1>}, {pipeline_mode = #tpu.pipeline_mode<synchronous>, transform_indices = @transform_17, window_bounds = array<i64: 4, 36>}, {pipeline_mode = #tpu.pipeline_mode<synchronous>, transform_indices = @transform_18, window_bounds = array<i64: 4, 1>}, {pipeline_mode = #tpu.pipeline_mode<synchronous>, transform_indices = @transform_19, window_bounds = array<i64: 4, 1>}, {pipeline_mode = #tpu.pipeline_mode<synchronous>, transform_indices = @transform_20, window_bounds = array<i64: 4, 1>}, {pipeline_mode = #tpu.pipeline_mode<synchronous>, transform_indices = @transform_21, window_bounds = array<i64: 2, 4, 256>}]} {
    %c0 = arith.constant 0 : index
    %c0_0 = arith.constant 0 : index
    %0 = vector.load %arg3[%c0, %c0_0] : memref<64x256xf32, #tpu.memory_space<vmem>>, vector<64x256xf32>
    %c0_1 = arith.constant 0 : index
    %c0_2 = arith.constant 0 : index
    %1 = vector.load %arg4[%c0_1, %c0_2] : memref<9x256xf32, #tpu.memory_space<vmem>>, vector<9x256xf32>
    %c0_3 = arith.constant 0 : index
    %c0_4 = arith.constant 0 : index
    %2 = vector.load %arg5[%c0_3, %c0_4] : memref<4x4xf32, #tpu.memory_space<vmem>>, vector<4x4xf32>
    %c0_5 = arith.constant 0 : index
    %c0_6 = arith.constant 0 : index
    %3 = vector.load %arg6[%c0_5, %c0_6] : memref<4x8xf32, #tpu.memory_space<vmem>>, vector<4x8xf32>
    %c0_7 = arith.constant 0 : index
    %c0_8 = arith.constant 0 : index
    %4 = vector.load %arg7[%c0_7, %c0_8] : memref<4x1xf32, #tpu.memory_space<vmem>>, vector<4x1xf32>
    %c0_9 = arith.constant 0 : index
    %c0_10 = arith.constant 0 : index
    %5 = vector.load %arg8[%c0_9, %c0_10] : memref<4x1xf32, #tpu.memory_space<vmem>>, vector<4x1xf32>
    %c0_11 = arith.constant 0 : index
    %c0_12 = arith.constant 0 : index
    %6 = vector.load %arg9[%c0_11, %c0_12] : memref<4x1xf32, #tpu.memory_space<vmem>>, vector<4x1xf32>
    %c0_13 = arith.constant 0 : index
    %c0_14 = arith.constant 0 : index
    %7 = vector.load %arg10[%c0_13, %c0_14] : memref<4x72xf32, #tpu.memory_space<vmem>>, vector<4x72xf32>
    %c0_15 = arith.constant 0 : index
    %c0_16 = arith.constant 0 : index
    %8 = vector.load %arg11[%c0_15, %c0_16] : memref<4x1xf32, #tpu.memory_space<vmem>>, vector<4x1xf32>
    %c0_17 = arith.constant 0 : index
    %c0_18 = arith.constant 0 : index
    %9 = vector.load %arg12[%c0_17, %c0_18] : memref<4x1xf32, #tpu.memory_space<vmem>>, vector<4x1xf32>
    %c0_19 = arith.constant 0 : index
    %c0_20 = arith.constant 0 : index
    %10 = vector.load %arg13[%c0_19, %c0_20] : memref<4x1xf32, #tpu.memory_space<vmem>>, vector<4x1xf32>
    %c0_21 = arith.constant 0 : index
    %c0_22 = arith.constant 0 : index
    %11 = vector.load %arg14[%c0_21, %c0_22] : memref<4x36xf32, #tpu.memory_space<vmem>>, vector<4x36xf32>
    %c0_23 = arith.constant 0 : index
    %c0_24 = arith.constant 0 : index
    %12 = vector.load %arg15[%c0_23, %c0_24] : memref<4x1xf32, #tpu.memory_space<vmem>>, vector<4x1xf32>
    %c0_25 = arith.constant 0 : index
    %c0_26 = arith.constant 0 : index
    %13 = vector.load %arg16[%c0_25, %c0_26] : memref<4x1xf32, #tpu.memory_space<vmem>>, vector<4x1xf32>
    %c0_27 = arith.constant 0 : index
    %c0_28 = arith.constant 0 : index
    %14 = vector.load %arg17[%c0_27, %c0_28] : memref<4x1xf32, #tpu.memory_space<vmem>>, vector<4x1xf32>
    %c0_29 = arith.constant 0 : index
    %c0_30 = arith.constant 0 : index
    %15 = vector.load %arg18[%c0_29, %c0_30] : memref<4x36xf32, #tpu.memory_space<vmem>>, vector<4x36xf32>
    %c0_31 = arith.constant 0 : index
    %c0_32 = arith.constant 0 : index
    %16 = vector.load %arg19[%c0_31, %c0_32] : memref<4x1xf32, #tpu.memory_space<vmem>>, vector<4x1xf32>
    %c0_33 = arith.constant 0 : index
    %c0_34 = arith.constant 0 : index
    %17 = vector.load %arg20[%c0_33, %c0_34] : memref<4x1xf32, #tpu.memory_space<vmem>>, vector<4x1xf32>
    %c0_35 = arith.constant 0 : index
    %c0_36 = arith.constant 0 : index
    %18 = vector.load %arg21[%c0_35, %c0_36] : memref<4x1xf32, #tpu.memory_space<vmem>>, vector<4x1xf32>
    %c0_37 = arith.constant 0 : index
    %c0_38 = arith.constant 0 : index
    %c0_39 = arith.constant 0 : index
    %19 = vector.load %arg1[%c0_37, %c0_38, %c0_39] : memref<2x8x64xf32, #tpu.memory_space<vmem>>, vector<1x8x64xf32>
    %20 = vector.shape_cast %19 : vector<1x8x64xf32> to vector<8x64xf32>
    %cst = arith.constant dense<0.000000e+00> : vector<4x64xf32>
    %21 = tpu.matmul %3, %20, %cst {dimension_numbers = #tpu.dot_dimension_numbers<[1], [0], [0], [1], [0, 0, 1, 1], [], []>} : vector<4x8xf32>, vector<8x64xf32>, vector<4x64xf32> -> vector<4x64xf32>
    %cst_40 = arith.constant dense<0.000000e+00> : vector<4x256xf32>
    %22 = tpu.matmul %21, %0, %cst_40 {dimension_numbers = #tpu.dot_dimension_numbers<[1], [0], [0], [1], [0, 0, 1, 1], [], []>} : vector<4x64xf32>, vector<64x256xf32>, vector<4x256xf32> -> vector<4x256xf32>
    %23 = vector.broadcast %4 : vector<4x1xf32> to vector<4x256xf32>
    %24 = arith.addf %22, %23 : vector<4x256xf32>
    %cst_41 = arith.constant dense<0.000000e+00> : vector<4xf32>
    %25 = vector.multi_reduction <add>, %24, %cst_41 [1] : vector<4x256xf32> to vector<4xf32>
    %26 = vector.shape_cast %25 : vector<4xf32> to vector<4x1xf32>
    %27 = arith.mulf %24, %24 : vector<4x256xf32>
    %cst_42 = arith.constant dense<0.000000e+00> : vector<4xf32>
    %28 = vector.multi_reduction <add>, %27, %cst_42 [1] : vector<4x256xf32> to vector<4xf32>
    %29 = vector.shape_cast %28 : vector<4xf32> to vector<4x1xf32>
    %30 = tpu.concatenate %26, %29 in 1 : vector<4x1xf32>, vector<4x1xf32> -> vector<4x2xf32>
    %cst_43 = arith.constant dense<0.000000e+00> : vector<4x2xf32>
    %31 = tpu.matmul %2, %30, %cst_43 {dimension_numbers = #tpu.dot_dimension_numbers<[1], [0], [0], [1], [0, 0, 1, 1], [], []>} : vector<4x4xf32>, vector<4x2xf32>, vector<4x2xf32> -> vector<4x2xf32>
    %cst_44 = arith.constant 9.765625E-4 : f32
    %32 = vector.broadcast %cst_44 : f32 to vector<4x2xf32>
    %33 = arith.mulf %31, %32 : vector<4x2xf32>
    %34 = vector.extract_strided_slice %33 {offsets = [0, 0], sizes = [4, 1], strides = [1, 1]} : vector<4x2xf32> to vector<4x1xf32>
    %35 = vector.extract_strided_slice %33 {offsets = [0, 1], sizes = [4, 1], strides = [1, 1]} : vector<4x2xf32> to vector<4x1xf32>
    %36 = arith.mulf %34, %34 : vector<4x1xf32>
    %37 = arith.subf %35, %36 : vector<4x1xf32>
    %cst_45 = arith.constant 9.99999974E-6 : f32
    %38 = vector.broadcast %cst_45 : f32 to vector<4x1xf32>
    %39 = arith.addf %37, %38 : vector<4x1xf32>
    %40 = math.rsqrt %39 : vector<4x1xf32>
    %41 = vector.broadcast %34 : vector<4x1xf32> to vector<4x256xf32>
    %42 = arith.subf %24, %41 : vector<4x256xf32>
    %43 = arith.mulf %40, %5 : vector<4x1xf32>
    %44 = vector.broadcast %43 : vector<4x1xf32> to vector<4x256xf32>
    %45 = arith.mulf %42, %44 : vector<4x256xf32>
    %46 = vector.broadcast %6 : vector<4x1xf32> to vector<4x256xf32>
    %47 = arith.addf %45, %46 : vector<4x256xf32>
    %cst_46 = arith.constant 0.000000e+00 : f32
    %48 = vector.broadcast %cst_46 : f32 to vector<4x256xf32>
    %49 = arith.cmpf oge, %47, %48 : vector<4x256xf32>
    %cst_47 = arith.constant 0.00999999977 : f32
    %50 = vector.broadcast %cst_47 : f32 to vector<4x256xf32>
    %51 = arith.mulf %50, %47 : vector<4x256xf32>
    %52 = arith.select %49, %47, %51 : vector<4x256xi1>, vector<4x256xf32>
    %c0_48 = arith.constant 0 : index
    %c0_49 = arith.constant 0 : index
    %c0_50 = arith.constant 0 : index
    %53 = vector.load %arg2[%c0_48, %c0_49, %c0_50] : memref<2x4x256xf32, #tpu.memory_space<vmem>>, vector<1x4x256xf32>
    %54 = vector.shape_cast %53 : vector<1x4x256xf32> to vector<4x256xf32>
    %55 = tpu.concatenate %52, %54 in 0 : vector<4x256xf32>, vector<4x256xf32> -> vector<8x256xf32>
    %c17_i32 = arith.constant 17 : i32
    %56 = tpu.dynamic_rotate %55 by %c17_i32 dim 1 : vector<8x256xf32>, i32 -> vector<8x256xf32>
    %57 = vector.extract_strided_slice %1 {offsets = [0, 0], sizes = [1, 256], strides = [1, 1]} : vector<9x256xf32> to vector<1x256xf32>
    %58 = vector.broadcast %57 : vector<1x256xf32> to vector<8x256xf32>
    %59 = arith.mulf %56, %58 : vector<8x256xf32>
    %c16_i32 = arith.constant 16 : i32
    %60 = tpu.dynamic_rotate %55 by %c16_i32 dim 1 : vector<8x256xf32>, i32 -> vector<8x256xf32>
    %61 = vector.extract_strided_slice %1 {offsets = [1, 0], sizes = [1, 256], strides = [1, 1]} : vector<9x256xf32> to vector<1x256xf32>
    %62 = vector.broadcast %61 : vector<1x256xf32> to vector<8x256xf32>
    %63 = arith.mulf %60, %62 : vector<8x256xf32>
    %c15_i32 = arith.constant 15 : i32
    %64 = tpu.dynamic_rotate %55 by %c15_i32 dim 1 : vector<8x256xf32>, i32 -> vector<8x256xf32>
    %65 = vector.extract_strided_slice %1 {offsets = [2, 0], sizes = [1, 256], strides = [1, 1]} : vector<9x256xf32> to vector<1x256xf32>
    %66 = vector.broadcast %65 : vector<1x256xf32> to vector<8x256xf32>
    %67 = arith.mulf %64, %66 : vector<8x256xf32>
    %c1_i32 = arith.constant 1 : i32
    %68 = tpu.dynamic_rotate %55 by %c1_i32 dim 1 : vector<8x256xf32>, i32 -> vector<8x256xf32>
    %69 = vector.extract_strided_slice %1 {offsets = [3, 0], sizes = [1, 256], strides = [1, 1]} : vector<9x256xf32> to vector<1x256xf32>
    %70 = vector.broadcast %69 : vector<1x256xf32> to vector<8x256xf32>
    %71 = arith.mulf %68, %70 : vector<8x256xf32>
    %c255_i32 = arith.constant 255 : i32
    %72 = tpu.dynamic_rotate %55 by %c255_i32 dim 1 : vector<8x256xf32>, i32 -> vector<8x256xf32>
    %73 = vector.extract_strided_slice %1 {offsets = [5, 0], sizes = [1, 256], strides = [1, 1]} : vector<9x256xf32> to vector<1x256xf32>
    %74 = vector.broadcast %73 : vector<1x256xf32> to vector<8x256xf32>
    %75 = arith.mulf %72, %74 : vector<8x256xf32>
    %c241_i32 = arith.constant 241 : i32
    %76 = tpu.dynamic_rotate %55 by %c241_i32 dim 1 : vector<8x256xf32>, i32 -> vector<8x256xf32>
    %77 = vector.extract_strided_slice %1 {offsets = [6, 0], sizes = [1, 256], strides = [1, 1]} : vector<9x256xf32> to vector<1x256xf32>
    %78 = vector.broadcast %77 : vector<1x256xf32> to vector<8x256xf32>
    %79 = arith.mulf %76, %78 : vector<8x256xf32>
    %c240_i32 = arith.constant 240 : i32
    %80 = tpu.dynamic_rotate %55 by %c240_i32 dim 1 : vector<8x256xf32>, i32 -> vector<8x256xf32>
    %81 = vector.extract_strided_slice %1 {offsets = [7, 0], sizes = [1, 256], strides = [1, 1]} : vector<9x256xf32> to vector<1x256xf32>
    %82 = vector.broadcast %81 : vector<1x256xf32> to vector<8x256xf32>
    %83 = arith.mulf %80, %82 : vector<8x256xf32>
    %c239_i32 = arith.constant 239 : i32
    %84 = tpu.dynamic_rotate %55 by %c239_i32 dim 1 : vector<8x256xf32>, i32 -> vector<8x256xf32>
    %85 = vector.extract_strided_slice %1 {offsets = [8, 0], sizes = [1, 256], strides = [1, 1]} : vector<9x256xf32> to vector<1x256xf32>
    %86 = vector.broadcast %85 : vector<1x256xf32> to vector<8x256xf32>
    %87 = arith.mulf %84, %86 : vector<8x256xf32>
    %88 = tpu.concatenate %59, %63, %67, %71, %55, %75, %79, %83, %87 in 0 : vector<8x256xf32>, vector<8x256xf32>, vector<8x256xf32>, vector<8x256xf32>, vector<8x256xf32>, vector<8x256xf32>, vector<8x256xf32>, vector<8x256xf32>, vector<8x256xf32> -> vector<72x256xf32>
    %cst_51 = arith.constant dense<0.000000e+00> : vector<4x256xf32>
    %89 = tpu.matmul %7, %88, %cst_51 {dimension_numbers = #tpu.dot_dimension_numbers<[1], [0], [0], [1], [0, 0, 1, 1], [], []>} : vector<4x72xf32>, vector<72x256xf32>, vector<4x256xf32> -> vector<4x256xf32>
    %90 = vector.broadcast %8 : vector<4x1xf32> to vector<4x256xf32>
    %91 = arith.addf %89, %90 : vector<4x256xf32>
    %cst_52 = arith.constant dense<0.000000e+00> : vector<4xf32>
    %92 = vector.multi_reduction <add>, %91, %cst_52 [1] : vector<4x256xf32> to vector<4xf32>
    %93 = vector.shape_cast %92 : vector<4xf32> to vector<4x1xf32>
    %94 = arith.mulf %91, %91 : vector<4x256xf32>
    %cst_53 = arith.constant dense<0.000000e+00> : vector<4xf32>
    %95 = vector.multi_reduction <add>, %94, %cst_53 [1] : vector<4x256xf32> to vector<4xf32>
    %96 = vector.shape_cast %95 : vector<4xf32> to vector<4x1xf32>
    %97 = tpu.concatenate %93, %96 in 1 : vector<4x1xf32>, vector<4x1xf32> -> vector<4x2xf32>
    %cst_54 = arith.constant dense<0.000000e+00> : vector<4x2xf32>
    %98 = tpu.matmul %2, %97, %cst_54 {dimension_numbers = #tpu.dot_dimension_numbers<[1], [0], [0], [1], [0, 0, 1, 1], [], []>} : vector<4x4xf32>, vector<4x2xf32>, vector<4x2xf32> -> vector<4x2xf32>
    %cst_55 = arith.constant 9.765625E-4 : f32
    %99 = vector.broadcast %cst_55 : f32 to vector<4x2xf32>
    %100 = arith.mulf %98, %99 : vector<4x2xf32>
    %101 = vector.extract_strided_slice %100 {offsets = [0, 0], sizes = [4, 1], strides = [1, 1]} : vector<4x2xf32> to vector<4x1xf32>
    %102 = vector.extract_strided_slice %100 {offsets = [0, 1], sizes = [4, 1], strides = [1, 1]} : vector<4x2xf32> to vector<4x1xf32>
    %103 = arith.mulf %101, %101 : vector<4x1xf32>
    %104 = arith.subf %102, %103 : vector<4x1xf32>
    %cst_56 = arith.constant 9.99999974E-6 : f32
    %105 = vector.broadcast %cst_56 : f32 to vector<4x1xf32>
    %106 = arith.addf %104, %105 : vector<4x1xf32>
    %107 = math.rsqrt %106 : vector<4x1xf32>
    %108 = vector.broadcast %101 : vector<4x1xf32> to vector<4x256xf32>
    %109 = arith.subf %91, %108 : vector<4x256xf32>
    %110 = arith.mulf %107, %9 : vector<4x1xf32>
    %111 = vector.broadcast %110 : vector<4x1xf32> to vector<4x256xf32>
    %112 = arith.mulf %109, %111 : vector<4x256xf32>
    %113 = vector.broadcast %10 : vector<4x1xf32> to vector<4x256xf32>
    %114 = arith.addf %112, %113 : vector<4x256xf32>
    %cst_57 = arith.constant 0.000000e+00 : f32
    %115 = vector.broadcast %cst_57 : f32 to vector<4x256xf32>
    %116 = arith.cmpf oge, %114, %115 : vector<4x256xf32>
    %cst_58 = arith.constant 0.00999999977 : f32
    %117 = vector.broadcast %cst_58 : f32 to vector<4x256xf32>
    %118 = arith.mulf %117, %114 : vector<4x256xf32>
    %119 = arith.select %116, %114, %118 : vector<4x256xi1>, vector<4x256xf32>
    %c17_i32_59 = arith.constant 17 : i32
    %120 = tpu.dynamic_rotate %119 by %c17_i32_59 dim 1 : vector<4x256xf32>, i32 -> vector<4x256xf32>
    %121 = vector.extract_strided_slice %1 {offsets = [0, 0], sizes = [1, 256], strides = [1, 1]} : vector<9x256xf32> to vector<1x256xf32>
    %122 = vector.broadcast %121 : vector<1x256xf32> to vector<4x256xf32>
    %123 = arith.mulf %120, %122 : vector<4x256xf32>
    %c16_i32_60 = arith.constant 16 : i32
    %124 = tpu.dynamic_rotate %119 by %c16_i32_60 dim 1 : vector<4x256xf32>, i32 -> vector<4x256xf32>
    %125 = vector.extract_strided_slice %1 {offsets = [1, 0], sizes = [1, 256], strides = [1, 1]} : vector<9x256xf32> to vector<1x256xf32>
    %126 = vector.broadcast %125 : vector<1x256xf32> to vector<4x256xf32>
    %127 = arith.mulf %124, %126 : vector<4x256xf32>
    %c15_i32_61 = arith.constant 15 : i32
    %128 = tpu.dynamic_rotate %119 by %c15_i32_61 dim 1 : vector<4x256xf32>, i32 -> vector<4x256xf32>
    %129 = vector.extract_strided_slice %1 {offsets = [2, 0], sizes = [1, 256], strides = [1, 1]} : vector<9x256xf32> to vector<1x256xf32>
    %130 = vector.broadcast %129 : vector<1x256xf32> to vector<4x256xf32>
    %131 = arith.mulf %128, %130 : vector<4x256xf32>
    %c1_i32_62 = arith.constant 1 : i32
    %132 = tpu.dynamic_rotate %119 by %c1_i32_62 dim 1 : vector<4x256xf32>, i32 -> vector<4x256xf32>
    %133 = vector.extract_strided_slice %1 {offsets = [3, 0], sizes = [1, 256], strides = [1, 1]} : vector<9x256xf32> to vector<1x256xf32>
    %134 = vector.broadcast %133 : vector<1x256xf32> to vector<4x256xf32>
    %135 = arith.mulf %132, %134 : vector<4x256xf32>
    %c255_i32_63 = arith.constant 255 : i32
    %136 = tpu.dynamic_rotate %119 by %c255_i32_63 dim 1 : vector<4x256xf32>, i32 -> vector<4x256xf32>
    %137 = vector.extract_strided_slice %1 {offsets = [5, 0], sizes = [1, 256], strides = [1, 1]} : vector<9x256xf32> to vector<1x256xf32>
    %138 = vector.broadcast %137 : vector<1x256xf32> to vector<4x256xf32>
    %139 = arith.mulf %136, %138 : vector<4x256xf32>
    %c241_i32_64 = arith.constant 241 : i32
    %140 = tpu.dynamic_rotate %119 by %c241_i32_64 dim 1 : vector<4x256xf32>, i32 -> vector<4x256xf32>
    %141 = vector.extract_strided_slice %1 {offsets = [6, 0], sizes = [1, 256], strides = [1, 1]} : vector<9x256xf32> to vector<1x256xf32>
    %142 = vector.broadcast %141 : vector<1x256xf32> to vector<4x256xf32>
    %143 = arith.mulf %140, %142 : vector<4x256xf32>
    %c240_i32_65 = arith.constant 240 : i32
    %144 = tpu.dynamic_rotate %119 by %c240_i32_65 dim 1 : vector<4x256xf32>, i32 -> vector<4x256xf32>
    %145 = vector.extract_strided_slice %1 {offsets = [7, 0], sizes = [1, 256], strides = [1, 1]} : vector<9x256xf32> to vector<1x256xf32>
    %146 = vector.broadcast %145 : vector<1x256xf32> to vector<4x256xf32>
    %147 = arith.mulf %144, %146 : vector<4x256xf32>
    %c239_i32_66 = arith.constant 239 : i32
    %148 = tpu.dynamic_rotate %119 by %c239_i32_66 dim 1 : vector<4x256xf32>, i32 -> vector<4x256xf32>
    %149 = vector.extract_strided_slice %1 {offsets = [8, 0], sizes = [1, 256], strides = [1, 1]} : vector<9x256xf32> to vector<1x256xf32>
    %150 = vector.broadcast %149 : vector<1x256xf32> to vector<4x256xf32>
    %151 = arith.mulf %148, %150 : vector<4x256xf32>
    %152 = tpu.concatenate %123, %127, %131, %135, %119, %139, %143, %147, %151 in 0 : vector<4x256xf32>, vector<4x256xf32>, vector<4x256xf32>, vector<4x256xf32>, vector<4x256xf32>, vector<4x256xf32>, vector<4x256xf32>, vector<4x256xf32>, vector<4x256xf32> -> vector<36x256xf32>
    %cst_67 = arith.constant dense<0.000000e+00> : vector<4x256xf32>
    %153 = tpu.matmul %11, %152, %cst_67 {dimension_numbers = #tpu.dot_dimension_numbers<[1], [0], [0], [1], [0, 0, 1, 1], [], []>} : vector<4x36xf32>, vector<36x256xf32>, vector<4x256xf32> -> vector<4x256xf32>
    %154 = vector.broadcast %12 : vector<4x1xf32> to vector<4x256xf32>
    %155 = arith.addf %153, %154 : vector<4x256xf32>
    %cst_68 = arith.constant dense<0.000000e+00> : vector<4xf32>
    %156 = vector.multi_reduction <add>, %155, %cst_68 [1] : vector<4x256xf32> to vector<4xf32>
    %157 = vector.shape_cast %156 : vector<4xf32> to vector<4x1xf32>
    %158 = arith.mulf %155, %155 : vector<4x256xf32>
    %cst_69 = arith.constant dense<0.000000e+00> : vector<4xf32>
    %159 = vector.multi_reduction <add>, %158, %cst_69 [1] : vector<4x256xf32> to vector<4xf32>
    %160 = vector.shape_cast %159 : vector<4xf32> to vector<4x1xf32>
    %161 = tpu.concatenate %157, %160 in 1 : vector<4x1xf32>, vector<4x1xf32> -> vector<4x2xf32>
    %cst_70 = arith.constant dense<0.000000e+00> : vector<4x2xf32>
    %162 = tpu.matmul %2, %161, %cst_70 {dimension_numbers = #tpu.dot_dimension_numbers<[1], [0], [0], [1], [0, 0, 1, 1], [], []>} : vector<4x4xf32>, vector<4x2xf32>, vector<4x2xf32> -> vector<4x2xf32>
    %cst_71 = arith.constant 9.765625E-4 : f32
    %163 = vector.broadcast %cst_71 : f32 to vector<4x2xf32>
    %164 = arith.mulf %162, %163 : vector<4x2xf32>
    %165 = vector.extract_strided_slice %164 {offsets = [0, 0], sizes = [4, 1], strides = [1, 1]} : vector<4x2xf32> to vector<4x1xf32>
    %166 = vector.extract_strided_slice %164 {offsets = [0, 1], sizes = [4, 1], strides = [1, 1]} : vector<4x2xf32> to vector<4x1xf32>
    %167 = arith.mulf %165, %165 : vector<4x1xf32>
    %168 = arith.subf %166, %167 : vector<4x1xf32>
    %cst_72 = arith.constant 9.99999974E-6 : f32
    %169 = vector.broadcast %cst_72 : f32 to vector<4x1xf32>
    %170 = arith.addf %168, %169 : vector<4x1xf32>
    %171 = math.rsqrt %170 : vector<4x1xf32>
    %172 = vector.broadcast %165 : vector<4x1xf32> to vector<4x256xf32>
    %173 = arith.subf %155, %172 : vector<4x256xf32>
    %174 = arith.mulf %171, %13 : vector<4x1xf32>
    %175 = vector.broadcast %174 : vector<4x1xf32> to vector<4x256xf32>
    %176 = arith.mulf %173, %175 : vector<4x256xf32>
    %177 = vector.broadcast %14 : vector<4x1xf32> to vector<4x256xf32>
    %178 = arith.addf %176, %177 : vector<4x256xf32>
    %cst_73 = arith.constant 0.000000e+00 : f32
    %179 = vector.broadcast %cst_73 : f32 to vector<4x256xf32>
    %180 = arith.cmpf oge, %178, %179 : vector<4x256xf32>
    %cst_74 = arith.constant 0.00999999977 : f32
    %181 = vector.broadcast %cst_74 : f32 to vector<4x256xf32>
    %182 = arith.mulf %181, %178 : vector<4x256xf32>
    %183 = arith.select %180, %178, %182 : vector<4x256xi1>, vector<4x256xf32>
    %c17_i32_75 = arith.constant 17 : i32
    %184 = tpu.dynamic_rotate %183 by %c17_i32_75 dim 1 : vector<4x256xf32>, i32 -> vector<4x256xf32>
    %185 = vector.extract_strided_slice %1 {offsets = [0, 0], sizes = [1, 256], strides = [1, 1]} : vector<9x256xf32> to vector<1x256xf32>
    %186 = vector.broadcast %185 : vector<1x256xf32> to vector<4x256xf32>
    %187 = arith.mulf %184, %186 : vector<4x256xf32>
    %c16_i32_76 = arith.constant 16 : i32
    %188 = tpu.dynamic_rotate %183 by %c16_i32_76 dim 1 : vector<4x256xf32>, i32 -> vector<4x256xf32>
    %189 = vector.extract_strided_slice %1 {offsets = [1, 0], sizes = [1, 256], strides = [1, 1]} : vector<9x256xf32> to vector<1x256xf32>
    %190 = vector.broadcast %189 : vector<1x256xf32> to vector<4x256xf32>
    %191 = arith.mulf %188, %190 : vector<4x256xf32>
    %c15_i32_77 = arith.constant 15 : i32
    %192 = tpu.dynamic_rotate %183 by %c15_i32_77 dim 1 : vector<4x256xf32>, i32 -> vector<4x256xf32>
    %193 = vector.extract_strided_slice %1 {offsets = [2, 0], sizes = [1, 256], strides = [1, 1]} : vector<9x256xf32> to vector<1x256xf32>
    %194 = vector.broadcast %193 : vector<1x256xf32> to vector<4x256xf32>
    %195 = arith.mulf %192, %194 : vector<4x256xf32>
    %c1_i32_78 = arith.constant 1 : i32
    %196 = tpu.dynamic_rotate %183 by %c1_i32_78 dim 1 : vector<4x256xf32>, i32 -> vector<4x256xf32>
    %197 = vector.extract_strided_slice %1 {offsets = [3, 0], sizes = [1, 256], strides = [1, 1]} : vector<9x256xf32> to vector<1x256xf32>
    %198 = vector.broadcast %197 : vector<1x256xf32> to vector<4x256xf32>
    %199 = arith.mulf %196, %198 : vector<4x256xf32>
    %c255_i32_79 = arith.constant 255 : i32
    %200 = tpu.dynamic_rotate %183 by %c255_i32_79 dim 1 : vector<4x256xf32>, i32 -> vector<4x256xf32>
    %201 = vector.extract_strided_slice %1 {offsets = [5, 0], sizes = [1, 256], strides = [1, 1]} : vector<9x256xf32> to vector<1x256xf32>
    %202 = vector.broadcast %201 : vector<1x256xf32> to vector<4x256xf32>
    %203 = arith.mulf %200, %202 : vector<4x256xf32>
    %c241_i32_80 = arith.constant 241 : i32
    %204 = tpu.dynamic_rotate %183 by %c241_i32_80 dim 1 : vector<4x256xf32>, i32 -> vector<4x256xf32>
    %205 = vector.extract_strided_slice %1 {offsets = [6, 0], sizes = [1, 256], strides = [1, 1]} : vector<9x256xf32> to vector<1x256xf32>
    %206 = vector.broadcast %205 : vector<1x256xf32> to vector<4x256xf32>
    %207 = arith.mulf %204, %206 : vector<4x256xf32>
    %c240_i32_81 = arith.constant 240 : i32
    %208 = tpu.dynamic_rotate %183 by %c240_i32_81 dim 1 : vector<4x256xf32>, i32 -> vector<4x256xf32>
    %209 = vector.extract_strided_slice %1 {offsets = [7, 0], sizes = [1, 256], strides = [1, 1]} : vector<9x256xf32> to vector<1x256xf32>
    %210 = vector.broadcast %209 : vector<1x256xf32> to vector<4x256xf32>
    %211 = arith.mulf %208, %210 : vector<4x256xf32>
    %c239_i32_82 = arith.constant 239 : i32
    %212 = tpu.dynamic_rotate %183 by %c239_i32_82 dim 1 : vector<4x256xf32>, i32 -> vector<4x256xf32>
    %213 = vector.extract_strided_slice %1 {offsets = [8, 0], sizes = [1, 256], strides = [1, 1]} : vector<9x256xf32> to vector<1x256xf32>
    %214 = vector.broadcast %213 : vector<1x256xf32> to vector<4x256xf32>
    %215 = arith.mulf %212, %214 : vector<4x256xf32>
    %216 = tpu.concatenate %187, %191, %195, %199, %183, %203, %207, %211, %215 in 0 : vector<4x256xf32>, vector<4x256xf32>, vector<4x256xf32>, vector<4x256xf32>, vector<4x256xf32>, vector<4x256xf32>, vector<4x256xf32>, vector<4x256xf32>, vector<4x256xf32> -> vector<36x256xf32>
    %cst_83 = arith.constant dense<0.000000e+00> : vector<4x256xf32>
    %217 = tpu.matmul %15, %216, %cst_83 {dimension_numbers = #tpu.dot_dimension_numbers<[1], [0], [0], [1], [0, 0, 1, 1], [], []>} : vector<4x36xf32>, vector<36x256xf32>, vector<4x256xf32> -> vector<4x256xf32>
    %218 = vector.broadcast %16 : vector<4x1xf32> to vector<4x256xf32>
    %219 = arith.addf %217, %218 : vector<4x256xf32>
    %cst_84 = arith.constant dense<0.000000e+00> : vector<4xf32>
    %220 = vector.multi_reduction <add>, %219, %cst_84 [1] : vector<4x256xf32> to vector<4xf32>
    %221 = vector.shape_cast %220 : vector<4xf32> to vector<4x1xf32>
    %222 = arith.mulf %219, %219 : vector<4x256xf32>
    %cst_85 = arith.constant dense<0.000000e+00> : vector<4xf32>
    %223 = vector.multi_reduction <add>, %222, %cst_85 [1] : vector<4x256xf32> to vector<4xf32>
    %224 = vector.shape_cast %223 : vector<4xf32> to vector<4x1xf32>
    %225 = tpu.concatenate %221, %224 in 1 : vector<4x1xf32>, vector<4x1xf32> -> vector<4x2xf32>
    %cst_86 = arith.constant dense<0.000000e+00> : vector<4x2xf32>
    %226 = tpu.matmul %2, %225, %cst_86 {dimension_numbers = #tpu.dot_dimension_numbers<[1], [0], [0], [1], [0, 0, 1, 1], [], []>} : vector<4x4xf32>, vector<4x2xf32>, vector<4x2xf32> -> vector<4x2xf32>
    %cst_87 = arith.constant 9.765625E-4 : f32
    %227 = vector.broadcast %cst_87 : f32 to vector<4x2xf32>
    %228 = arith.mulf %226, %227 : vector<4x2xf32>
    %229 = vector.extract_strided_slice %228 {offsets = [0, 0], sizes = [4, 1], strides = [1, 1]} : vector<4x2xf32> to vector<4x1xf32>
    %230 = vector.extract_strided_slice %228 {offsets = [0, 1], sizes = [4, 1], strides = [1, 1]} : vector<4x2xf32> to vector<4x1xf32>
    %231 = arith.mulf %229, %229 : vector<4x1xf32>
    %232 = arith.subf %230, %231 : vector<4x1xf32>
    %cst_88 = arith.constant 9.99999974E-6 : f32
    %233 = vector.broadcast %cst_88 : f32 to vector<4x1xf32>
    %234 = arith.addf %232, %233 : vector<4x1xf32>
    %235 = math.rsqrt %234 : vector<4x1xf32>
    %236 = vector.broadcast %229 : vector<4x1xf32> to vector<4x256xf32>
    %237 = arith.subf %219, %236 : vector<4x256xf32>
    %238 = arith.mulf %235, %17 : vector<4x1xf32>
    %239 = vector.broadcast %238 : vector<4x1xf32> to vector<4x256xf32>
    %240 = arith.mulf %237, %239 : vector<4x256xf32>
    %241 = vector.broadcast %18 : vector<4x1xf32> to vector<4x256xf32>
    %242 = arith.addf %240, %241 : vector<4x256xf32>
    %cst_89 = arith.constant 0.000000e+00 : f32
    %243 = vector.broadcast %cst_89 : f32 to vector<4x256xf32>
    %244 = arith.cmpf oge, %242, %243 : vector<4x256xf32>
    %cst_90 = arith.constant 0.00999999977 : f32
    %245 = vector.broadcast %cst_90 : f32 to vector<4x256xf32>
    %246 = arith.mulf %245, %242 : vector<4x256xf32>
    %247 = arith.select %244, %242, %246 : vector<4x256xi1>, vector<4x256xf32>
    %248 = arith.addf %247, %119 : vector<4x256xf32>
    %c0_91 = arith.constant 0 : index
    %c0_92 = arith.constant 0 : index
    %c0_93 = arith.constant 0 : index
    %249 = vector.load %arg22[%c0_91, %c0_92, %c0_93] : memref<2x4x256xf32, #tpu.memory_space<vmem>>, vector<1x4x256xf32>
    %250 = vector.shape_cast %249 : vector<1x4x256xf32> to vector<4x256xf32>
    %251 = vector.shape_cast %248 : vector<4x256xf32> to vector<1x4x256xf32>
    tpu.vector_store %arg22[%c0_91, %c0_92, %c0_93], %251 {strides = array<i32>} : memref<2x4x256xf32, #tpu.memory_space<vmem>>, vector<1x4x256xf32>,
    %c1 = arith.constant 1 : index
    %c0_94 = arith.constant 0 : index
    %c0_95 = arith.constant 0 : index
    %252 = vector.load %arg1[%c1, %c0_94, %c0_95] : memref<2x8x64xf32, #tpu.memory_space<vmem>>, vector<1x8x64xf32>
    %253 = vector.shape_cast %252 : vector<1x8x64xf32> to vector<8x64xf32>
    %cst_96 = arith.constant dense<0.000000e+00> : vector<4x64xf32>
    %254 = tpu.matmul %3, %253, %cst_96 {dimension_numbers = #tpu.dot_dimension_numbers<[1], [0], [0], [1], [0, 0, 1, 1], [], []>} : vector<4x8xf32>, vector<8x64xf32>, vector<4x64xf32> -> vector<4x64xf32>
    %cst_97 = arith.constant dense<0.000000e+00> : vector<4x256xf32>
    %255 = tpu.matmul %254, %0, %cst_97 {dimension_numbers = #tpu.dot_dimension_numbers<[1], [0], [0], [1], [0, 0, 1, 1], [], []>} : vector<4x64xf32>, vector<64x256xf32>, vector<4x256xf32> -> vector<4x256xf32>
    %256 = vector.broadcast %4 : vector<4x1xf32> to vector<4x256xf32>
    %257 = arith.addf %255, %256 : vector<4x256xf32>
    %cst_98 = arith.constant dense<0.000000e+00> : vector<4xf32>
    %258 = vector.multi_reduction <add>, %257, %cst_98 [1] : vector<4x256xf32> to vector<4xf32>
    %259 = vector.shape_cast %258 : vector<4xf32> to vector<4x1xf32>
    %260 = arith.mulf %257, %257 : vector<4x256xf32>
    %cst_99 = arith.constant dense<0.000000e+00> : vector<4xf32>
    %261 = vector.multi_reduction <add>, %260, %cst_99 [1] : vector<4x256xf32> to vector<4xf32>
    %262 = vector.shape_cast %261 : vector<4xf32> to vector<4x1xf32>
    %263 = tpu.concatenate %259, %262 in 1 : vector<4x1xf32>, vector<4x1xf32> -> vector<4x2xf32>
    %cst_100 = arith.constant dense<0.000000e+00> : vector<4x2xf32>
    %264 = tpu.matmul %2, %263, %cst_100 {dimension_numbers = #tpu.dot_dimension_numbers<[1], [0], [0], [1], [0, 0, 1, 1], [], []>} : vector<4x4xf32>, vector<4x2xf32>, vector<4x2xf32> -> vector<4x2xf32>
    %cst_101 = arith.constant 9.765625E-4 : f32
    %265 = vector.broadcast %cst_101 : f32 to vector<4x2xf32>
    %266 = arith.mulf %264, %265 : vector<4x2xf32>
    %267 = vector.extract_strided_slice %266 {offsets = [0, 0], sizes = [4, 1], strides = [1, 1]} : vector<4x2xf32> to vector<4x1xf32>
    %268 = vector.extract_strided_slice %266 {offsets = [0, 1], sizes = [4, 1], strides = [1, 1]} : vector<4x2xf32> to vector<4x1xf32>
    %269 = arith.mulf %267, %267 : vector<4x1xf32>
    %270 = arith.subf %268, %269 : vector<4x1xf32>
    %cst_102 = arith.constant 9.99999974E-6 : f32
    %271 = vector.broadcast %cst_102 : f32 to vector<4x1xf32>
    %272 = arith.addf %270, %271 : vector<4x1xf32>
    %273 = math.rsqrt %272 : vector<4x1xf32>
    %274 = vector.broadcast %267 : vector<4x1xf32> to vector<4x256xf32>
    %275 = arith.subf %257, %274 : vector<4x256xf32>
    %276 = arith.mulf %273, %5 : vector<4x1xf32>
    %277 = vector.broadcast %276 : vector<4x1xf32> to vector<4x256xf32>
    %278 = arith.mulf %275, %277 : vector<4x256xf32>
    %279 = vector.broadcast %6 : vector<4x1xf32> to vector<4x256xf32>
    %280 = arith.addf %278, %279 : vector<4x256xf32>
    %cst_103 = arith.constant 0.000000e+00 : f32
    %281 = vector.broadcast %cst_103 : f32 to vector<4x256xf32>
    %282 = arith.cmpf oge, %280, %281 : vector<4x256xf32>
    %cst_104 = arith.constant 0.00999999977 : f32
    %283 = vector.broadcast %cst_104 : f32 to vector<4x256xf32>
    %284 = arith.mulf %283, %280 : vector<4x256xf32>
    %285 = arith.select %282, %280, %284 : vector<4x256xi1>, vector<4x256xf32>
    %c1_105 = arith.constant 1 : index
    %c0_106 = arith.constant 0 : index
    %c0_107 = arith.constant 0 : index
    %286 = vector.load %arg2[%c1_105, %c0_106, %c0_107] : memref<2x4x256xf32, #tpu.memory_space<vmem>>, vector<1x4x256xf32>
    %287 = vector.shape_cast %286 : vector<1x4x256xf32> to vector<4x256xf32>
    %288 = tpu.concatenate %285, %287 in 0 : vector<4x256xf32>, vector<4x256xf32> -> vector<8x256xf32>
    %c17_i32_108 = arith.constant 17 : i32
    %289 = tpu.dynamic_rotate %288 by %c17_i32_108 dim 1 : vector<8x256xf32>, i32 -> vector<8x256xf32>
    %290 = vector.extract_strided_slice %1 {offsets = [0, 0], sizes = [1, 256], strides = [1, 1]} : vector<9x256xf32> to vector<1x256xf32>
    %291 = vector.broadcast %290 : vector<1x256xf32> to vector<8x256xf32>
    %292 = arith.mulf %289, %291 : vector<8x256xf32>
    %c16_i32_109 = arith.constant 16 : i32
    %293 = tpu.dynamic_rotate %288 by %c16_i32_109 dim 1 : vector<8x256xf32>, i32 -> vector<8x256xf32>
    %294 = vector.extract_strided_slice %1 {offsets = [1, 0], sizes = [1, 256], strides = [1, 1]} : vector<9x256xf32> to vector<1x256xf32>
    %295 = vector.broadcast %294 : vector<1x256xf32> to vector<8x256xf32>
    %296 = arith.mulf %293, %295 : vector<8x256xf32>
    %c15_i32_110 = arith.constant 15 : i32
    %297 = tpu.dynamic_rotate %288 by %c15_i32_110 dim 1 : vector<8x256xf32>, i32 -> vector<8x256xf32>
    %298 = vector.extract_strided_slice %1 {offsets = [2, 0], sizes = [1, 256], strides = [1, 1]} : vector<9x256xf32> to vector<1x256xf32>
    %299 = vector.broadcast %298 : vector<1x256xf32> to vector<8x256xf32>
    %300 = arith.mulf %297, %299 : vector<8x256xf32>
    %c1_i32_111 = arith.constant 1 : i32
    %301 = tpu.dynamic_rotate %288 by %c1_i32_111 dim 1 : vector<8x256xf32>, i32 -> vector<8x256xf32>
    %302 = vector.extract_strided_slice %1 {offsets = [3, 0], sizes = [1, 256], strides = [1, 1]} : vector<9x256xf32> to vector<1x256xf32>
    %303 = vector.broadcast %302 : vector<1x256xf32> to vector<8x256xf32>
    %304 = arith.mulf %301, %303 : vector<8x256xf32>
    %c255_i32_112 = arith.constant 255 : i32
    %305 = tpu.dynamic_rotate %288 by %c255_i32_112 dim 1 : vector<8x256xf32>, i32 -> vector<8x256xf32>
    %306 = vector.extract_strided_slice %1 {offsets = [5, 0], sizes = [1, 256], strides = [1, 1]} : vector<9x256xf32> to vector<1x256xf32>
    %307 = vector.broadcast %306 : vector<1x256xf32> to vector<8x256xf32>
    %308 = arith.mulf %305, %307 : vector<8x256xf32>
    %c241_i32_113 = arith.constant 241 : i32
    %309 = tpu.dynamic_rotate %288 by %c241_i32_113 dim 1 : vector<8x256xf32>, i32 -> vector<8x256xf32>
    %310 = vector.extract_strided_slice %1 {offsets = [6, 0], sizes = [1, 256], strides = [1, 1]} : vector<9x256xf32> to vector<1x256xf32>
    %311 = vector.broadcast %310 : vector<1x256xf32> to vector<8x256xf32>
    %312 = arith.mulf %309, %311 : vector<8x256xf32>
    %c240_i32_114 = arith.constant 240 : i32
    %313 = tpu.dynamic_rotate %288 by %c240_i32_114 dim 1 : vector<8x256xf32>, i32 -> vector<8x256xf32>
    %314 = vector.extract_strided_slice %1 {offsets = [7, 0], sizes = [1, 256], strides = [1, 1]} : vector<9x256xf32> to vector<1x256xf32>
    %315 = vector.broadcast %314 : vector<1x256xf32> to vector<8x256xf32>
    %316 = arith.mulf %313, %315 : vector<8x256xf32>
    %c239_i32_115 = arith.constant 239 : i32
    %317 = tpu.dynamic_rotate %288 by %c239_i32_115 dim 1 : vector<8x256xf32>, i32 -> vector<8x256xf32>
    %318 = vector.extract_strided_slice %1 {offsets = [8, 0], sizes = [1, 256], strides = [1, 1]} : vector<9x256xf32> to vector<1x256xf32>
    %319 = vector.broadcast %318 : vector<1x256xf32> to vector<8x256xf32>
    %320 = arith.mulf %317, %319 : vector<8x256xf32>
    %321 = tpu.concatenate %292, %296, %300, %304, %288, %308, %312, %316, %320 in 0 : vector<8x256xf32>, vector<8x256xf32>, vector<8x256xf32>, vector<8x256xf32>, vector<8x256xf32>, vector<8x256xf32>, vector<8x256xf32>, vector<8x256xf32>, vector<8x256xf32> -> vector<72x256xf32>
    %cst_116 = arith.constant dense<0.000000e+00> : vector<4x256xf32>
    %322 = tpu.matmul %7, %321, %cst_116 {dimension_numbers = #tpu.dot_dimension_numbers<[1], [0], [0], [1], [0, 0, 1, 1], [], []>} : vector<4x72xf32>, vector<72x256xf32>, vector<4x256xf32> -> vector<4x256xf32>
    %323 = vector.broadcast %8 : vector<4x1xf32> to vector<4x256xf32>
    %324 = arith.addf %322, %323 : vector<4x256xf32>
    %cst_117 = arith.constant dense<0.000000e+00> : vector<4xf32>
    %325 = vector.multi_reduction <add>, %324, %cst_117 [1] : vector<4x256xf32> to vector<4xf32>
    %326 = vector.shape_cast %325 : vector<4xf32> to vector<4x1xf32>
    %327 = arith.mulf %324, %324 : vector<4x256xf32>
    %cst_118 = arith.constant dense<0.000000e+00> : vector<4xf32>
    %328 = vector.multi_reduction <add>, %327, %cst_118 [1] : vector<4x256xf32> to vector<4xf32>
    %329 = vector.shape_cast %328 : vector<4xf32> to vector<4x1xf32>
    %330 = tpu.concatenate %326, %329 in 1 : vector<4x1xf32>, vector<4x1xf32> -> vector<4x2xf32>
    %cst_119 = arith.constant dense<0.000000e+00> : vector<4x2xf32>
    %331 = tpu.matmul %2, %330, %cst_119 {dimension_numbers = #tpu.dot_dimension_numbers<[1], [0], [0], [1], [0, 0, 1, 1], [], []>} : vector<4x4xf32>, vector<4x2xf32>, vector<4x2xf32> -> vector<4x2xf32>
    %cst_120 = arith.constant 9.765625E-4 : f32
    %332 = vector.broadcast %cst_120 : f32 to vector<4x2xf32>
    %333 = arith.mulf %331, %332 : vector<4x2xf32>
    %334 = vector.extract_strided_slice %333 {offsets = [0, 0], sizes = [4, 1], strides = [1, 1]} : vector<4x2xf32> to vector<4x1xf32>
    %335 = vector.extract_strided_slice %333 {offsets = [0, 1], sizes = [4, 1], strides = [1, 1]} : vector<4x2xf32> to vector<4x1xf32>
    %336 = arith.mulf %334, %334 : vector<4x1xf32>
    %337 = arith.subf %335, %336 : vector<4x1xf32>
    %cst_121 = arith.constant 9.99999974E-6 : f32
    %338 = vector.broadcast %cst_121 : f32 to vector<4x1xf32>
    %339 = arith.addf %337, %338 : vector<4x1xf32>
    %340 = math.rsqrt %339 : vector<4x1xf32>
    %341 = vector.broadcast %334 : vector<4x1xf32> to vector<4x256xf32>
    %342 = arith.subf %324, %341 : vector<4x256xf32>
    %343 = arith.mulf %340, %9 : vector<4x1xf32>
    %344 = vector.broadcast %343 : vector<4x1xf32> to vector<4x256xf32>
    %345 = arith.mulf %342, %344 : vector<4x256xf32>
    %346 = vector.broadcast %10 : vector<4x1xf32> to vector<4x256xf32>
    %347 = arith.addf %345, %346 : vector<4x256xf32>
    %cst_122 = arith.constant 0.000000e+00 : f32
    %348 = vector.broadcast %cst_122 : f32 to vector<4x256xf32>
    %349 = arith.cmpf oge, %347, %348 : vector<4x256xf32>
    %cst_123 = arith.constant 0.00999999977 : f32
    %350 = vector.broadcast %cst_123 : f32 to vector<4x256xf32>
    %351 = arith.mulf %350, %347 : vector<4x256xf32>
    %352 = arith.select %349, %347, %351 : vector<4x256xi1>, vector<4x256xf32>
    %c17_i32_124 = arith.constant 17 : i32
    %353 = tpu.dynamic_rotate %352 by %c17_i32_124 dim 1 : vector<4x256xf32>, i32 -> vector<4x256xf32>
    %354 = vector.extract_strided_slice %1 {offsets = [0, 0], sizes = [1, 256], strides = [1, 1]} : vector<9x256xf32> to vector<1x256xf32>
    %355 = vector.broadcast %354 : vector<1x256xf32> to vector<4x256xf32>
    %356 = arith.mulf %353, %355 : vector<4x256xf32>
    %c16_i32_125 = arith.constant 16 : i32
    %357 = tpu.dynamic_rotate %352 by %c16_i32_125 dim 1 : vector<4x256xf32>, i32 -> vector<4x256xf32>
    %358 = vector.extract_strided_slice %1 {offsets = [1, 0], sizes = [1, 256], strides = [1, 1]} : vector<9x256xf32> to vector<1x256xf32>
    %359 = vector.broadcast %358 : vector<1x256xf32> to vector<4x256xf32>
    %360 = arith.mulf %357, %359 : vector<4x256xf32>
    %c15_i32_126 = arith.constant 15 : i32
    %361 = tpu.dynamic_rotate %352 by %c15_i32_126 dim 1 : vector<4x256xf32>, i32 -> vector<4x256xf32>
    %362 = vector.extract_strided_slice %1 {offsets = [2, 0], sizes = [1, 256], strides = [1, 1]} : vector<9x256xf32> to vector<1x256xf32>
    %363 = vector.broadcast %362 : vector<1x256xf32> to vector<4x256xf32>
    %364 = arith.mulf %361, %363 : vector<4x256xf32>
    %c1_i32_127 = arith.constant 1 : i32
    %365 = tpu.dynamic_rotate %352 by %c1_i32_127 dim 1 : vector<4x256xf32>, i32 -> vector<4x256xf32>
    %366 = vector.extract_strided_slice %1 {offsets = [3, 0], sizes = [1, 256], strides = [1, 1]} : vector<9x256xf32> to vector<1x256xf32>
    %367 = vector.broadcast %366 : vector<1x256xf32> to vector<4x256xf32>
    %368 = arith.mulf %365, %367 : vector<4x256xf32>
    %c255_i32_128 = arith.constant 255 : i32
    %369 = tpu.dynamic_rotate %352 by %c255_i32_128 dim 1 : vector<4x256xf32>, i32 -> vector<4x256xf32>
    %370 = vector.extract_strided_slice %1 {offsets = [5, 0], sizes = [1, 256], strides = [1, 1]} : vector<9x256xf32> to vector<1x256xf32>
    %371 = vector.broadcast %370 : vector<1x256xf32> to vector<4x256xf32>
    %372 = arith.mulf %369, %371 : vector<4x256xf32>
    %c241_i32_129 = arith.constant 241 : i32
    %373 = tpu.dynamic_rotate %352 by %c241_i32_129 dim 1 : vector<4x256xf32>, i32 -> vector<4x256xf32>
    %374 = vector.extract_strided_slice %1 {offsets = [6, 0], sizes = [1, 256], strides = [1, 1]} : vector<9x256xf32> to vector<1x256xf32>
    %375 = vector.broadcast %374 : vector<1x256xf32> to vector<4x256xf32>
    %376 = arith.mulf %373, %375 : vector<4x256xf32>
    %c240_i32_130 = arith.constant 240 : i32
    %377 = tpu.dynamic_rotate %352 by %c240_i32_130 dim 1 : vector<4x256xf32>, i32 -> vector<4x256xf32>
    %378 = vector.extract_strided_slice %1 {offsets = [7, 0], sizes = [1, 256], strides = [1, 1]} : vector<9x256xf32> to vector<1x256xf32>
    %379 = vector.broadcast %378 : vector<1x256xf32> to vector<4x256xf32>
    %380 = arith.mulf %377, %379 : vector<4x256xf32>
    %c239_i32_131 = arith.constant 239 : i32
    %381 = tpu.dynamic_rotate %352 by %c239_i32_131 dim 1 : vector<4x256xf32>, i32 -> vector<4x256xf32>
    %382 = vector.extract_strided_slice %1 {offsets = [8, 0], sizes = [1, 256], strides = [1, 1]} : vector<9x256xf32> to vector<1x256xf32>
    %383 = vector.broadcast %382 : vector<1x256xf32> to vector<4x256xf32>
    %384 = arith.mulf %381, %383 : vector<4x256xf32>
    %385 = tpu.concatenate %356, %360, %364, %368, %352, %372, %376, %380, %384 in 0 : vector<4x256xf32>, vector<4x256xf32>, vector<4x256xf32>, vector<4x256xf32>, vector<4x256xf32>, vector<4x256xf32>, vector<4x256xf32>, vector<4x256xf32>, vector<4x256xf32> -> vector<36x256xf32>
    %cst_132 = arith.constant dense<0.000000e+00> : vector<4x256xf32>
    %386 = tpu.matmul %11, %385, %cst_132 {dimension_numbers = #tpu.dot_dimension_numbers<[1], [0], [0], [1], [0, 0, 1, 1], [], []>} : vector<4x36xf32>, vector<36x256xf32>, vector<4x256xf32> -> vector<4x256xf32>
    %387 = vector.broadcast %12 : vector<4x1xf32> to vector<4x256xf32>
    %388 = arith.addf %386, %387 : vector<4x256xf32>
    %cst_133 = arith.constant dense<0.000000e+00> : vector<4xf32>
    %389 = vector.multi_reduction <add>, %388, %cst_133 [1] : vector<4x256xf32> to vector<4xf32>
    %390 = vector.shape_cast %389 : vector<4xf32> to vector<4x1xf32>
    %391 = arith.mulf %388, %388 : vector<4x256xf32>
    %cst_134 = arith.constant dense<0.000000e+00> : vector<4xf32>
    %392 = vector.multi_reduction <add>, %391, %cst_134 [1] : vector<4x256xf32> to vector<4xf32>
    %393 = vector.shape_cast %392 : vector<4xf32> to vector<4x1xf32>
    %394 = tpu.concatenate %390, %393 in 1 : vector<4x1xf32>, vector<4x1xf32> -> vector<4x2xf32>
    %cst_135 = arith.constant dense<0.000000e+00> : vector<4x2xf32>
    %395 = tpu.matmul %2, %394, %cst_135 {dimension_numbers = #tpu.dot_dimension_numbers<[1], [0], [0], [1], [0, 0, 1, 1], [], []>} : vector<4x4xf32>, vector<4x2xf32>, vector<4x2xf32> -> vector<4x2xf32>
    %cst_136 = arith.constant 9.765625E-4 : f32
    %396 = vector.broadcast %cst_136 : f32 to vector<4x2xf32>
    %397 = arith.mulf %395, %396 : vector<4x2xf32>
    %398 = vector.extract_strided_slice %397 {offsets = [0, 0], sizes = [4, 1], strides = [1, 1]} : vector<4x2xf32> to vector<4x1xf32>
    %399 = vector.extract_strided_slice %397 {offsets = [0, 1], sizes = [4, 1], strides = [1, 1]} : vector<4x2xf32> to vector<4x1xf32>
    %400 = arith.mulf %398, %398 : vector<4x1xf32>
    %401 = arith.subf %399, %400 : vector<4x1xf32>
    %cst_137 = arith.constant 9.99999974E-6 : f32
    %402 = vector.broadcast %cst_137 : f32 to vector<4x1xf32>
    %403 = arith.addf %401, %402 : vector<4x1xf32>
    %404 = math.rsqrt %403 : vector<4x1xf32>
    %405 = vector.broadcast %398 : vector<4x1xf32> to vector<4x256xf32>
    %406 = arith.subf %388, %405 : vector<4x256xf32>
    %407 = arith.mulf %404, %13 : vector<4x1xf32>
    %408 = vector.broadcast %407 : vector<4x1xf32> to vector<4x256xf32>
    %409 = arith.mulf %406, %408 : vector<4x256xf32>
    %410 = vector.broadcast %14 : vector<4x1xf32> to vector<4x256xf32>
    %411 = arith.addf %409, %410 : vector<4x256xf32>
    %cst_138 = arith.constant 0.000000e+00 : f32
    %412 = vector.broadcast %cst_138 : f32 to vector<4x256xf32>
    %413 = arith.cmpf oge, %411, %412 : vector<4x256xf32>
    %cst_139 = arith.constant 0.00999999977 : f32
    %414 = vector.broadcast %cst_139 : f32 to vector<4x256xf32>
    %415 = arith.mulf %414, %411 : vector<4x256xf32>
    %416 = arith.select %413, %411, %415 : vector<4x256xi1>, vector<4x256xf32>
    %c17_i32_140 = arith.constant 17 : i32
    %417 = tpu.dynamic_rotate %416 by %c17_i32_140 dim 1 : vector<4x256xf32>, i32 -> vector<4x256xf32>
    %418 = vector.extract_strided_slice %1 {offsets = [0, 0], sizes = [1, 256], strides = [1, 1]} : vector<9x256xf32> to vector<1x256xf32>
    %419 = vector.broadcast %418 : vector<1x256xf32> to vector<4x256xf32>
    %420 = arith.mulf %417, %419 : vector<4x256xf32>
    %c16_i32_141 = arith.constant 16 : i32
    %421 = tpu.dynamic_rotate %416 by %c16_i32_141 dim 1 : vector<4x256xf32>, i32 -> vector<4x256xf32>
    %422 = vector.extract_strided_slice %1 {offsets = [1, 0], sizes = [1, 256], strides = [1, 1]} : vector<9x256xf32> to vector<1x256xf32>
    %423 = vector.broadcast %422 : vector<1x256xf32> to vector<4x256xf32>
    %424 = arith.mulf %421, %423 : vector<4x256xf32>
    %c15_i32_142 = arith.constant 15 : i32
    %425 = tpu.dynamic_rotate %416 by %c15_i32_142 dim 1 : vector<4x256xf32>, i32 -> vector<4x256xf32>
    %426 = vector.extract_strided_slice %1 {offsets = [2, 0], sizes = [1, 256], strides = [1, 1]} : vector<9x256xf32> to vector<1x256xf32>
    %427 = vector.broadcast %426 : vector<1x256xf32> to vector<4x256xf32>
    %428 = arith.mulf %425, %427 : vector<4x256xf32>
    %c1_i32_143 = arith.constant 1 : i32
    %429 = tpu.dynamic_rotate %416 by %c1_i32_143 dim 1 : vector<4x256xf32>, i32 -> vector<4x256xf32>
    %430 = vector.extract_strided_slice %1 {offsets = [3, 0], sizes = [1, 256], strides = [1, 1]} : vector<9x256xf32> to vector<1x256xf32>
    %431 = vector.broadcast %430 : vector<1x256xf32> to vector<4x256xf32>
    %432 = arith.mulf %429, %431 : vector<4x256xf32>
    %c255_i32_144 = arith.constant 255 : i32
    %433 = tpu.dynamic_rotate %416 by %c255_i32_144 dim 1 : vector<4x256xf32>, i32 -> vector<4x256xf32>
    %434 = vector.extract_strided_slice %1 {offsets = [5, 0], sizes = [1, 256], strides = [1, 1]} : vector<9x256xf32> to vector<1x256xf32>
    %435 = vector.broadcast %434 : vector<1x256xf32> to vector<4x256xf32>
    %436 = arith.mulf %433, %435 : vector<4x256xf32>
    %c241_i32_145 = arith.constant 241 : i32
    %437 = tpu.dynamic_rotate %416 by %c241_i32_145 dim 1 : vector<4x256xf32>, i32 -> vector<4x256xf32>
    %438 = vector.extract_strided_slice %1 {offsets = [6, 0], sizes = [1, 256], strides = [1, 1]} : vector<9x256xf32> to vector<1x256xf32>
    %439 = vector.broadcast %438 : vector<1x256xf32> to vector<4x256xf32>
    %440 = arith.mulf %437, %439 : vector<4x256xf32>
    %c240_i32_146 = arith.constant 240 : i32
    %441 = tpu.dynamic_rotate %416 by %c240_i32_146 dim 1 : vector<4x256xf32>, i32 -> vector<4x256xf32>
    %442 = vector.extract_strided_slice %1 {offsets = [7, 0], sizes = [1, 256], strides = [1, 1]} : vector<9x256xf32> to vector<1x256xf32>
    %443 = vector.broadcast %442 : vector<1x256xf32> to vector<4x256xf32>
    %444 = arith.mulf %441, %443 : vector<4x256xf32>
    %c239_i32_147 = arith.constant 239 : i32
    %445 = tpu.dynamic_rotate %416 by %c239_i32_147 dim 1 : vector<4x256xf32>, i32 -> vector<4x256xf32>
    %446 = vector.extract_strided_slice %1 {offsets = [8, 0], sizes = [1, 256], strides = [1, 1]} : vector<9x256xf32> to vector<1x256xf32>
    %447 = vector.broadcast %446 : vector<1x256xf32> to vector<4x256xf32>
    %448 = arith.mulf %445, %447 : vector<4x256xf32>
    %449 = tpu.concatenate %420, %424, %428, %432, %416, %436, %440, %444, %448 in 0 : vector<4x256xf32>, vector<4x256xf32>, vector<4x256xf32>, vector<4x256xf32>, vector<4x256xf32>, vector<4x256xf32>, vector<4x256xf32>, vector<4x256xf32>, vector<4x256xf32> -> vector<36x256xf32>
    %cst_148 = arith.constant dense<0.000000e+00> : vector<4x256xf32>
    %450 = tpu.matmul %15, %449, %cst_148 {dimension_numbers = #tpu.dot_dimension_numbers<[1], [0], [0], [1], [0, 0, 1, 1], [], []>} : vector<4x36xf32>, vector<36x256xf32>, vector<4x256xf32> -> vector<4x256xf32>
    %451 = vector.broadcast %16 : vector<4x1xf32> to vector<4x256xf32>
    %452 = arith.addf %450, %451 : vector<4x256xf32>
    %cst_149 = arith.constant dense<0.000000e+00> : vector<4xf32>
    %453 = vector.multi_reduction <add>, %452, %cst_149 [1] : vector<4x256xf32> to vector<4xf32>
    %454 = vector.shape_cast %453 : vector<4xf32> to vector<4x1xf32>
    %455 = arith.mulf %452, %452 : vector<4x256xf32>
    %cst_150 = arith.constant dense<0.000000e+00> : vector<4xf32>
    %456 = vector.multi_reduction <add>, %455, %cst_150 [1] : vector<4x256xf32> to vector<4xf32>
    %457 = vector.shape_cast %456 : vector<4xf32> to vector<4x1xf32>
    %458 = tpu.concatenate %454, %457 in 1 : vector<4x1xf32>, vector<4x1xf32> -> vector<4x2xf32>
    %cst_151 = arith.constant dense<0.000000e+00> : vector<4x2xf32>
    %459 = tpu.matmul %2, %458, %cst_151 {dimension_numbers = #tpu.dot_dimension_numbers<[1], [0], [0], [1], [0, 0, 1, 1], [], []>} : vector<4x4xf32>, vector<4x2xf32>, vector<4x2xf32> -> vector<4x2xf32>
    %cst_152 = arith.constant 9.765625E-4 : f32
    %460 = vector.broadcast %cst_152 : f32 to vector<4x2xf32>
    %461 = arith.mulf %459, %460 : vector<4x2xf32>
    %462 = vector.extract_strided_slice %461 {offsets = [0, 0], sizes = [4, 1], strides = [1, 1]} : vector<4x2xf32> to vector<4x1xf32>
    %463 = vector.extract_strided_slice %461 {offsets = [0, 1], sizes = [4, 1], strides = [1, 1]} : vector<4x2xf32> to vector<4x1xf32>
    %464 = arith.mulf %462, %462 : vector<4x1xf32>
    %465 = arith.subf %463, %464 : vector<4x1xf32>
    %cst_153 = arith.constant 9.99999974E-6 : f32
    %466 = vector.broadcast %cst_153 : f32 to vector<4x1xf32>
    %467 = arith.addf %465, %466 : vector<4x1xf32>
    %468 = math.rsqrt %467 : vector<4x1xf32>
    %469 = vector.broadcast %462 : vector<4x1xf32> to vector<4x256xf32>
    %470 = arith.subf %452, %469 : vector<4x256xf32>
    %471 = arith.mulf %468, %17 : vector<4x1xf32>
    %472 = vector.broadcast %471 : vector<4x1xf32> to vector<4x256xf32>
    %473 = arith.mulf %470, %472 : vector<4x256xf32>
    %474 = vector.broadcast %18 : vector<4x1xf32> to vector<4x256xf32>
    %475 = arith.addf %473, %474 : vector<4x256xf32>
    %cst_154 = arith.constant 0.000000e+00 : f32
    %476 = vector.broadcast %cst_154 : f32 to vector<4x256xf32>
    %477 = arith.cmpf oge, %475, %476 : vector<4x256xf32>
    %cst_155 = arith.constant 0.00999999977 : f32
    %478 = vector.broadcast %cst_155 : f32 to vector<4x256xf32>
    %479 = arith.mulf %478, %475 : vector<4x256xf32>
    %480 = arith.select %477, %475, %479 : vector<4x256xi1>, vector<4x256xf32>
    %481 = arith.addf %480, %352 : vector<4x256xf32>
    %c1_156 = arith.constant 1 : index
    %c0_157 = arith.constant 0 : index
    %c0_158 = arith.constant 0 : index
    %482 = vector.load %arg22[%c1_156, %c0_157, %c0_158] : memref<2x4x256xf32, #tpu.memory_space<vmem>>, vector<1x4x256xf32>
    %483 = vector.shape_cast %482 : vector<1x4x256xf32> to vector<4x256xf32>
    %484 = vector.shape_cast %481 : vector<4x256xf32> to vector<1x4x256xf32>
    tpu.vector_store %arg22[%c1_156, %c0_157, %c0_158], %484 {strides = array<i32>} : memref<2x4x256xf32, #tpu.memory_space<vmem>>, vector<1x4x256xf32>,
    return
  }
  func.func @transform_0(%arg0: i32) -> (i32, i32, i32) {
    %c0_i32 = arith.constant 0 : i32
    %c0_i32_0 = arith.constant 0 : i32
    %c0_i32_1 = arith.constant 0 : i32
    %c0_i32_2 = arith.constant 0 : i32
    return %c0_i32, %c0_i32_0, %c0_i32_1 : i32, i32, i32
  }
  func.func @transform_1(%arg0: i32) -> (i32, i32, i32) {
    %c0_i32 = arith.constant 0 : i32
    %c0_i32_0 = arith.constant 0 : i32
    %c0_i32_1 = arith.constant 0 : i32
    %c0_i32_2 = arith.constant 0 : i32
    return %c0_i32, %c0_i32_0, %c0_i32_1 : i32, i32, i32
  }
  func.func @transform_2(%arg0: i32) -> (i32, i32) {
    %c0_i32 = arith.constant 0 : i32
    %c0_i32_0 = arith.constant 0 : i32
    %c0_i32_1 = arith.constant 0 : i32
    return %c0_i32, %c0_i32_0 : i32, i32
  }
  func.func @transform_3(%arg0: i32) -> (i32, i32) {
    %c0_i32 = arith.constant 0 : i32
    %c0_i32_0 = arith.constant 0 : i32
    %c0_i32_1 = arith.constant 0 : i32
    return %c0_i32, %c0_i32_0 : i32, i32
  }
  func.func @transform_4(%arg0: i32) -> (i32, i32) {
    %c0_i32 = arith.constant 0 : i32
    %c0_i32_0 = arith.constant 0 : i32
    %c0_i32_1 = arith.constant 0 : i32
    return %c0_i32, %c0_i32_0 : i32, i32
  }
  func.func @transform_5(%arg0: i32) -> (i32, i32) {
    %c0_i32 = arith.constant 0 : i32
    %c0_i32_0 = arith.constant 0 : i32
    %c0_i32_1 = arith.constant 0 : i32
    return %c0_i32, %c0_i32_0 : i32, i32
  }
  func.func @transform_6(%arg0: i32) -> (i32, i32) {
    %c0_i32 = arith.constant 0 : i32
    %c0_i32_0 = arith.constant 0 : i32
    %c0_i32_1 = arith.constant 0 : i32
    return %c0_i32, %c0_i32_0 : i32, i32
  }
  func.func @transform_7(%arg0: i32) -> (i32, i32) {
    %c0_i32 = arith.constant 0 : i32
    %c0_i32_0 = arith.constant 0 : i32
    %c0_i32_1 = arith.constant 0 : i32
    return %c0_i32, %c0_i32_0 : i32, i32
  }
  func.func @transform_8(%arg0: i32) -> (i32, i32) {
    %c0_i32 = arith.constant 0 : i32
    %c0_i32_0 = arith.constant 0 : i32
    %c0_i32_1 = arith.constant 0 : i32
    return %c0_i32, %c0_i32_0 : i32, i32
  }
  func.func @transform_9(%arg0: i32) -> (i32, i32) {
    %c0_i32 = arith.constant 0 : i32
    %c0_i32_0 = arith.constant 0 : i32
    %c0_i32_1 = arith.constant 0 : i32
    return %c0_i32, %c0_i32_0 : i32, i32
  }
  func.func @transform_10(%arg0: i32) -> (i32, i32) {
    %c0_i32 = arith.constant 0 : i32
    %c0_i32_0 = arith.constant 0 : i32
    %c0_i32_1 = arith.constant 0 : i32
    return %c0_i32, %c0_i32_0 : i32, i32
  }
  func.func @transform_11(%arg0: i32) -> (i32, i32) {
    %c0_i32 = arith.constant 0 : i32
    %c0_i32_0 = arith.constant 0 : i32
    %c0_i32_1 = arith.constant 0 : i32
    return %c0_i32, %c0_i32_0 : i32, i32
  }
  func.func @transform_12(%arg0: i32) -> (i32, i32) {
    %c0_i32 = arith.constant 0 : i32
    %c0_i32_0 = arith.constant 0 : i32
    %c0_i32_1 = arith.constant 0 : i32
    return %c0_i32, %c0_i32_0 : i32, i32
  }
  func.func @transform_13(%arg0: i32) -> (i32, i32) {
    %c0_i32 = arith.constant 0 : i32
    %c0_i32_0 = arith.constant 0 : i32
    %c0_i32_1 = arith.constant 0 : i32
    return %c0_i32, %c0_i32_0 : i32, i32
  }
  func.func @transform_14(%arg0: i32) -> (i32, i32) {
    %c0_i32 = arith.constant 0 : i32
    %c0_i32_0 = arith.constant 0 : i32
    %c0_i32_1 = arith.constant 0 : i32
    return %c0_i32, %c0_i32_0 : i32, i32
  }
  func.func @transform_15(%arg0: i32) -> (i32, i32) {
    %c0_i32 = arith.constant 0 : i32
    %c0_i32_0 = arith.constant 0 : i32
    %c0_i32_1 = arith.constant 0 : i32
    return %c0_i32, %c0_i32_0 : i32, i32
  }
  func.func @transform_16(%arg0: i32) -> (i32, i32) {
    %c0_i32 = arith.constant 0 : i32
    %c0_i32_0 = arith.constant 0 : i32
    %c0_i32_1 = arith.constant 0 : i32
    return %c0_i32, %c0_i32_0 : i32, i32
  }
  func.func @transform_17(%arg0: i32) -> (i32, i32) {
    %c0_i32 = arith.constant 0 : i32
    %c0_i32_0 = arith.constant 0 : i32
    %c0_i32_1 = arith.constant 0 : i32
    return %c0_i32, %c0_i32_0 : i32, i32
  }
  func.func @transform_18(%arg0: i32) -> (i32, i32) {
    %c0_i32 = arith.constant 0 : i32
    %c0_i32_0 = arith.constant 0 : i32
    %c0_i32_1 = arith.constant 0 : i32
    return %c0_i32, %c0_i32_0 : i32, i32
  }
  func.func @transform_19(%arg0: i32) -> (i32, i32) {
    %c0_i32 = arith.constant 0 : i32
    %c0_i32_0 = arith.constant 0 : i32
    %c0_i32_1 = arith.constant 0 : i32
    return %c0_i32, %c0_i32_0 : i32, i32
  }
  func.func @transform_20(%arg0: i32) -> (i32, i32) {
    %c0_i32 = arith.constant 0 : i32
    %c0_i32_0 = arith.constant 0 : i32
    %c0_i32_1 = arith.constant 0 : i32
    return %c0_i32, %c0_i32_0 : i32, i32
  }
  func.func @transform_21(%arg0: i32) -> (i32, i32, i32) {
    %c0_i32 = arith.constant 0 : i32
    %c0_i32_0 = arith.constant 0 : i32
    %c0_i32_1 = arith.constant 0 : i32
    %c0_i32_2 = arith.constant 0 : i32
    return %c0_i32, %c0_i32_0, %c0_i32_1 : i32, i32, i32
  }
}

</mosaic_0001>

<bundles_post_ra>
// kernel: _lambda_.1
= control target key start
LH: loop header
LB: loop body
LE: loop exit
PB: predicated region body
PF: predicated region fallthrough
CT: control target
= control target key end

     0   :  { %s3465_s0 = inlined_call_operand.vmem [shape: f32[2,8,64], index: 0, kind: input, shape index: {}]   ;;  %s3466_s1 = inlined_call_operand.vmem [shape: f32[2,4,256], index: 1, kind: input, shape index: {}]   ;;  %s3467_s2 = inlined_call_operand.vmem [shape: f32[64,256], index: 2, kind: input, shape index: {}]   ;;  %s3468_s3 = inlined_call_operand.vmem [shape: f32[9,256], index: 3, kind: input, shape index: {}]   ;;  %s3469_s4 = inlined_call_operand.vmem [shape: f32[4,4], index: 4, kind: input, shape index: {}]   ;;  %s3470_s5 = inlined_call_operand.vmem [shape: f32[4,8], index: 5, kind: input, shape index: {}]   ;;  %s3471_s6 = inlined_call_operand.hbm [shape: f32[4,1], index: 6, kind: input, shape index: {}]   ;;  %s3472_s7 = inlined_call_operand.hbm [shape: f32[4,1], index: 7, kind: input, shape index: {}]   ;;  %s3473_s8 = inlined_call_operand.hbm [shape: f32[4,1], index: 8, kind: input, shape index: {}]   ;;  %s3474_s9 = inlined_call_operand.vmem [shape: f32[4,72], index: 9, kind: input, shape index: {}]   ;;  %s3475_s10 = inlined_call_operand.hbm [shape: f32[4,1], index: 10, kind: input, shape index: {}]   ;;  %s3476_s11 = inlined_call_operand.hbm [shape: f32[4,1], index: 11, kind: input, shape index: {}]   ;;  %s3477_s12 = inlined_call_operand.hbm [shape: f32[4,1], index: 12, kind: input, shape index: {}]   ;;  %s3478_s13 = inlined_call_operand.vmem [shape: f32[4,36], index: 13, kind: input, shape index: {}]   ;;  %s3479_s14 = inlined_call_operand.hbm [shape: f32[4,1], index: 14, kind: input, shape index: {}]   ;;  %s3480_s15 = inlined_call_operand.hbm [shape: f32[4,1], index: 15, kind: input, shape index: {}]   ;;  %s3481_s16 = inlined_call_operand.hbm [shape: f32[4,1], index: 16, kind: input, shape index: {}]   ;;  %s3482_s17 = inlined_call_operand.vmem [shape: f32[4,36], index: 17, kind: input, shape index: {}]   ;;  %s3483_s18 = inlined_call_operand.hbm [shape: f32[4,1], index: 18, kind: input, shape index: {}]   ;;  %s3484_s19 = inlined_call_operand.hbm [shape: f32[4,1], index: 19, kind: input, shape index: {}]   ;;  %s3485_s20 = inlined_call_operand.hbm [shape: f32[4,1], index: 20, kind: input, shape index: {}]   ;;  %s3486_s21 = inlined_call_operand.vmem [shape: f32[2,4,256], index: 21, kind: output, shape index: {}]  }
   0x1   :  { %3495 = sst [smem:[#allocation28_spill]] %s3465_s0 }
   0x2   :  { %3496 = sst [smem:[#allocation29_spill]] %s3466_s1 }
   0x3   :  { %3497 = sst [smem:[#allocation30_spill]] %s3467_s2 }
   0x4   :  { %3498 = sst [smem:[#allocation31_spill]] %s3468_s3 }
   0x5   :  { %3499 = sst [smem:[#allocation32_spill]] %s3469_s4 }
   0x6   :  { %3500 = sst [smem:[#allocation33_spill]] %s3470_s5 }
   0x7   :  { %26 = vsyncpa [#allocation3], 0 }
   0x8   :  { %27 = vsyncpa [#allocation5], 0 }
   0x9   :  { %28 = vsyncpa [#allocation8], 0 }
   0xa   :  { %29 = vsyncpa [#allocation11], 0 }
   0xb   :  { %30 = vsyncpa [#allocation14], 0 }
   0xc   :  { %31 = vsyncpa [#allocation17], 0  ;;  %s61_s26 = sshll.u32 %s3472_s7, 4  ;;  %s62_s26 = int_to_ptr.hbm [resolvable:$true] %s61_s26 }
   0xd   :  { %32 = vsyncpa [#allocation20], 0  ;;  %s2359_s27 = smov [#allocation4]   ;;  %s85_s0 = sshll.u32 %s3475_s10, 4  ;;  %s86_s0 = int_to_ptr.hbm [resolvable:$true] %s85_s0 }
   0xe   :  { %s63_s3 = sshll.u32 %s2359_s27, 4  ;;  %s2360_s4 = smov [#allocation7]   ;;  %s64_s3 = int_to_ptr.vmem [resolvable:$true] %s63_s3 }
   0xf   :  { %66 = dma.hbm_to_vmem [thread:$0]  %s62_s26, 64, %s64_s3, [#allocation5]  }
  0x10   :  { %s87_s30 = sshll.u32 %s2360_s4, 4  ;;  %s107_s23 = sshll.u32 %s3477_s12, 4  ;;  %s88_s30 = int_to_ptr.vmem [resolvable:$true] %s87_s30  ;;  %s108_s23 = int_to_ptr.hbm [resolvable:$true] %s107_s23 }
  0x11   :  { %90 = dma.hbm_to_vmem [thread:$0]  %s86_s0, 64, %s88_s30, [#allocation8]  }
  0x12   :  { %s131_s24 = sshll.u32 %s3480_s15, 4  ;;  %s2361_s2 = smov [#allocation10]   ;;  %s132_s24 = int_to_ptr.hbm [resolvable:$true] %s131_s24 }
  0x13   :  { %s109_s25 = sshll.u32 %s2361_s2, 4  ;;  %s2362_s10 = smov [#allocation13]   ;;  %s110_s25 = int_to_ptr.vmem [resolvable:$true] %s109_s25 }
  0x14   :  { %112 = dma.hbm_to_vmem [thread:$0]  %s108_s23, 64, %s110_s25, [#allocation11]  }
  0x15   :  { %s133_s26 = sshll.u32 %s2362_s10, 4  ;;  %s155_s28 = sshll.u32 %s3483_s18, 4  ;;  %s134_s26 = int_to_ptr.vmem [resolvable:$true] %s133_s26  ;;  %s156_s28 = int_to_ptr.hbm [resolvable:$true] %s155_s28 }
  0x16   :  { %136 = dma.hbm_to_vmem [thread:$0]  %s132_s24, 64, %s134_s26, [#allocation14]  }
  0x17   :  { %s50_s0 = sshll.u32 %s3471_s6, 4  ;;  %s2363_s4 = smov [#allocation16]   ;;  %s51_s0 = int_to_ptr.hbm [resolvable:$true] %s50_s0 }
  0x18   :  { %s157_s15 = sshll.u32 %s2363_s4, 4  ;;  %s2364_s30 = smov [#allocation2]   ;;  %s158_s15 = int_to_ptr.vmem [resolvable:$true] %s157_s15 }
  0x19   :  { %160 = dma.hbm_to_vmem [thread:$0]  %s156_s28, 64, %s158_s15, [#allocation17]  }
  0x1a   :  { %s52_s5 = sshll.u32 %s2364_s30, 4  ;;  %s72_s7 = sshll.u32 %s3473_s8, 4  ;;  %s53_s5 = int_to_ptr.vmem [resolvable:$true] %s52_s5  ;;  %s73_s7 = int_to_ptr.hbm [resolvable:$true] %s72_s7 }
  0x1b   :  { %55 = dma.hbm_to_vmem [thread:$0]  %s51_s0, 64, %s53_s5, [#allocation3]  }
  0x1c   :  { %s96_s24 = sshll.u32 %s3476_s11, 4  ;;  %s2365_s2 = smov [#allocation6]   ;;  %s97_s24 = int_to_ptr.hbm [resolvable:$true] %s96_s24 }
  0x1d   :  { %s74_s6 = sshll.u32 %s2365_s2, 4  ;;  %s2366_s25 = smov [#allocation9]   ;;  %s75_s6 = int_to_ptr.vmem [resolvable:$true] %s74_s6 }
  0x1e   :  { %77 = dma.hbm_to_vmem [thread:$0]  %s73_s7, 64, %s75_s6, [#allocation5]  }
  0x1f   :  { %s98_s10 = sshll.u32 %s2366_s25, 4  ;;  %s120_s3 = sshll.u32 %s3479_s14, 4  ;;  %s99_s10 = int_to_ptr.vmem [resolvable:$true] %s98_s10  ;;  %s121_s3 = int_to_ptr.hbm [resolvable:$true] %s120_s3 }
  0x20   :  { %101 = dma.hbm_to_vmem [thread:$0]  %s97_s24, 64, %s99_s10, [#allocation8]  }
  0x21   :  { %s142_s12 = sshll.u32 %s3481_s16, 4  ;;  %s2367_s29 = smov [#allocation12]   ;;  %s143_s12 = int_to_ptr.hbm [resolvable:$true] %s142_s12 }
  0x22   :  { %s122_s11 = sshll.u32 %s2367_s29, 4  ;;  %s2368_s0 = smov [#allocation15]   ;;  %s123_s11 = int_to_ptr.vmem [resolvable:$true] %s122_s11 }
  0x23   :  { %125 = dma.hbm_to_vmem [thread:$0]  %s121_s3, 64, %s123_s11, [#allocation11]  }
  0x24   :  { %s144_s4 = sshll.u32 %s2368_s0, 4  ;;  %s166_s5 = sshll.u32 %s3484_s19, 4  ;;  %s145_s4 = int_to_ptr.vmem [resolvable:$true] %s144_s4  ;;  %s167_s5 = int_to_ptr.hbm [resolvable:$true] %s166_s5 }
  0x25   :  { %147 = dma.hbm_to_vmem [thread:$0]  %s143_s12, 64, %s145_s4, [#allocation14]  }
  0x26   :  { %s177_s23 = sshll.u32 %s3485_s20, 4  ;;  %s2369_s7 = smov [#allocation18]   ;;  %s178_s23 = int_to_ptr.hbm [resolvable:$true] %s177_s23 }
  0x27   :  { %s168_s16 = sshll.u32 %s2369_s7, 4  ;;  %s2370_s18 = smov [#allocation19]   ;;  %s169_s16 = int_to_ptr.vmem [resolvable:$true] %s168_s16 }
  0x28   :  { %171 = dma.hbm_to_vmem [thread:$0]  %s167_s5, 64, %s169_s16, [#allocation17]  }
  0x29   :  { %s179_s1 = sshll.u32 %s2370_s18, 4  ;;  %s180_s1 = int_to_ptr.vmem [resolvable:$true] %s179_s1 }
  0x2a   :  { %182 = dma.hbm_to_vmem [thread:$0]  %s178_s23, 64, %s180_s1, [#allocation20]  }
  0x2b   :  { %2345 = dma.done.wait [#allocation3], 64  }
  0x2c   :  { %2346 = vsyncadd [#allocation3], 4294967232 }
  0x2d   :  { %2347 = dma.done.wait [#allocation5], 128  }
  0x2e   :  { %2348 = vsyncadd [#allocation5], 4294967168 }
  0x2f   :  { %2349 = dma.done.wait [#allocation8], 128  }
  0x30   :  { %2350 = vsyncadd [#allocation8], 4294967168 }
  0x31   :  { %2351 = dma.done.wait [#allocation11], 128  }
  0x32   :  { %2352 = vsyncadd [#allocation11], 4294967168 }
  0x33   :  { %2353 = dma.done.wait [#allocation14], 128  }
  0x34   :  { %2354 = vsyncadd [#allocation14], 4294967168 }
  0x35   :  { %2355 = dma.done.wait [#allocation17], 128  }
  0x36   :  { %2356 = vsyncadd [#allocation17], 4294967168 }
  0x37   :  { %2357 = dma.done.wait [#allocation20], 64  }
  0x38   :  { %2358 = vsyncadd [#allocation20], 4294967232  ;;  %vm269_vm0 = vcmask 64512   ;;  %s3501_s24 = sld [smem:[#allocation28_spill]]  ;;  %v253_v18 = vld [vmem:[#allocation2] sm:$0xf] }
  0x39   :  { %s3502_s25 = sld [smem:[#allocation33_spill]]  ;;  %v2371_v19 = vmov 0   ;;  %vm3493_vm1 = vcmask 523264   ;;  %vm342_vm2 = vcmask 1043456   ;;  %v254_v34 = vld [vmem:[#allocation4] sm:$0xf] }
  0x3a   :  { %s3503_s27 = sld [smem:[#allocation30_spill]]  ;;  %2009 = vset.pattern.permute.xlu0 %v2371_v19  ;;  %2010 = vset.pattern.permute.xlu2 %v2371_v19  ;;  %s2372_s11 = smov 1   ;;  %vm355_vm3 = vcmask 7168   ;;  %vm3494_vm4 = vcmask 31744   ;;  %v2373_v42 = vmov 1  }
  0x3b   :  { %295 = vperm.xlu0 %2009, %v253_v18   ;;  %2013 = vset.pattern.permute.xlu1 %v2371_v19  ;;  %s3504_s15 = sld [smem:[#allocation32_spill]]  ;;  %v255_v55 = vld [vmem:[#allocation6] sm:$0xf]  ;;  %s2374_s7 = smov 111  }
  0x3c   :  { %410 = vrot.lane.b32.xlu2 %v254_v34, %s2372_s11  ;;  %s3505_s14 = sld [smem:[#allocation29_spill]]  ;;  %s2375_s16 = smov 127  }
  0x3d   :  { %s2376_s18 = smov 112   ;;  %s2377_s1 = smov 15  }
  0x3e   :  { %v268_v0 = vld [vmem:[%s3501_s24] sm:$0xff]  ;;  %s2378_s19 = smov 113   ;;  %s2379_s20 = smov 17  }
  0x3f   :  { %v2533_v1 = vld [vmem:[%s3502_s25] sm:$0xf]  ;;  %288 = vmatpush.msra.mxu1 %v268_v0  ;;  %s2380_s2 = smov 16   ;;  %s3506_s10 = sld [smem:[#allocation31_spill]] }
  0x40   :  { %v245_v2 = vld [vmem:[%s3503_s27 + $0x70] sm:$0xff]  ;;  %v246_v3 = vld [vmem:[%s3503_s27 + $0x78] sm:$0xff]  ;;  %v244_v4 = vld [vmem:[%s3503_s27 + $0x68] sm:$0xff]  ;;  %1942 = vmatmul.msk.f32.vlgmr.msra.gmra.mxu1 %vm269_vm0, %v2533_v1 }
  0x41   :  { %330 = vmatpush.msra.mxu2 %v246_v3  ;;  %v243_v5 = vld [vmem:[%s3503_s27 + $0x60] sm:$0xff]  ;;  %310 = vmatpush.msrb.mxu1 %v245_v2  ;;  %v242_v6 = vld [vmem:[%s3503_s27 + $0x58] sm:$0xff]  ;;  %v241_v7 = vld [vmem:[%s3503_s27 + $0x50] sm:$0xff] }
  0x42   :  { %v240_v8 = vld [vmem:[%s3503_s27 + $0x48] sm:$0xff]  ;;  %v239_v9 = vld [vmem:[%s3503_s27 + $0x40] sm:$0xff]  ;;  %v238_v10 = vld [vmem:[%s3503_s27 + $0x38] sm:$0xff] }
  0x43   :  { %331 = vmatpush.msra.mxu2 %v244_v4  ;;  %311 = vmatpush.msrb.mxu1 %v243_v5  ;;  %v237_v11 = vld [vmem:[%s3503_s27 + $0x30] sm:$0xff]  ;;  %v236_v12 = vld [vmem:[%s3503_s27 + $0x28] sm:$0xff]  ;;  %v235_v13 = vld [vmem:[%s3503_s27 + $0x20] sm:$0xff] }
  0x44   :  { %v234_v14 = vld [vmem:[%s3503_s27 + $0x18] sm:$0xff]  ;;  %v233_v15 = vld [vmem:[%s3503_s27 + $0x10] sm:$0xff]  ;;  %v231_v16 = vld [vmem:[%s3503_s27] sm:$0xff] }
  0x45   :  { %332 = vmatpush.msra.mxu2 %v242_v6  ;;  %312 = vmatpush.msrb.mxu1 %v241_v7  ;;  %v232_v17 = vld [vmem:[%s3503_s27 + $0x8] sm:$0xff]  ;;  %v2607_v37 = vld [vmem:[%s3504_s15] sm:$0xf]  ;;  %v2679_v18 = vld [vmem:[%s3506_s10 + $0x18] ss:$0 sm:$0xff] }
  0x46   :  { %v434_v56 = vld [vmem:[%s3505_s14] sm:$0xff]  ;;  %v1969_v57 = vld [vmem:[%s3505_s14 + $0x8] sm:$0xff] }
  0x47   :  { %333 = vmatpush.msra.mxu2 %v240_v8  ;;  %313 = vmatpush.msrb.mxu1 %v239_v9  ;;  %437 = vst [vmem:[#allocation1 + $0x1] ss:$2 sm:$0xff] %v434_v56 }
  0x49   :  { %334 = vmatpush.msra.mxu2 %v238_v10  ;;  %314 = vmatpush.msrb.mxu1 %v237_v11 }
  0x4b   :  { %335 = vmatpush.msra.mxu2 %v236_v12  ;;  %315 = vmatpush.msrb.mxu1 %v235_v13 }
  0x4d   :  { %336 = vmatpush.msra.mxu2 %v234_v14  ;;  %316 = vmatpush.msrb.mxu1 %v233_v15  ;;  %v448_v14 = vlaneseq }
  0x4e   :  { %v438_v58 = vld.sshfl [vmem:[#allocation1] sm:$0xff pattern:$0x75316420]  ;;  %v439_v59 = vld.sshfl [vmem:[#allocation1 + $0x8] sm:$0xff pattern:$0x75316420] }
  0x4f   :  { %317 = vmatpush.msrb.mxu1 %v231_v16  ;;  %337 = vmatpush.msra.mxu2 %v232_v17  ;;  %1296 = vst [vmem:[#allocation1 + $0x1] ss:$2 sm:$0xff] %v1969_v57  ;;  %v2668_v15 = vand.u32 127, %v448_v14  ;;  %v2674_v17 = vld [vmem:[%s3506_s10 + $0x10] ss:$0 sm:$0xff] }
  0x51   :  { %vm527_vm10 = vcmp.lt.s32.totalorder %v2668_v15, 111  ;;  %vm516_vm11 = vcmp.lt.s32.totalorder %v2668_v15, 112  ;;  %vm494_vm12 = vcmp.lt.s32.totalorder %v2668_v15, 127  ;;  %vm505_vm13 = vcmp.lt.s32.totalorder %v2668_v15, 113 }
  0x52   :  { %vm483_vm14 = vcmp.lt.s32.totalorder %v2668_v15, 1  ;;  %vm472_vm15 = vcmp.lt.s32.totalorder %v2668_v15, 15 }
  0x96   :  { %v2615_v52 = vpop.permute.xlu2 %410 }
  0xad   :  { %v2590_v21 = vpop.permute.xlu0 %295 }
  0xbd   :  { %v290_v20 = vpop.f32.mrf.mxu1 }
  0xbe   :  { %1943 = vmatmul.msk.f32.vlgmr.msrb.gmra.mxu1 %vm3493_vm1, %v290_v20  ;;  %1944 = vmatmul.msk.f32.vlgmr.msra.gmra.mxu2 %vm3493_vm1, %v290_v20 }
 0x13b   :  { %v319_v22 = vpop.f32.mrf.mxu1 }
 0x13c   :  { %v2593_v23 = vadd.f32 %v319_v22, %v2590_v21 }
 0x13e   :  { %v348_v26 = vmul.f32 %v2593_v23, %v2593_v23  ;;  %v343_v27 = vsel %vm342_vm2, %v2593_v23, 0.0 }
 0x140   :  { %v350_v31 = vsel %vm342_vm2, %v348_v26, 0.0  ;;  %v2690_v26 = vld [vmem:[%s3506_s10] sm:$0xff] }
 0x141   :  { %v339_v24 = vpop.f32.mrf.mxu2  ;;  %v2773_v14 = vperm.slane %v2690_v26, 0 }
 0x142   :  { %v340_v25 = vadd.f32 %v339_v24, %v2590_v21 }
 0x144   :  { %v344_v28 = vsel %vm342_vm2, %v340_v25, 0.0  ;;  %v349_v29 = vmul.f32 %v340_v25, %v340_v25 }
 0x145   :  { %v345_v30 = vadd.f32 %v344_v28, %v343_v27  ;;  %v2695_v27 = vld [vmem:[%s3506_s10 + $0x8] sm:$0xff]  ;;  %v2699_v28 = vperm.slane %v2690_v26, 7 }
 0x146   :  { %v351_v32 = vsel %vm342_vm2, %v349_v29, 0.0  ;;  %v2702_v29 = vperm.slane %v2695_v27, 7  ;;  %v2741_v56 = vperm.slane %v2695_v27, 3 }
 0x147   :  { %346 = vadd.xlane.f32.xlu0 %v345_v30  ;;  %v352_v33 = vadd.f32 %v351_v32, %v350_v31 }
 0x149   :  { %353 = vadd.xlane.f32.xlu1 %v352_v33 }
 0x1ba   :  { %v347_v35 = vpop.xlane.xlu0 %346 }
 0x1bc   :  { %v354_v36 = vpop.xlane.xlu1 %353 }
 0x1bd   :  { %v356_v38 = vsel %vm355_vm3, %v347_v35, %v354_v36 }
 0x1be   :  { %1945 = vmatpush.msk.msra.mxu3 %vm342_vm2, %v356_v38  ;;  %v2713_v38 = vperm.slane %v2690_v26, 6 }
 0x1bf   :  { %1946 = vmatmul.msk.f32.vlgmr.msra.gmra.mxu3 %vm3494_vm4, %v2607_v37 }
 0x242   :  { %v381_v39 = vpop.f32.mrf.mxu3 }
 0x243   :  { %v384_v40 = vmul.f32 0.0009765625, %v381_v39  ;;  %v2716_v39 = vperm.slane %v2695_v27, 6 }
 0x245   :  { %404 = vperm.xlu2 %2010, %v384_v40   ;;  %v385_v41 = vmul.f32 %v384_v40, %v384_v40 }
 0x247   :  { %387 = vrot.lane.b32.xlu1 %v385_v41, %s2372_s11 }
 0x24d   :  { %2011 = vset.pattern.permute.xlu2 %v2373_v42 }
 0x29f   :  { %v405_v60 = vpop.permute.xlu2 %404 }
 0x2a0   :  { %v407_v62 = vsub.f32 %v2593_v23, %v405_v60  ;;  %v408_v63 = vsub.f32 %v340_v25, %v405_v60 }
 0x2b9   :  { %v388_v43 = vpop.permute.xlu1 %387 }
 0x2ba   :  { %v390_v44 = vsub.f32 %v384_v40, %v388_v43  ;;  %v257_v40 = vld [vmem:[#allocation7] sm:$0xf]  ;;  %v2719_v43 = vperm.slane %v2690_v26, 5 }
 0x2bc   :  { %v391_v45 = vadd.f32 1e-05, %v390_v44  ;;  %v2722_v44 = vperm.slane %v2695_v27, 5 }
 0x2be   :  { %2022 = vrsqrt.f32 %v391_v45  ;;  %vm398_vm6 = vweird.f32 %v391_v45 }
 0x2c4   :  { %v2023_v46 = vpop.eup %2022 }
 0x2c5   :  { %v393_v47 = vmul.f32 %v2023_v46, %v391_v45  ;;  %vm399_vm5 = vweird.f32 %v2023_v46 }
 0x2c6   :  { %vm400_vm7 = vmor %vm398_vm6, %vm399_vm5  ;;  %vm450_vm5 = vcmp.lt.s32.totalorder %v2668_v15, 17  ;;  %vm461_vm6 = vcmp.lt.s32.totalorder %v2668_v15, 16 }
 0x2c7   :  { %v394_v48 = vmul.f32 %v2023_v46, %v393_v47 }
 0x2c9   :  { %v395_v49 = vmul.f32 0.5, %v394_v48 }
 0x2cb   :  { %v396_v50 = vsub.f32 1.5, %v395_v49 }
 0x2cd   :  { %v397_v51 = vmul.f32 %v2023_v46, %v396_v50 }
 0x2cf   :  { %v401_v53 = vsel %vm400_vm7, %v2023_v46, %v397_v51  ;;  %vm3492_vm7 = vcmask 588800  }
 0x2d0   :  { %v413_v54 = vmul.f32 %v2615_v52, %v401_v53 }
 0x2d2   :  { %416 = vperm.xlu2 %2011, %v413_v54  }
 0x2da   :  { %2012 = vset.pattern.permute.xlu2 %v2371_v19 }
 0x2db   :  { %423 = vperm.xlu2 %2012, %v255_v55   ;;  %v2738_v55 = vperm.slane %v2690_v26, 3 }
 0x32c   :  { %v417_v61 = vpop.permute.xlu2 %416 }
 0x32d   :  { %v419_v0 = vmul.f32 %v417_v61, %v407_v62  ;;  %v420_v2 = vmul.f32 %v417_v61, %v408_v63 }
 0x335   :  { %v2626_v3 = vpop.permute.xlu2 %423 }
 0x336   :  { %v426_v4 = vadd.f32 %v2626_v3, %v419_v0  ;;  %v427_v5 = vadd.f32 %v2626_v3, %v420_v2  ;;  %v2753_v0 = vperm.slane %v2690_v26, 2  ;;  %v2756_v2 = vperm.slane %v2695_v27, 2 }
 0x338   :  { %vm428_vm8 = vcmp.ge.f32.partialorder %v426_v4, 0.0  ;;  %vm429_vm9 = vcmp.ge.f32.partialorder %v427_v5, 0.0  ;;  %v430_v6 = vmul.f32 0.01, %v426_v4  ;;  %v431_v7 = vmul.f32 0.01, %v427_v5 }
 0x33a   :  { %v432_v8 = vsel %vm428_vm8, %v426_v4, %v430_v6  ;;  %v433_v9 = vsel %vm429_vm9, %v427_v5, %v431_v7 }
 0x33b   :  { %v2631_v10 = vsel %vm342_vm2, %v432_v8, %v438_v58  ;;  %v2634_v11 = vsel %vm342_vm2, %v433_v9, %v439_v59 }
 0x33c   :  { %525 = vrot.lane.b32.xlu1 %v2634_v11, %s2374_s7  ;;  %490 = vrot.lane.b32.xlu0 %v2631_v10, %s2375_s16 }
 0x33d   :  { %523 = vrot.lane.b32.xlu2 %v2631_v10, %s2374_s7 }
 0x344   :  { %514 = vrot.lane.b32.xlu1 %v2634_v11, %s2376_s18  ;;  %470 = vrot.lane.b32.xlu0 %v2634_v11, %s2377_s1 }
 0x345   :  { %512 = vrot.lane.b32.xlu2 %v2631_v10, %s2376_s18 }
 0x34c   :  { %503 = vrot.lane.b32.xlu1 %v2634_v11, %s2378_s19  ;;  %444 = vrot.lane.b32.xlu0 %v2631_v10, %s2379_s20 }
 0x34d   :  { %501 = vrot.lane.b32.xlu2 %v2631_v10, %s2378_s19 }
 0x354   :  { %479 = vrot.lane.b32.xlu1 %v2631_v10, %s2372_s11 }
 0x355   :  { %492 = vrot.lane.b32.xlu2 %v2634_v11, %s2375_s16 }
 0x35c   :  { %468 = vrot.lane.b32.xlu1 %v2631_v10, %s2377_s1 }
 0x35d   :  { %481 = vrot.lane.b32.xlu2 %v2634_v11, %s2372_s11 }
 0x364   :  { %459 = vrot.lane.b32.xlu1 %v2634_v11, %s2380_s2 }
 0x365   :  { %457 = vrot.lane.b32.xlu2 %v2631_v10, %s2380_s2 }
 0x36c   :  { %536 = vperm.xlu1 %2013, %v257_v40  }
 0x36d   :  { %446 = vrot.lane.b32.xlu2 %v2634_v11, %s2379_s20 }
 0x397   :  { %v524_v12 = vpop.permute.xlu2 %523 }
 0x39f   :  { %v513_v13 = vpop.permute.xlu2 %512 }
 0x3a7   :  { %v502_v16 = vpop.permute.xlu2 %501 }
 0x3ae   :  { %v526_v20 = vpop.permute.xlu1 %525  ;;  %v491_v36 = vpop.permute.xlu0 %490 }
 0x3af   :  { %v529_v22 = vsel %vm527_vm10, %v526_v20, %v524_v12  ;;  %v528_v23 = vsel %vm527_vm10, %v524_v12, %v526_v20  ;;  %v493_v30 = vpop.permute.xlu2 %492 }
 0x3b0   :  { %v532_v24 = vmul.f32 %v2674_v17, %v528_v23  ;;  %v533_v25 = vmul.f32 %v2679_v18, %v529_v22  ;;  %v495_v45 = vsel %vm494_vm12, %v491_v36, %v493_v30  ;;  %v496_v46 = vsel %vm494_vm12, %v493_v30, %v491_v36 }
 0x3b1   :  { %v499_v53 = vmul.f32 %v2719_v43, %v495_v45  ;;  %v500_v54 = vmul.f32 %v2722_v44, %v496_v46 }
 0x3b2   :  { %550 = vmatpush.msra.mxu0 %v532_v24  ;;  %570 = vmatpush.msrb.mxu3 %v533_v25 }
 0x3b6   :  { %v515_v31 = vpop.permute.xlu1 %514  ;;  %v471_v63 = vpop.permute.xlu0 %470 }
 0x3b7   :  { %v517_v32 = vsel %vm516_vm11, %v513_v13, %v515_v31  ;;  %v518_v33 = vsel %vm516_vm11, %v515_v31, %v513_v13  ;;  %v482_v49 = vpop.permute.xlu2 %481  ;;  %v2793_v31 = vld [vmem:[%s3474_s9] sm:$0xf] }
 0x3b8   :  { %v521_v34 = vmul.f32 %v2699_v28, %v517_v32  ;;  %v522_v35 = vmul.f32 %v2702_v29, %v518_v33 }
 0x3ba   :  { %551 = vmatpush.msra.mxu0 %v521_v34  ;;  %571 = vmatpush.msrb.mxu3 %v522_v35 }
 0x3be   :  { %v504_v41 = vpop.permute.xlu1 %503  ;;  %v445_v12 = vpop.permute.xlu0 %444 }
 0x3bf   :  { %v506_v47 = vsel %vm505_vm13, %v502_v16, %v504_v41  ;;  %v507_v48 = vsel %vm505_vm13, %v504_v41, %v502_v16  ;;  %v458_v62 = vpop.permute.xlu2 %457  ;;  %v2776_v16 = vperm.slane %v2695_v27, 0 }
 0x3c0   :  { %v510_v50 = vmul.f32 %v2713_v38, %v506_v47  ;;  %v511_v51 = vmul.f32 %v2716_v39, %v507_v48 }
 0x3c2   :  { %552 = vmatpush.msra.mxu0 %v510_v50  ;;  %572 = vmatpush.msrb.mxu3 %v511_v51 }
 0x3c4   :  { %553 = vmatpush.msra.mxu0 %v499_v53  ;;  %573 = vmatpush.msrb.mxu3 %v500_v54 }
 0x3c6   :  { %v480_v57 = vpop.permute.xlu1 %479  ;;  %554 = vmatpush.msra.mxu0 %v2631_v10  ;;  %574 = vmatpush.msrb.mxu3 %v2634_v11  ;;  %v2767_v10 = vperm.slane %v2690_v26, 1  ;;  %v2770_v11 = vperm.slane %v2695_v27, 1 }
 0x3c7   :  { %v484_v58 = vsel %vm483_vm14, %v480_v57, %v482_v49  ;;  %v485_v59 = vsel %vm483_vm14, %v482_v49, %v480_v57  ;;  %v447_v9 = vpop.permute.xlu2 %446 }
 0x3c8   :  { %v488_v60 = vmul.f32 %v2738_v55, %v485_v59  ;;  %v489_v61 = vmul.f32 %v2741_v56, %v484_v58  ;;  %v451_v20 = vsel %vm450_vm5, %v445_v12, %v447_v9  ;;  %v452_v22 = vsel %vm450_vm5, %v447_v9, %v445_v12 }
 0x3c9   :  { %v455_v27 = vmul.f32 %v2773_v14, %v452_v22  ;;  %v456_v30 = vmul.f32 %v2776_v16, %v451_v20 }
 0x3ca   :  { %555 = vmatpush.msra.mxu0 %v488_v60  ;;  %575 = vmatpush.msrb.mxu3 %v489_v61  ;;  %v258_v60 = vld [vmem:[#allocation9] sm:$0xf]  ;;  %v259_v61 = vld [vmem:[#allocation10] sm:$0xf] }
 0x3ce   :  { %v469_v4 = vpop.permute.xlu1 %468 }
 0x3cf   :  { %v473_v5 = vsel %vm472_vm15, %v469_v4, %v471_v63  ;;  %v474_v6 = vsel %vm472_vm15, %v471_v63, %v469_v4 }
 0x3d0   :  { %v477_v7 = vmul.f32 %v2753_v0, %v474_v6  ;;  %v478_v8 = vmul.f32 %v2756_v2, %v473_v5 }
 0x3d2   :  { %556 = vmatpush.msra.mxu0 %v477_v7  ;;  %576 = vmatpush.msrb.mxu3 %v478_v8 }
 0x3d6   :  { %v460_v13 = vpop.permute.xlu1 %459 }
 0x3d7   :  { %v462_v23 = vsel %vm461_vm6, %v458_v62, %v460_v13  ;;  %v463_v24 = vsel %vm461_vm6, %v460_v13, %v458_v62 }
 0x3d8   :  { %v466_v25 = vmul.f32 %v2767_v10, %v463_v24  ;;  %v467_v26 = vmul.f32 %v2770_v11, %v462_v23 }
 0x3da   :  { %557 = vmatpush.msra.mxu0 %v466_v25  ;;  %577 = vmatpush.msrb.mxu3 %v467_v26 }
 0x3dc   :  { %558 = vmatpush.msra.mxu0 %v455_v27  ;;  %578 = vmatpush.msrb.mxu3 %v456_v30 }
 0x3dd   :  { %1948 = vmatmul.msk.f32.vlgmr.msrb.gmra.mxu3 %vm3492_vm7, %v2793_v31  ;;  %1947 = vmatmul.msk.f32.vlgmr.msra.gmra.mxu0 %vm3492_vm7, %v2793_v31 }
 0x3de   :  { %v2799_v32 = vpop.permute.xlu1 %536 }
 0x45a   :  { %v560_v33 = vpop.f32.mrf.mxu0 }
 0x45b   :  { %v561_v34 = vadd.f32 %v560_v33, %v2799_v32 }
 0x45d   :  { %v588_v35 = vmul.f32 %v561_v34, %v561_v34  ;;  %v583_v41 = vsel %vm342_vm2, %v561_v34, 0.0 }
 0x45f   :  { %v590_v47 = vsel %vm342_vm2, %v588_v35, 0.0 }
 0x460   :  { %v580_v36 = vpop.f32.mrf.mxu3 }
 0x461   :  { %v581_v40 = vadd.f32 %v580_v36, %v2799_v32 }
 0x463   :  { %v584_v45 = vsel %vm342_vm2, %v581_v40, 0.0  ;;  %v589_v46 = vmul.f32 %v581_v40, %v581_v40 }
 0x464   :  { %v585_v48 = vadd.f32 %v584_v45, %v583_v41 }
 0x465   :  { %v591_v49 = vsel %vm342_vm2, %v589_v46, 0.0 }
 0x466   :  { %586 = vadd.xlane.f32.xlu0 %v585_v48  ;;  %v592_v50 = vadd.f32 %v591_v49, %v590_v47 }
 0x468   :  { %593 = vadd.xlane.f32.xlu2 %v592_v50 }
 0x4d9   :  { %v587_v51 = vpop.xlane.xlu0 %586 }
 0x4db   :  { %v594_v53 = vpop.xlane.xlu2 %593 }
 0x4dc   :  { %v595_v54 = vsel %vm355_vm3, %v587_v51, %v594_v53 }
 0x4dd   :  { %1949 = vmatpush.msk.msra.mxu1 %vm342_vm2, %v595_v54 }
 0x4de   :  { %1950 = vmatmul.msk.f32.vlgmr.msra.gmra.mxu1 %vm3494_vm4, %v2607_v37 }
 0x55b   :  { %v616_v57 = vpop.f32.mrf.mxu1 }
 0x55c   :  { %v619_v58 = vmul.f32 0.0009765625, %v616_v57 }
 0x55e   :  { %v620_v59 = vmul.f32 %v619_v58, %v619_v58 }
 0x560   :  { %622 = vrot.lane.b32.xlu1 %v620_v59, %s2372_s11 }
 0x568   :  { %645 = vrot.lane.b32.xlu1 %v258_v60, %s2372_s11 }
 0x570   :  { %639 = vperm.xlu1 %2013, %v619_v58  }
 0x578   :  { %658 = vperm.xlu1 %2013, %v259_v61  }
 0x580   :  { %2014 = vset.pattern.permute.xlu1 %v2373_v42 }
 0x5d2   :  { %v623_v62 = vpop.permute.xlu1 %622 }
 0x5d3   :  { %v625_v63 = vsub.f32 %v619_v58, %v623_v62 }
 0x5d5   :  { %v626_v4 = vadd.f32 1e-05, %v625_v63 }
 0x5d7   :  { %2024 = vrsqrt.f32 %v626_v4  ;;  %vm633_vm9 = vweird.f32 %v626_v4 }
 0x5da   :  { %v2814_v20 = vpop.permute.xlu1 %645 }
 0x5dd   :  { %v2025_v5 = vpop.eup %2024 }
 0x5de   :  { %v628_v6 = vmul.f32 %v2025_v5, %v626_v4  ;;  %vm634_vm8 = vweird.f32 %v2025_v5 }
 0x5df   :  { %vm635_vm7 = vmor %vm633_vm9, %vm634_vm8 }
 0x5e0   :  { %v629_v7 = vmul.f32 %v2025_v5, %v628_v6 }
 0x5e2   :  { %v630_v8 = vmul.f32 0.5, %v629_v7  ;;  %v640_v23 = vpop.permute.xlu1 %639 }
 0x5e3   :  { %v642_v25 = vsub.f32 %v561_v34, %v640_v23  ;;  %v643_v26 = vsub.f32 %v581_v40, %v640_v23  ;;  %v261_v34 = vld [vmem:[#allocation12] sm:$0xf] }
 0x5e4   :  { %v631_v9 = vsub.f32 1.5, %v630_v8 }
 0x5e6   :  { %v632_v12 = vmul.f32 %v2025_v5, %v631_v9 }
 0x5e8   :  { %v636_v13 = vsel %vm635_vm7, %v2025_v5, %v632_v12 }
 0x5e9   :  { %v648_v22 = vmul.f32 %v2814_v20, %v636_v13 }
 0x5ea   :  { %v2817_v24 = vpop.permute.xlu1 %658 }
 0x5eb   :  { %651 = vperm.xlu1 %2014, %v648_v22  }
 0x65d   :  { %v652_v27 = vpop.permute.xlu1 %651 }
 0x65e   :  { %v654_v30 = vmul.f32 %v652_v27, %v642_v25  ;;  %v655_v33 = vmul.f32 %v652_v27, %v643_v26 }
 0x660   :  { %v661_v35 = vadd.f32 %v2817_v24, %v654_v30  ;;  %v662_v36 = vadd.f32 %v2817_v24, %v655_v33 }
 0x662   :  { %vm663_vm1 = vcmp.ge.f32.partialorder %v661_v35, 0.0  ;;  %vm664_vm8 = vcmp.ge.f32.partialorder %v662_v36, 0.0  ;;  %v665_v41 = vmul.f32 0.01, %v661_v35  ;;  %v666_v45 = vmul.f32 0.01, %v662_v36 }
 0x664   :  { %v2821_v46 = vsel %vm663_vm1, %v661_v35, %v665_v41  ;;  %v2823_v47 = vsel %vm664_vm8, %v662_v36, %v666_v45  ;;  %vm770_vm1 = vcmask 293888  }
 0x665   :  { %719 = vrot.lane.b32.xlu1 %v2823_v47, %s2376_s18  ;;  %725 = vrot.lane.b32.xlu2 %v2821_v46, %s2374_s7 }
 0x666   :  { %717 = vrot.lane.b32.xlu0 %v2821_v46, %s2376_s18 }
 0x66d   :  { %727 = vrot.lane.b32.xlu1 %v2823_v47, %s2374_s7  ;;  %711 = vrot.lane.b32.xlu2 %v2823_v47, %s2378_s19 }
 0x66e   :  { %703 = vrot.lane.b32.xlu0 %v2823_v47, %s2375_s16 }
 0x675   :  { %701 = vrot.lane.b32.xlu1 %v2821_v46, %s2375_s16  ;;  %677 = vrot.lane.b32.xlu2 %v2821_v46, %s2380_s2 }
 0x676   :  { %693 = vrot.lane.b32.xlu0 %v2821_v46, %s2372_s11 }
 0x67d   :  { %709 = vrot.lane.b32.xlu1 %v2821_v46, %s2378_s19  ;;  %687 = vrot.lane.b32.xlu2 %v2823_v47, %s2377_s1 }
 0x67e   :  { %679 = vrot.lane.b32.xlu0 %v2823_v47, %s2380_s2 }
 0x685   :  { %695 = vrot.lane.b32.xlu1 %v2823_v47, %s2372_s11  ;;  %767 = vperm.xlu2 %2012, %v261_v34  }
 0x686   :  { %669 = vrot.lane.b32.xlu0 %v2821_v46, %s2379_s20 }
 0x68d   :  { %685 = vrot.lane.b32.xlu1 %v2821_v46, %s2377_s1 }
 0x695   :  { %671 = vrot.lane.b32.xlu1 %v2823_v47, %s2379_s20 }
 0x6bf   :  { %v726_v48 = vpop.permute.xlu2 %725 }
 0x6c7   :  { %v712_v4 = vpop.permute.xlu2 %711 }
 0x6cf   :  { %v678_v41 = vpop.permute.xlu2 %677 }
 0x6d7   :  { %v720_v40 = vpop.permute.xlu1 %719 }
 0x6d8   :  { %v718_v49 = vpop.permute.xlu0 %717 }
 0x6d9   :  { %v721_v59 = vsel %vm516_vm11, %v718_v49, %v720_v40  ;;  %v722_v60 = vsel %vm516_vm11, %v720_v40, %v718_v49 }
 0x6da   :  { %v723_v5 = vmul.f32 %v721_v59, %v2699_v28  ;;  %v724_v6 = vmul.f32 %v722_v60, %v2702_v29 }
 0x6dc   :  { %v753_v12 = vrot.slane %v723_v5, 4  ;;  %v754_v13 = vrot.slane %v724_v6, 4 }
 0x6df   :  { %v728_v50 = vpop.permute.xlu1 %727 }
 0x6e0   :  { %v729_v51 = vsel %vm527_vm10, %v726_v48, %v728_v50  ;;  %v730_v53 = vsel %vm527_vm10, %v728_v50, %v726_v48  ;;  %v704_v61 = vpop.permute.xlu0 %703 }
 0x6e1   :  { %v731_v54 = vmul.f32 %v2674_v17, %v729_v51  ;;  %v732_v57 = vmul.f32 %v2679_v18, %v730_v53 }
 0x6e3   :  { %1951 = vmatpush.msk.msrb.mxu2 %vm342_vm2, %v731_v54  ;;  %1953 = vmatpush.msk.msrb.mxu0 %vm342_vm2, %v732_v57  ;;  %v688_v54 = vpop.permute.xlu2 %687 }
 0x6e7   :  { %v702_v58 = vpop.permute.xlu1 %701 }
 0x6e8   :  { %v705_v62 = vsel %vm494_vm12, %v702_v58, %v704_v61  ;;  %v706_v63 = vsel %vm494_vm12, %v704_v61, %v702_v58  ;;  %v694_v33 = vpop.permute.xlu0 %693 }
 0x6e9   :  { %v707_v7 = vmul.f32 %v705_v62, %v2719_v43  ;;  %v708_v8 = vmul.f32 %v706_v63, %v2722_v44 }
 0x6eb   :  { %v747_v25 = vrot.slane %v707_v7, 4  ;;  %v748_v26 = vrot.slane %v708_v8, 4 }
 0x6ed   :  { %v761_v45 = vsel %vm342_vm2, %v2821_v46, %v747_v25  ;;  %v762_v34 = vsel %vm342_vm2, %v2823_v47, %v748_v26 }
 0x6ef   :  { %v710_v9 = vpop.permute.xlu1 %709 }
 0x6f0   :  { %v713_v22 = vsel %vm505_vm13, %v710_v9, %v712_v4  ;;  %v714_v23 = vsel %vm505_vm13, %v712_v4, %v710_v9  ;;  %v680_v50 = vpop.permute.xlu0 %679 }
 0x6f1   :  { %v715_v27 = vmul.f32 %v713_v22, %v2713_v38  ;;  %v716_v30 = vmul.f32 %v714_v23, %v2716_v39  ;;  %v681_v4 = vsel %vm461_vm6, %v678_v41, %v680_v50  ;;  %v682_v5 = vsel %vm461_vm6, %v680_v50, %v678_v41 }
 0x6f2   :  { %v683_v8 = vmul.f32 %v682_v5, %v2767_v10  ;;  %v684_v9 = vmul.f32 %v681_v4, %v2770_v11 }
 0x6f3   :  { %v763_v35 = vsel %vm342_vm2, %v715_v27, %v753_v12  ;;  %v764_v36 = vsel %vm342_vm2, %v716_v30, %v754_v13 }
 0x6f4   :  { %792 = vmatpush.msrb.mxu2 %v763_v35  ;;  %812 = vmatpush.msrb.mxu0 %v764_v36  ;;  %v735_v25 = vrot.slane %v683_v8, 4  ;;  %v736_v26 = vrot.slane %v684_v9, 4 }
 0x6f6   :  { %793 = vmatpush.msrb.mxu2 %v761_v45  ;;  %813 = vmatpush.msrb.mxu0 %v762_v34  ;;  %v2926_v45 = vpop.permute.xlu2 %767 }
 0x6f7   :  { %v696_v40 = vpop.permute.xlu1 %695 }
 0x6f8   :  { %v697_v48 = vsel %vm483_vm14, %v694_v33, %v696_v40  ;;  %v698_v49 = vsel %vm483_vm14, %v696_v40, %v694_v33  ;;  %v670_v12 = vpop.permute.xlu0 %669  ;;  %v2918_v33 = vld [vmem:[%s3478_s13] sm:$0xf] }
 0x6f9   :  { %v699_v51 = vmul.f32 %v698_v49, %v2738_v55  ;;  %v700_v53 = vmul.f32 %v697_v48, %v2741_v56 }
 0x6fb   :  { %v741_v60 = vrot.slane %v699_v51, 4  ;;  %v742_v61 = vrot.slane %v700_v53, 4 }
 0x6ff   :  { %v686_v57 = vpop.permute.xlu1 %685 }
 0x700   :  { %v689_v58 = vsel %vm472_vm15, %v686_v57, %v688_v54  ;;  %v690_v59 = vsel %vm472_vm15, %v688_v54, %v686_v57 }
 0x701   :  { %v691_v62 = vmul.f32 %v690_v59, %v2753_v0  ;;  %v692_v63 = vmul.f32 %v689_v58, %v2756_v2 }
 0x703   :  { %v759_v6 = vsel %vm342_vm2, %v691_v62, %v741_v60  ;;  %v760_v7 = vsel %vm342_vm2, %v692_v63, %v742_v61 }
 0x704   :  { %794 = vmatpush.msrb.mxu2 %v759_v6  ;;  %814 = vmatpush.msrb.mxu0 %v760_v7  ;;  %v262_v6 = vld [vmem:[#allocation13] sm:$0xf]  ;;  %v263_v7 = vld [vmem:[#allocation15] sm:$0xf] }
 0x707   :  { %v672_v13 = vpop.permute.xlu1 %671 }
 0x708   :  { %v673_v22 = vsel %vm450_vm5, %v670_v12, %v672_v13  ;;  %v674_v23 = vsel %vm450_vm5, %v672_v13, %v670_v12 }
 0x709   :  { %v675_v27 = vmul.f32 %v674_v23, %v2773_v14  ;;  %v676_v30 = vmul.f32 %v673_v22, %v2776_v16 }
 0x70b   :  { %v757_v35 = vsel %vm342_vm2, %v675_v27, %v735_v25  ;;  %v758_v36 = vsel %vm342_vm2, %v676_v30, %v736_v26 }
 0x70c   :  { %795 = vmatpush.msrb.mxu2 %v757_v35  ;;  %815 = vmatpush.msrb.mxu0 %v758_v36 }
 0x70d   :  { %1952 = vmatmul.msk.f32.vlgmr.msrb.gmra.mxu2 %vm770_vm1, %v2918_v33  ;;  %1954 = vmatmul.msk.f32.vlgmr.msrb.gmra.mxu0 %vm770_vm1, %v2918_v33 }
 0x78a   :  { %v817_v41 = vpop.f32.mrf.mxu0 }
 0x78b   :  { %v818_v34 = vadd.f32 %v817_v41, %v2926_v45 }
 0x78d   :  { %v826_v49 = vmul.f32 %v818_v34, %v818_v34  ;;  %v821_v51 = vsel %vm342_vm2, %v818_v34, 0.0 }
 0x78f   :  { %v828_v58 = vsel %vm342_vm2, %v826_v49, 0.0 }
 0x790   :  { %v797_v40 = vpop.f32.mrf.mxu2 }
 0x791   :  { %v798_v48 = vadd.f32 %v797_v40, %v2926_v45 }
 0x793   :  { %v820_v50 = vsel %vm342_vm2, %v798_v48, 0.0  ;;  %v825_v53 = vmul.f32 %v798_v48, %v798_v48 }
 0x794   :  { %v822_v54 = vadd.f32 %v821_v51, %v820_v50 }
 0x795   :  { %v827_v57 = vsel %vm342_vm2, %v825_v53, 0.0 }
 0x796   :  { %823 = vadd.xlane.f32.xlu0 %v822_v54  ;;  %v829_v59 = vadd.f32 %v828_v58, %v827_v57 }
 0x798   :  { %830 = vadd.xlane.f32.xlu1 %v829_v59 }
 0x809   :  { %v824_v60 = vpop.xlane.xlu0 %823 }
 0x80b   :  { %v831_v61 = vpop.xlane.xlu1 %830 }
 0x80c   :  { %v832_v62 = vsel %vm355_vm3, %v824_v60, %v831_v61 }
 0x80d   :  { %1955 = vmatpush.msk.msra.mxu3 %vm342_vm2, %v832_v62 }
 0x80e   :  { %1956 = vmatmul.msk.f32.vlgmr.msra.gmra.mxu3 %vm3494_vm4, %v2607_v37 }
 0x891   :  { %v853_v63 = vpop.f32.mrf.mxu3 }
 0x892   :  { %v856_v4 = vmul.f32 0.0009765625, %v853_v63 }
 0x894   :  { %v857_v5 = vmul.f32 %v856_v4, %v856_v4 }
 0x896   :  { %859 = vrot.lane.b32.xlu2 %v857_v5, %s2372_s11 }
 0x89e   :  { %882 = vrot.lane.b32.xlu2 %v262_v6, %s2372_s11 }
 0x8a6   :  { %876 = vperm.xlu2 %2012, %v856_v4  }
 0x8ae   :  { %895 = vperm.xlu2 %2012, %v263_v7  }
 0x8b6   :  { %2015 = vset.pattern.permute.xlu2 %v2373_v42 }
 0x8f0   :  { %v860_v8 = vpop.permute.xlu2 %859 }
 0x8f1   :  { %v862_v9 = vsub.f32 %v856_v4, %v860_v8 }
 0x8f3   :  { %v863_v12 = vadd.f32 1e-05, %v862_v9 }
 0x8f5   :  { %2026 = vrsqrt.f32 %v863_v12  ;;  %vm870_vm9 = vweird.f32 %v863_v12 }
 0x8f8   :  { %v2941_v30 = vpop.permute.xlu2 %882 }
 0x8fb   :  { %v2027_v13 = vpop.eup %2026 }
 0x8fc   :  { %v865_v22 = vmul.f32 %v2027_v13, %v863_v12  ;;  %vm871_vm7 = vweird.f32 %v2027_v13 }
 0x8fd   :  { %vm872_vm8 = vmor %vm870_vm9, %vm871_vm7 }
 0x8fe   :  { %v866_v37 = vmul.f32 %v2027_v13, %v865_v22 }
 0x900   :  { %v867_v23 = vmul.f32 0.5, %v866_v37  ;;  %v877_v36 = vpop.permute.xlu2 %876 }
 0x901   :  { %v879_v40 = vsub.f32 %v798_v48, %v877_v36  ;;  %v880_v49 = vsub.f32 %v818_v34, %v877_v36  ;;  %v1963_v34 = vld [vmem:[%s3501_s24 + $0x8] sm:$0xff] }
 0x902   :  { %v868_v25 = vsub.f32 1.5, %v867_v23  ;;  %1167 = vmatpush.msra.mxu0 %v1963_v34  ;;  %v265_v48 = vld [vmem:[#allocation16] sm:$0xf] }
 0x903   :  { %1964 = vmatmul.msk.f32.vlgmr.msra.gmra.mxu0 %vm269_vm0, %v2533_v1  ;;  %vm3507_vm0 = vcmask 523264  }
 0x904   :  { %v869_v26 = vmul.f32 %v2027_v13, %v868_v25 }
 0x906   :  { %v873_v27 = vsel %vm872_vm8, %v2027_v13, %v869_v26  ;;  %vm3508_vm8 = vmmov %vm3507_vm0 }
 0x907   :  { %v885_v35 = vmul.f32 %v2941_v30, %v873_v27 }
 0x908   :  { %v2945_v41 = vpop.permute.xlu2 %895 }
 0x909   :  { %888 = vperm.xlu2 %2015, %v885_v35  }
 0x911   :  { %2017 = vset.pattern.permute.xlu2 %v2371_v19 }
 0x963   :  { %v889_v50 = vpop.permute.xlu2 %888 }
 0x964   :  { %v891_v51 = vmul.f32 %v889_v50, %v879_v40  ;;  %v892_v53 = vmul.f32 %v889_v50, %v880_v49 }
 0x966   :  { %v898_v54 = vadd.f32 %v2945_v41, %v891_v51  ;;  %v899_v57 = vadd.f32 %v2945_v41, %v892_v53 }
 0x968   :  { %vm900_vm7 = vcmp.ge.f32.partialorder %v898_v54, 0.0  ;;  %vm901_vm9 = vcmp.ge.f32.partialorder %v899_v57, 0.0  ;;  %v902_v58 = vmul.f32 0.01, %v898_v54  ;;  %v903_v59 = vmul.f32 0.01, %v899_v57 }
 0x96a   :  { %v904_v60 = vsel %vm900_vm7, %v898_v54, %v902_v58  ;;  %v905_v61 = vsel %vm901_vm9, %v899_v57, %v903_v59 }
 0x96b   :  { %956 = vrot.lane.b32.xlu2 %v905_v61, %s2376_s18  ;;  %962 = vrot.lane.b32.xlu1 %v904_v60, %s2374_s7 }
 0x96c   :  { %954 = vrot.lane.b32.xlu0 %v904_v60, %s2376_s18 }
 0x973   :  { %964 = vrot.lane.b32.xlu2 %v905_v61, %s2374_s7  ;;  %930 = vrot.lane.b32.xlu1 %v904_v60, %s2372_s11 }
 0x974   :  { %940 = vrot.lane.b32.xlu0 %v905_v61, %s2375_s16 }
 0x97b   :  { %938 = vrot.lane.b32.xlu2 %v904_v60, %s2375_s16  ;;  %916 = vrot.lane.b32.xlu1 %v905_v61, %s2380_s2 }
 0x97c   :  { %948 = vrot.lane.b32.xlu0 %v905_v61, %s2378_s19 }
 0x983   :  { %946 = vrot.lane.b32.xlu2 %v904_v60, %s2378_s19  ;;  %906 = vrot.lane.b32.xlu1 %v904_v60, %s2379_s20 }
 0x984   :  { %914 = vrot.lane.b32.xlu0 %v904_v60, %s2380_s2 }
 0x98b   :  { %932 = vrot.lane.b32.xlu2 %v905_v61, %s2372_s11 }
 0x98c   :  { %924 = vrot.lane.b32.xlu0 %v905_v61, %s2377_s1 }
 0x993   :  { %922 = vrot.lane.b32.xlu2 %v904_v60, %s2377_s1 }
 0x994   :  { %1004 = vperm.xlu0 %2009, %v265_v48  }
 0x99b   :  { %908 = vrot.lane.b32.xlu2 %v905_v61, %s2379_s20 }
 0x9c5   :  { %v957_v1 = vpop.permute.xlu2 %956 }
 0x9cd   :  { %v965_v62 = vpop.permute.xlu2 %964 }
 0x9d5   :  { %v939_v63 = vpop.permute.xlu2 %938 }
 0x9dd   :  { %v963_v4 = vpop.permute.xlu1 %962  ;;  %v947_v5 = vpop.permute.xlu2 %946 }
 0x9de   :  { %v966_v6 = vsel %vm527_vm10, %v963_v4, %v965_v62  ;;  %v967_v7 = vsel %vm527_vm10, %v965_v62, %v963_v4  ;;  %v955_v8 = vpop.permute.xlu0 %954 }
 0x9df   :  { %v968_v9 = vmul.f32 %v2674_v17, %v966_v6  ;;  %v969_v12 = vmul.f32 %v2679_v18, %v967_v7  ;;  %v958_v22 = vsel %vm516_vm11, %v955_v8, %v957_v1  ;;  %v959_v37 = vsel %vm516_vm11, %v957_v1, %v955_v8 }
 0x9e0   :  { %v960_v18 = vmul.f32 %v958_v22, %v2699_v28  ;;  %v961_v27 = vmul.f32 %v959_v37, %v2702_v29 }
 0x9e1   :  { %1957 = vmatpush.msk.msrb.mxu1 %vm342_vm2, %v968_v9  ;;  %1959 = vmatpush.msk.msra.mxu2 %vm342_vm2, %v969_v12 }
 0x9e2   :  { %v990_v49 = vrot.slane %v960_v18, 4  ;;  %v991_v50 = vrot.slane %v961_v27, 4 }
 0x9e5   :  { %v933_v23 = vpop.permute.xlu2 %932  ;;  %v931_v25 = vpop.permute.xlu1 %930 }
 0x9e6   :  { %v941_v13 = vpop.permute.xlu0 %940  ;;  %v934_v6 = vsel %vm483_vm14, %v931_v25, %v933_v23  ;;  %v935_v7 = vsel %vm483_vm14, %v933_v23, %v931_v25 }
 0x9e7   :  { %v942_v26 = vsel %vm494_vm12, %v939_v63, %v941_v13  ;;  %v943_v17 = vsel %vm494_vm12, %v941_v13, %v939_v63  ;;  %v936_v12 = vmul.f32 %v935_v7, %v2738_v55  ;;  %v2045_v7 = vld [vmem:[%s3503_s27 + $0x48] sm:$0xff] }
 0x9e8   :  { %v944_v35 = vmul.f32 %v942_v26, %v2719_v43  ;;  %v945_v36 = vmul.f32 %v943_v17, %v2722_v44 }
 0x9e9   :  { %v978_v26 = vrot.slane %v936_v12, 4  ;;  %v2048_v12 = vld [vmem:[%s3503_s27 + $0x20] sm:$0xff] }
 0x9ea   :  { %v984_v54 = vrot.slane %v944_v35, 4  ;;  %v985_v57 = vrot.slane %v945_v36, 4 }
 0x9ec   :  { %v998_v63 = vsel %vm342_vm2, %v904_v60, %v984_v54  ;;  %v999_v4 = vsel %vm342_vm2, %v905_v61, %v985_v57  ;;  %v937_v60 = vmul.f32 %v934_v6, %v2741_v56  ;;  %v2044_v6 = vld [vmem:[%s3503_s27 + $0x40] sm:$0xff] }
 0x9ed   :  { %v923_v34 = vpop.permute.xlu2 %922  ;;  %v917_v48 = vpop.permute.xlu1 %916 }
 0x9ee   :  { %v949_v40 = vpop.permute.xlu0 %948  ;;  %v979_v17 = vrot.slane %v937_v60, 4  ;;  %v2049_v60 = vld [vmem:[%s3503_s27 + $0x28] sm:$0xff] }
 0x9ef   :  { %v950_v51 = vsel %vm505_vm13, %v947_v5, %v949_v40  ;;  %v951_v53 = vsel %vm505_vm13, %v949_v40, %v947_v5 }
 0x9f0   :  { %v952_v58 = vmul.f32 %v950_v51, %v2713_v38  ;;  %v953_v59 = vmul.f32 %v951_v53, %v2716_v39 }
 0x9f2   :  { %v1000_v1 = vsel %vm342_vm2, %v952_v58, %v990_v49  ;;  %v1001_v62 = vsel %vm342_vm2, %v953_v59, %v991_v50  ;;  %v3029_v58 = vld [vmem:[%s3482_s17] sm:$0xf] }
 0x9f3   :  { %1028 = vmatpush.msrb.mxu1 %v1000_v1  ;;  %1048 = vmatpush.msra.mxu2 %v1001_v62  ;;  %v2039_v1 = vld [vmem:[%s3503_s27 + $0x78] sm:$0xff]  ;;  %v2040_v62 = vld [vmem:[%s3503_s27 + $0x60] sm:$0xff] }
 0x9f5   :  { %1029 = vmatpush.msrb.mxu1 %v998_v63  ;;  %1049 = vmatpush.msra.mxu2 %v999_v4  ;;  %v909_v61 = vpop.permute.xlu2 %908  ;;  %v907_v13 = vpop.permute.xlu1 %906  ;;  %v2041_v63 = vld [vmem:[%s3503_s27 + $0x68] sm:$0xff]  ;;  %v2042_v4 = vld [vmem:[%s3503_s27 + $0x50] sm:$0xff] }
 0x9f6   :  { %v915_v5 = vpop.permute.xlu0 %914  ;;  %v910_v23 = vsel %vm450_vm5, %v907_v13, %v909_v61  ;;  %v911_v25 = vsel %vm450_vm5, %v909_v61, %v907_v13  ;;  %v2050_v61 = vld [vmem:[%s3503_s27 + $0x10] sm:$0xff]  ;;  %v2051_v13 = vld [vmem:[%s3503_s27 + $0x18] sm:$0xff] }
 0x9f7   :  { %v918_v8 = vsel %vm461_vm6, %v915_v5, %v917_v48  ;;  %v919_v9 = vsel %vm461_vm6, %v917_v48, %v915_v5  ;;  %v912_v51 = vmul.f32 %v911_v25, %v2773_v14  ;;  %v913_v53 = vmul.f32 %v910_v23, %v2776_v16  ;;  %v2038_v48 = vld [vmem:[%s3503_s27 + $0x70] sm:$0xff]  ;;  %v2043_v5 = vld [vmem:[%s3503_s27 + $0x58] sm:$0xff] }
 0x9f8   :  { %v920_v22 = vmul.f32 %v919_v9, %v2767_v10  ;;  %v921_v37 = vmul.f32 %v918_v8, %v2770_v11  ;;  %v2046_v8 = vld [vmem:[%s3503_s27 + $0x30] sm:$0xff]  ;;  %v2047_v9 = vld [vmem:[%s3503_s27 + $0x38] sm:$0xff] }
 0x9fa   :  { %v972_v36 = vrot.slane %v920_v22, 4  ;;  %v973_v40 = vrot.slane %v921_v37, 4  ;;  %v1169_v22 = vpop.f32.mrf.mxu0  ;;  %v2052_v37 = vld [vmem:[%s3503_s27] sm:$0xff] }
 0x9fc   :  { %v994_v59 = vsel %vm342_vm2, %v912_v51, %v972_v36 }
 0x9fe   :  { %v925_v18 = vpop.permute.xlu0 %924 }
 0x9ff   :  { %v926_v27 = vsel %vm472_vm15, %v923_v34, %v925_v18  ;;  %v927_v35 = vsel %vm472_vm15, %v925_v18, %v923_v34  ;;  %v995_v34 = vsel %vm342_vm2, %v913_v53, %v973_v40 }
 0xa00   :  { %v928_v49 = vmul.f32 %v927_v35, %v2753_v0  ;;  %v929_v50 = vmul.f32 %v926_v27, %v2756_v2 }
 0xa02   :  { %v996_v54 = vsel %vm342_vm2, %v928_v49, %v978_v26  ;;  %v997_v57 = vsel %vm342_vm2, %v929_v50, %v979_v17  ;;  %v2053_v26 = vld [vmem:[%s3503_s27 + $0x8] sm:$0xff] }
 0xa03   :  { %1030 = vmatpush.msrb.mxu1 %v996_v54  ;;  %1050 = vmatpush.msra.mxu2 %v997_v57 }
 0xa05   :  { %1031 = vmatpush.msrb.mxu1 %v994_v59  ;;  %1051 = vmatpush.msra.mxu2 %v995_v34 }
 0xa06   :  { %1958 = vmatmul.msk.f32.vlgmr.msrb.gmra.mxu1 %vm770_vm1, %v3029_v58  ;;  %1960 = vmatmul.msk.f32.vlgmr.msra.gmra.mxu2 %vm770_vm1, %v3029_v58  ;;  %v3087_v18 = vpop.permute.xlu0 %1004 }
 0xa07   :  { %1183 = vmatpush.msra.mxu1 %v2038_v48  ;;  %1203 = vmatpush.msrb.mxu2 %v2039_v1 }
 0xa09   :  { %1184 = vmatpush.msra.mxu1 %v2040_v62  ;;  %1204 = vmatpush.msrb.mxu2 %v2041_v63 }
 0xa0b   :  { %1185 = vmatpush.msra.mxu1 %v2042_v4  ;;  %1205 = vmatpush.msrb.mxu2 %v2043_v5 }
 0xa0d   :  { %1186 = vmatpush.msra.mxu1 %v2044_v6  ;;  %1206 = vmatpush.msrb.mxu2 %v2045_v7 }
 0xa0f   :  { %1187 = vmatpush.msra.mxu1 %v2046_v8  ;;  %1207 = vmatpush.msrb.mxu2 %v2047_v9 }
 0xa11   :  { %1188 = vmatpush.msra.mxu1 %v2048_v12  ;;  %1208 = vmatpush.msrb.mxu2 %v2049_v60 }
 0xa13   :  { %1189 = vmatpush.msra.mxu1 %v2050_v61  ;;  %1209 = vmatpush.msrb.mxu2 %v2051_v13 }
 0xa15   :  { %1190 = vmatpush.msra.mxu1 %v2052_v37  ;;  %1210 = vmatpush.msrb.mxu2 %v2053_v26 }
 0xa16   :  { %1965 = vmatmul.msk.f32.vlgmr.msra.gmra.mxu1 %vm3507_vm0, %v1169_v22  ;;  %1966 = vmatmul.msk.f32.vlgmr.msrb.gmra.mxu2 %vm3508_vm8, %v1169_v22 }
 0xa83   :  { %v1033_v17 = vpop.f32.mrf.mxu1 }
 0xa84   :  { %v3090_v23 = vadd.f32 %v1033_v17, %v3087_v18 }
 0xa86   :  { %v1061_v35 = vmul.f32 %v3090_v23, %v3090_v23  ;;  %v1056_v36 = vsel %vm342_vm2, %v3090_v23, 0.0 }
 0xa88   :  { %v1063_v51 = vsel %vm342_vm2, %v1061_v35, 0.0 }
 0xa89   :  { %v1053_v25 = vpop.f32.mrf.mxu2 }
 0xa8a   :  { %v3093_v27 = vadd.f32 %v1053_v25, %v3087_v18 }
 0xa8c   :  { %v1057_v40 = vsel %vm342_vm2, %v3093_v27, 0.0  ;;  %v1062_v49 = vmul.f32 %v3093_v27, %v3093_v27 }
 0xa8d   :  { %v1058_v50 = vadd.f32 %v1057_v40, %v1056_v36 }
 0xa8e   :  { %v1064_v53 = vsel %vm342_vm2, %v1062_v49, 0.0 }
 0xa8f   :  { %1059 = vadd.xlane.f32.xlu1 %v1058_v50  ;;  %v1065_v54 = vadd.f32 %v1064_v53, %v1063_v51 }
 0xa91   :  { %1066 = vadd.xlane.f32.xlu2 %v1065_v54 }
 0xa93   :  { %v1192_v57 = vpop.f32.mrf.mxu1 }
 0xa94   :  { %v1193_v59 = vadd.f32 %v1192_v57, %v2590_v21 }
 0xa96   :  { %v1220_v1 = vmul.f32 %v1193_v59, %v1193_v59  ;;  %v1215_v62 = vsel %vm342_vm2, %v1193_v59, 0.0 }
 0xa98   :  { %v1222_v6 = vsel %vm342_vm2, %v1220_v1, 0.0 }
 0xa99   :  { %v1212_v34 = vpop.f32.mrf.mxu2 }
 0xa9a   :  { %v1213_v48 = vadd.f32 %v1212_v34, %v2590_v21  ;;  %v3116_v21 = vld [vmem:[%s3504_s15] sm:$0xf] }
 0xa9c   :  { %v1216_v63 = vsel %vm342_vm2, %v1213_v48, 0.0  ;;  %v1221_v4 = vmul.f32 %v1213_v48, %v1213_v48 }
 0xa9d   :  { %v1217_v5 = vadd.f32 %v1216_v63, %v1215_v62 }
 0xa9e   :  { %v1223_v7 = vsel %vm342_vm2, %v1221_v4, 0.0 }
 0xa9f   :  { %1218 = vadd.xlane.f32.xlu0 %v1217_v5  ;;  %v1224_v8 = vadd.f32 %v1223_v7, %v1222_v6 }
 0xaa1   :  { %1225 = vadd.xlane.f32.xlu1 %v1224_v8 }
 0xb02   :  { %v1060_v9 = vpop.xlane.xlu1 %1059 }
 0xb04   :  { %v1067_v12 = vpop.xlane.xlu2 %1066 }
 0xb05   :  { %v1068_v60 = vsel %vm355_vm3, %v1060_v9, %v1067_v12  ;;  %v1297_v12 = vld.sshfl [vmem:[#allocation1] sm:$0xff pattern:$0x75316420] }
 0xb06   :  { %1961 = vmatpush.msk.msrb.mxu3 %vm342_vm2, %v1068_v60  ;;  %v1298_v60 = vld.sshfl [vmem:[#allocation1 + $0x8] sm:$0xff pattern:$0x75316420] }
 0xb07   :  { %1962 = vmatmul.msk.f32.vlgmr.msrb.gmra.mxu3 %vm3494_vm4, %v3116_v21 }
 0xb12   :  { %v1219_v61 = vpop.xlane.xlu0 %1218 }
 0xb14   :  { %v1226_v13 = vpop.xlane.xlu1 %1225 }
 0xb15   :  { %v1227_v22 = vsel %vm355_vm3, %v1219_v61, %v1226_v13 }
 0xb16   :  { %1967 = vmatpush.msk.msra.mxu3 %vm342_vm2, %v1227_v22 }
 0xb17   :  { %1968 = vmatmul.msk.f32.vlgmr.msra.gmra.mxu3 %vm3494_vm4, %v3116_v21 }
 0xb8a   :  { %v3124_v37 = vpop.f32.mrf.mxu3 }
 0xb9a   :  { %v1248_v26 = vpop.f32.mrf.mxu3 }
 0xb9b   :  { %v1251_v17 = vmul.f32 0.0009765625, %v1248_v26 }
 0xb9d   :  { %1271 = vperm.xlu0 %2009, %v1251_v17   ;;  %v1252_v25 = vmul.f32 %v1251_v17, %v1251_v17 }
 0xb9f   :  { %1254 = vrot.lane.b32.xlu2 %v1252_v25, %s2372_s11 }
 0xbf9   :  { %v1255_v35 = vpop.permute.xlu2 %1254 }
 0xbfa   :  { %v1257_v36 = vsub.f32 %v1251_v17, %v1255_v35 }
 0xbfc   :  { %v1258_v40 = vadd.f32 1e-05, %v1257_v36  ;;  %v3156_v36 = vld [vmem:[%s3506_s10 + $0x10] ss:$0 sm:$0xff] }
 0xbfe   :  { %2028 = vrsqrt.f32 %v1258_v40  ;;  %vm1265_vm9 = vweird.f32 %v1258_v40 }
 0xc04   :  { %v2029_v49 = vpop.eup %2028 }
 0xc05   :  { %v1260_v50 = vmul.f32 %v2029_v49, %v1258_v40  ;;  %vm1266_vm7 = vweird.f32 %v2029_v49 }
 0xc06   :  { %vm1267_vm0 = vmor %vm1265_vm9, %vm1266_vm7  ;;  %vm3509_vm9 = vcmask 588800  }
 0xc07   :  { %v1261_v51 = vmul.f32 %v2029_v49, %v1260_v50 }
 0xc09   :  { %v1262_v53 = vmul.f32 0.5, %v1261_v51 }
 0xc0b   :  { %v1263_v54 = vsub.f32 1.5, %v1262_v53 }
 0xc0d   :  { %v1264_v57 = vmul.f32 %v2029_v49, %v1263_v54 }
 0xc0f   :  { %v1268_v34 = vsel %vm1267_vm0, %v2029_v49, %v1264_v57  ;;  %v1272_v62 = vpop.permute.xlu0 %1271  ;;  %v3162_v49 = vld [vmem:[%s3506_s10 + $0x18] ss:$0 sm:$0xff]  ;;  %vm3510_vm0 = vmmov %vm3509_vm9 }
 0xc10   :  { %v1276_v1 = vmul.f32 %v1268_v34, %v2615_v52  ;;  %v1274_v63 = vsub.f32 %v1193_v59, %v1272_v62  ;;  %v1275_v4 = vsub.f32 %v1213_v48, %v1272_v62 }
 0xc12   :  { %1279 = vperm.xlu1 %2014, %v1276_v1  }
 0xc1a   :  { %2019 = vset.pattern.permute.xlu1 %v2371_v19 }
 0xc84   :  { %v1280_v5 = vpop.permute.xlu1 %1279 }
 0xc85   :  { %v1282_v6 = vmul.f32 %v1280_v5, %v1274_v63  ;;  %v1283_v7 = vmul.f32 %v1280_v5, %v1275_v4 }
 0xc87   :  { %v1284_v8 = vadd.f32 %v1282_v6, %v2626_v3  ;;  %v1285_v9 = vadd.f32 %v1283_v7, %v2626_v3 }
 0xc89   :  { %vm1286_vm8 = vcmp.ge.f32.partialorder %v1284_v8, 0.0  ;;  %vm1287_vm7 = vcmp.ge.f32.partialorder %v1285_v9, 0.0  ;;  %v1288_v61 = vmul.f32 0.01, %v1284_v8  ;;  %v1289_v13 = vmul.f32 0.01, %v1285_v9 }
 0xc8b   :  { %v1290_v52 = vsel %vm1286_vm8, %v1284_v8, %v1288_v61  ;;  %v1291_v22 = vsel %vm1287_vm7, %v1285_v9, %v1289_v13 }
 0xc8c   :  { %v1301_v19 = vsel %vm342_vm2, %v1290_v52, %v1297_v12  ;;  %v1302_v59 = vsel %vm342_vm2, %v1291_v22, %v1298_v60 }
 0xc8d   :  { %1361 = vrot.lane.b32.xlu2 %v1302_v59, %s2374_s7  ;;  %1351 = vrot.lane.b32.xlu1 %v1301_v19, %s2376_s18 }
 0xc8e   :  { %1359 = vrot.lane.b32.xlu0 %v1301_v19, %s2374_s7 }
 0xc95   :  { %1343 = vrot.lane.b32.xlu2 %v1301_v19, %s2378_s19  ;;  %1345 = vrot.lane.b32.xlu1 %v1302_v59, %s2378_s19 }
 0xc96   :  { %1353 = vrot.lane.b32.xlu0 %v1302_v59, %s2376_s18 }
 0xc9d   :  { %1337 = vrot.lane.b32.xlu2 %v1302_v59, %s2375_s16  ;;  %1327 = vrot.lane.b32.xlu1 %v1301_v19, %s2372_s11 }
 0xc9e   :  { %1335 = vrot.lane.b32.xlu0 %v1301_v19, %s2375_s16 }
 0xca5   :  { %1319 = vrot.lane.b32.xlu2 %v1301_v19, %s2377_s1  ;;  %1321 = vrot.lane.b32.xlu1 %v1302_v59, %s2377_s1 }
 0xca6   :  { %1329 = vrot.lane.b32.xlu0 %v1302_v59, %s2372_s11 }
 0xcad   :  { %1313 = vrot.lane.b32.xlu2 %v1302_v59, %s2380_s2  ;;  %1303 = vrot.lane.b32.xlu1 %v1301_v19, %s2379_s20 }
 0xcae   :  { %1311 = vrot.lane.b32.xlu0 %v1301_v19, %s2380_s2 }
 0xcb6   :  { %1305 = vrot.lane.b32.xlu0 %v1302_v59, %s2379_s20 }
 0xce7   :  { %v1362_v3 = vpop.permute.xlu2 %1361 }
 0xcef   :  { %v1344_v35 = vpop.permute.xlu2 %1343 }
 0xcf7   :  { %v1338_v4 = vpop.permute.xlu2 %1337 }
 0xcff   :  { %v1352_v48 = vpop.permute.xlu1 %1351  ;;  %v1320_v13 = vpop.permute.xlu2 %1319 }
 0xd00   :  { %v1360_v26 = vpop.permute.xlu0 %1359 }
 0xd01   :  { %v1363_v17 = vsel %vm527_vm10, %v1360_v26, %v1362_v3  ;;  %v1364_v25 = vsel %vm527_vm10, %v1362_v3, %v1360_v26 }
 0xd02   :  { %v1365_v40 = vmul.f32 %v3156_v36, %v1363_v17  ;;  %v1366_v50 = vmul.f32 %v3162_v49, %v1364_v25 }
 0xd04   :  { %1374 = vmatpush.msrb.mxu0 %v1365_v40  ;;  %1394 = vmatpush.msrb.mxu3 %v1366_v50 }
 0xd07   :  { %v1346_v51 = vpop.permute.xlu1 %1345  ;;  %v1314_v40 = vpop.permute.xlu2 %1313 }
 0xd08   :  { %v1354_v53 = vpop.permute.xlu0 %1353  ;;  %v1347_v54 = vsel %vm505_vm13, %v1344_v35, %v1346_v51  ;;  %v1348_v57 = vsel %vm505_vm13, %v1346_v51, %v1344_v35 }
 0xd09   :  { %v1355_v34 = vsel %vm516_vm11, %v1352_v48, %v1354_v53  ;;  %v1356_v1 = vsel %vm516_vm11, %v1354_v53, %v1352_v48  ;;  %v1349_v5 = vmul.f32 %v1347_v54, %v2713_v38  ;;  %v1350_v6 = vmul.f32 %v1348_v57, %v2716_v39 }
 0xd0a   :  { %v1357_v62 = vmul.f32 %v1355_v34, %v2699_v28  ;;  %v1358_v63 = vmul.f32 %v1356_v1, %v2702_v29 }
 0xd0c   :  { %1375 = vmatpush.msrb.mxu0 %v1357_v62  ;;  %1395 = vmatpush.msrb.mxu3 %v1358_v63 }
 0xd0e   :  { %1376 = vmatpush.msrb.mxu0 %v1349_v5  ;;  %1396 = vmatpush.msrb.mxu3 %v1350_v6 }
 0xd0f   :  { %v1328_v7 = vpop.permute.xlu1 %1327 }
 0xd10   :  { %v1336_v8 = vpop.permute.xlu0 %1335 }
 0xd11   :  { %v1339_v9 = vsel %vm494_vm12, %v1336_v8, %v1338_v4  ;;  %v1340_v12 = vsel %vm494_vm12, %v1338_v4, %v1336_v8 }
 0xd12   :  { %v1341_v60 = vmul.f32 %v1339_v9, %v2719_v43  ;;  %v1342_v61 = vmul.f32 %v1340_v12, %v2722_v44 }
 0xd14   :  { %1377 = vmatpush.msrb.mxu0 %v1341_v60  ;;  %1397 = vmatpush.msrb.mxu3 %v1342_v61 }
 0xd16   :  { %1378 = vmatpush.msrb.mxu0 %v1301_v19  ;;  %1398 = vmatpush.msrb.mxu3 %v1302_v59 }
 0xd17   :  { %v1322_v52 = vpop.permute.xlu1 %1321 }
 0xd18   :  { %v1330_v22 = vpop.permute.xlu0 %1329  ;;  %v1323_v3 = vsel %vm472_vm15, %v1320_v13, %v1322_v52  ;;  %v1324_v48 = vsel %vm472_vm15, %v1322_v52, %v1320_v13 }
 0xd19   :  { %v1331_v26 = vsel %vm483_vm14, %v1328_v7, %v1330_v22  ;;  %v1332_v17 = vsel %vm483_vm14, %v1330_v22, %v1328_v7  ;;  %v1325_v19 = vmul.f32 %v1324_v48, %v2753_v0  ;;  %v1326_v59 = vmul.f32 %v1323_v3, %v2756_v2 }
 0xd1a   :  { %v1333_v25 = vmul.f32 %v1332_v17, %v2738_v55  ;;  %v1334_v35 = vmul.f32 %v1331_v26, %v2741_v56 }
 0xd1c   :  { %1379 = vmatpush.msrb.mxu0 %v1333_v25  ;;  %1399 = vmatpush.msrb.mxu3 %v1334_v35 }
 0xd1e   :  { %1380 = vmatpush.msrb.mxu0 %v1325_v19  ;;  %1400 = vmatpush.msrb.mxu3 %v1326_v59 }
 0xd1f   :  { %v1304_v34 = vpop.permute.xlu1 %1303 }
 0xd20   :  { %v1312_v50 = vpop.permute.xlu0 %1311 }
 0xd21   :  { %v1315_v51 = vsel %vm461_vm6, %v1312_v50, %v1314_v40  ;;  %v1316_v53 = vsel %vm461_vm6, %v1314_v40, %v1312_v50 }
 0xd22   :  { %v1317_v54 = vmul.f32 %v1316_v53, %v2767_v10  ;;  %v1318_v57 = vmul.f32 %v1315_v51, %v2770_v11 }
 0xd24   :  { %1381 = vmatpush.msrb.mxu0 %v1317_v54  ;;  %1401 = vmatpush.msrb.mxu3 %v1318_v57 }
 0xd28   :  { %v1306_v1 = vpop.permute.xlu0 %1305 }
 0xd29   :  { %v1307_v62 = vsel %vm450_vm5, %v1304_v34, %v1306_v1  ;;  %v1308_v63 = vsel %vm450_vm5, %v1306_v1, %v1304_v34 }
 0xd2a   :  { %v1309_v4 = vmul.f32 %v1308_v63, %v2773_v14  ;;  %v1310_v5 = vmul.f32 %v1307_v62, %v2776_v16 }
 0xd2c   :  { %1382 = vmatpush.msrb.mxu0 %v1309_v4  ;;  %1402 = vmatpush.msrb.mxu3 %v1310_v5 }
 0xd2d   :  { %1970 = vmatmul.msk.f32.vlgmr.msrb.gmra.mxu0 %vm3509_vm9, %v2793_v31  ;;  %1971 = vmatmul.msk.f32.vlgmr.msrb.gmra.mxu3 %vm3510_vm0, %v2793_v31 }
 0xdaa   :  { %v1384_v6 = vpop.f32.mrf.mxu0 }
 0xdab   :  { %v1385_v7 = vadd.f32 %v1384_v6, %v2799_v32 }
 0xdad   :  { %v1412_v12 = vmul.f32 %v1385_v7, %v1385_v7  ;;  %v1407_v60 = vsel %vm342_vm2, %v1385_v7, 0.0 }
 0xdaf   :  { %v1414_v22 = vsel %vm342_vm2, %v1412_v12, 0.0 }
 0xdb0   :  { %v1404_v8 = vpop.f32.mrf.mxu3 }
 0xdb1   :  { %v1405_v9 = vadd.f32 %v1404_v8, %v2799_v32 }
 0xdb3   :  { %v1408_v61 = vsel %vm342_vm2, %v1405_v9, 0.0  ;;  %v1413_v13 = vmul.f32 %v1405_v9, %v1405_v9 }
 0xdb4   :  { %v1409_v52 = vadd.f32 %v1408_v61, %v1407_v60 }
 0xdb5   :  { %v1415_v3 = vsel %vm342_vm2, %v1413_v13, 0.0 }
 0xdb6   :  { %1410 = vadd.xlane.f32.xlu2 %v1409_v52  ;;  %v1416_v48 = vadd.f32 %v1415_v3, %v1414_v22 }
 0xdb8   :  { %1417 = vadd.xlane.f32.xlu1 %v1416_v48 }
 0xe29   :  { %v1411_v31 = vpop.xlane.xlu2 %1410 }
 0xe2b   :  { %v1418_v26 = vpop.xlane.xlu1 %1417 }
 0xe2c   :  { %v1419_v17 = vsel %vm355_vm3, %v1411_v31, %v1418_v26 }
 0xe2d   :  { %1972 = vmatpush.msk.msrb.mxu1 %vm342_vm2, %v1419_v17 }
 0xe2e   :  { %1973 = vmatmul.msk.f32.vlgmr.msrb.gmra.mxu1 %vm3494_vm4, %v3116_v21 }
 0xeab   :  { %v1440_v32 = vpop.f32.mrf.mxu1 }
 0xeac   :  { %v1443_v25 = vmul.f32 0.0009765625, %v1440_v32 }
 0xeae   :  { %v1444_v35 = vmul.f32 %v1443_v25, %v1443_v25 }
 0xeb0   :  { %1446 = vrot.lane.b32.xlu0 %v1444_v35, %s2372_s11 }
 0xeb8   :  { %1463 = vperm.xlu0 %2009, %v1443_v25  }
 0xec0   :  { %2016 = vset.pattern.permute.xlu0 %v2373_v42 }
 0xf22   :  { %v1447_v19 = vpop.permute.xlu0 %1446 }
 0xf23   :  { %v1449_v59 = vsub.f32 %v1443_v25, %v1447_v19 }
 0xf25   :  { %v1450_v40 = vadd.f32 1e-05, %v1449_v59 }
 0xf27   :  { %2030 = vrsqrt.f32 %v1450_v40  ;;  %vm1457_vm7 = vweird.f32 %v1450_v40 }
 0xf2a   :  { %v1464_v63 = vpop.permute.xlu0 %1463 }
 0xf2b   :  { %v1466_v4 = vsub.f32 %v1385_v7, %v1464_v63  ;;  %v1467_v5 = vsub.f32 %v1405_v9, %v1464_v63 }
 0xf2d   :  { %v2031_v50 = vpop.eup %2030 }
 0xf2e   :  { %v1452_v51 = vmul.f32 %v2031_v50, %v1450_v40  ;;  %vm1458_vm8 = vweird.f32 %v2031_v50 }
 0xf2f   :  { %vm1459_vm9 = vmor %vm1457_vm7, %vm1458_vm8 }
 0xf30   :  { %v1453_v53 = vmul.f32 %v2031_v50, %v1452_v51 }
 0xf32   :  { %v1454_v54 = vmul.f32 0.5, %v1453_v53 }
 0xf34   :  { %v1455_v57 = vsub.f32 1.5, %v1454_v54 }
 0xf36   :  { %v1456_v34 = vmul.f32 %v2031_v50, %v1455_v57 }
 0xf38   :  { %v1460_v1 = vsel %vm1459_vm9, %v2031_v50, %v1456_v34 }
 0xf39   :  { %v1468_v62 = vmul.f32 %v1460_v1, %v2814_v20 }
 0xf3b   :  { %1471 = vperm.xlu0 %2016, %v1468_v62  }
 0xfad   :  { %v1472_v6 = vpop.permute.xlu0 %1471 }
 0xfae   :  { %v1474_v8 = vmul.f32 %v1472_v6, %v1466_v4  ;;  %v1475_v12 = vmul.f32 %v1472_v6, %v1467_v5 }
 0xfb0   :  { %v1476_v60 = vadd.f32 %v1474_v8, %v2817_v24  ;;  %v1477_v61 = vadd.f32 %v1475_v12, %v2817_v24 }
 0xfb2   :  { %vm1478_vm0 = vcmp.ge.f32.partialorder %v1476_v60, 0.0  ;;  %vm1479_vm4 = vcmp.ge.f32.partialorder %v1477_v61, 0.0  ;;  %v1480_v13 = vmul.f32 0.01, %v1476_v60  ;;  %v1481_v52 = vmul.f32 0.01, %v1477_v61 }
 0xfb4   :  { %v3226_v22 = vsel %vm1478_vm0, %v1476_v60, %v1480_v13  ;;  %v3228_v3 = vsel %vm1479_vm4, %v1477_v61, %v1481_v52  ;;  %vm3511_vm4 = vcmask 31744  }
 0xfb5   :  { %1542 = vrot.lane.b32.xlu1 %v3228_v3, %s2374_s7  ;;  %1534 = vrot.lane.b32.xlu2 %v3228_v3, %s2376_s18 }
 0xfb6   :  { %1532 = vrot.lane.b32.xlu0 %v3226_v22, %s2376_s18 }
 0xfbd   :  { %1508 = vrot.lane.b32.xlu1 %v3226_v22, %s2372_s11  ;;  %1524 = vrot.lane.b32.xlu2 %v3226_v22, %s2378_s19 }
 0xfbe   :  { %1540 = vrot.lane.b32.xlu0 %v3226_v22, %s2374_s7 }
 0xfc5   :  { %1494 = vrot.lane.b32.xlu1 %v3228_v3, %s2380_s2  ;;  %1510 = vrot.lane.b32.xlu2 %v3228_v3, %s2372_s11 }
 0xfc6   :  { %1516 = vrot.lane.b32.xlu0 %v3226_v22, %s2375_s16 }
 0xfcd   :  { %1484 = vrot.lane.b32.xlu1 %v3226_v22, %s2379_s20  ;;  %1500 = vrot.lane.b32.xlu2 %v3226_v22, %s2377_s1 }
 0xfce   :  { %1518 = vrot.lane.b32.xlu0 %v3228_v3, %s2375_s16 }
 0xfd5   :  { %1486 = vrot.lane.b32.xlu2 %v3228_v3, %s2379_s20 }
 0xfd6   :  { %1526 = vrot.lane.b32.xlu0 %v3228_v3, %s2378_s19 }
 0xfde   :  { %1492 = vrot.lane.b32.xlu0 %v3226_v22, %s2380_s2 }
 0xfe6   :  { %1502 = vrot.lane.b32.xlu0 %v3228_v3, %s2377_s1 }
0x100f   :  { %v1535_v24 = vpop.permute.xlu2 %1534 }
0x1017   :  { %v1525_v25 = vpop.permute.xlu2 %1524 }
0x101f   :  { %v1511_v53 = vpop.permute.xlu2 %1510 }
0x1027   :  { %v1543_v7 = vpop.permute.xlu1 %1542 }
0x1028   :  { %v1533_v20 = vpop.permute.xlu0 %1532 }
0x1029   :  { %v1536_v19 = vsel %vm516_vm11, %v1533_v20, %v1535_v24  ;;  %v1537_v59 = vsel %vm516_vm11, %v1535_v24, %v1533_v20  ;;  %v1501_v24 = vpop.permute.xlu2 %1500 }
0x102a   :  { %v1538_v54 = vmul.f32 %v1536_v19, %v2699_v28  ;;  %v1539_v57 = vmul.f32 %v1537_v59, %v2702_v29 }
0x102c   :  { %v1568_v63 = vrot.slane %v1538_v54, 4  ;;  %v1569_v4 = vrot.slane %v1539_v57, 4 }
0x102f   :  { %v1509_v40 = vpop.permute.xlu1 %1508 }
0x1030   :  { %v1541_v9 = vpop.permute.xlu0 %1540 }
0x1031   :  { %v1544_v48 = vsel %vm527_vm10, %v1541_v9, %v1543_v7  ;;  %v1545_v31 = vsel %vm527_vm10, %v1543_v7, %v1541_v9  ;;  %v1487_v57 = vpop.permute.xlu2 %1486 }
0x1032   :  { %v1546_v26 = vmul.f32 %v3156_v36, %v1544_v48  ;;  %v1547_v17 = vmul.f32 %v3162_v49, %v1545_v31  ;;  %v1512_v31 = vsel %vm483_vm14, %v1509_v40, %v1511_v53 }
0x1034   :  { %1974 = vmatpush.msk.msra.mxu2 %vm342_vm2, %v1546_v26  ;;  %1976 = vmatpush.msk.msra.mxu0 %vm342_vm2, %v1547_v17  ;;  %v1513_v26 = vsel %vm483_vm14, %v1511_v53, %v1509_v40 }
0x1037   :  { %v1495_v13 = vpop.permute.xlu1 %1494 }
0x1038   :  { %v1517_v32 = vpop.permute.xlu0 %1516 }
0x103f   :  { %v1485_v19 = vpop.permute.xlu1 %1484 }
0x1040   :  { %v1519_v35 = vpop.permute.xlu0 %1518  ;;  %v1488_v40 = vsel %vm450_vm5, %v1485_v19, %v1487_v57  ;;  %v1489_v53 = vsel %vm450_vm5, %v1487_v57, %v1485_v19 }
0x1041   :  { %v1520_v50 = vsel %vm494_vm12, %v1517_v32, %v1519_v35  ;;  %v1521_v51 = vsel %vm494_vm12, %v1519_v35, %v1517_v32  ;;  %v1515_v35 = vmul.f32 %v1512_v31, %v2741_v56 }
0x1042   :  { %v1522_v34 = vmul.f32 %v1520_v50, %v2719_v43  ;;  %v1523_v1 = vmul.f32 %v1521_v51, %v2722_v44 }
0x1043   :  { %v1557_v54 = vrot.slane %v1515_v35, 4 }
0x1044   :  { %v1562_v8 = vrot.slane %v1522_v34, 4  ;;  %v1563_v12 = vrot.slane %v1523_v1, 4 }
0x1046   :  { %v1576_v7 = vsel %vm342_vm2, %v3226_v22, %v1562_v8  ;;  %v1577_v9 = vsel %vm342_vm2, %v3228_v3, %v1563_v12  ;;  %v1490_v8 = vmul.f32 %v1489_v53, %v2773_v14  ;;  %v1491_v12 = vmul.f32 %v1488_v40, %v2776_v16 }
0x1048   :  { %v1527_v62 = vpop.permute.xlu0 %1526 }
0x1049   :  { %v1528_v5 = vsel %vm505_vm13, %v1525_v25, %v1527_v62  ;;  %v1529_v6 = vsel %vm505_vm13, %v1527_v62, %v1525_v25  ;;  %v1514_v25 = vmul.f32 %v1513_v26, %v2738_v55 }
0x104a   :  { %v1530_v60 = vmul.f32 %v1528_v5, %v2713_v38  ;;  %v1531_v61 = vmul.f32 %v1529_v6, %v2716_v39 }
0x104b   :  { %v1556_v51 = vrot.slane %v1514_v25, 4 }
0x104c   :  { %v1578_v52 = vsel %vm342_vm2, %v1530_v60, %v1568_v63  ;;  %v1579_v20 = vsel %vm342_vm2, %v1531_v61, %v1569_v4 }
0x104d   :  { %1598 = vmatpush.msra.mxu2 %v1578_v52  ;;  %1618 = vmatpush.msra.mxu0 %v1579_v20 }
0x104f   :  { %1599 = vmatpush.msra.mxu2 %v1576_v7  ;;  %1619 = vmatpush.msra.mxu0 %v1577_v9 }
0x1050   :  { %v1493_v48 = vpop.permute.xlu0 %1492 }
0x1051   :  { %v1496_v17 = vsel %vm461_vm6, %v1493_v48, %v1495_v13  ;;  %v1497_v32 = vsel %vm461_vm6, %v1495_v13, %v1493_v48 }
0x1052   :  { %v1498_v59 = vmul.f32 %v1497_v32, %v2767_v10  ;;  %v1499_v50 = vmul.f32 %v1496_v17, %v2770_v11 }
0x1054   :  { %v1550_v63 = vrot.slane %v1498_v59, 4  ;;  %v1551_v4 = vrot.slane %v1499_v50, 4 }
0x1056   :  { %v1572_v13 = vsel %vm342_vm2, %v1490_v8, %v1550_v63  ;;  %v1573_v52 = vsel %vm342_vm2, %v1491_v12, %v1551_v4 }
0x1058   :  { %v1503_v34 = vpop.permute.xlu0 %1502 }
0x1059   :  { %v1504_v1 = vsel %vm472_vm15, %v1501_v24, %v1503_v34  ;;  %v1505_v62 = vsel %vm472_vm15, %v1503_v34, %v1501_v24 }
0x105a   :  { %v1506_v5 = vmul.f32 %v1505_v62, %v2753_v0  ;;  %v1507_v6 = vmul.f32 %v1504_v1, %v2756_v2 }
0x105c   :  { %v1574_v60 = vsel %vm342_vm2, %v1506_v5, %v1556_v51  ;;  %v1575_v61 = vsel %vm342_vm2, %v1507_v6, %v1557_v54 }
0x105d   :  { %1600 = vmatpush.msra.mxu2 %v1574_v60  ;;  %1620 = vmatpush.msra.mxu0 %v1575_v61 }
0x105f   :  { %1601 = vmatpush.msra.mxu2 %v1572_v13  ;;  %1621 = vmatpush.msra.mxu0 %v1573_v52 }
0x1060   :  { %1975 = vmatmul.msk.f32.vlgmr.msra.gmra.mxu2 %vm770_vm1, %v2918_v33  ;;  %1977 = vmatmul.msk.f32.vlgmr.msra.gmra.mxu0 %vm770_vm1, %v2918_v33 }
0x10dd   :  { %v1623_v20 = vpop.f32.mrf.mxu0 }
0x10de   :  { %v1624_v24 = vadd.f32 %v1623_v20, %v2926_v45 }
0x10e0   :  { %v1632_v48 = vmul.f32 %v1624_v24, %v1624_v24  ;;  %v1627_v26 = vsel %vm342_vm2, %v1624_v24, 0.0 }
0x10e2   :  { %v1634_v35 = vsel %vm342_vm2, %v1632_v48, 0.0 }
0x10e3   :  { %v1603_v7 = vpop.f32.mrf.mxu2 }
0x10e4   :  { %v1604_v9 = vadd.f32 %v1603_v7, %v2926_v45 }
0x10e6   :  { %v1626_v31 = vsel %vm342_vm2, %v1604_v9, 0.0  ;;  %v1631_v17 = vmul.f32 %v1604_v9, %v1604_v9 }
0x10e7   :  { %v1628_v32 = vadd.f32 %v1627_v26, %v1626_v31 }
0x10e8   :  { %v1633_v25 = vsel %vm342_vm2, %v1631_v17, 0.0 }
0x10e9   :  { %1629 = vadd.xlane.f32.xlu0 %v1628_v32  ;;  %v1635_v19 = vadd.f32 %v1634_v35, %v1633_v25 }
0x10eb   :  { %1636 = vadd.xlane.f32.xlu1 %v1635_v19 }
0x115c   :  { %v1630_v33 = vpop.xlane.xlu0 %1629 }
0x115e   :  { %v1637_v59 = vpop.xlane.xlu1 %1636 }
0x115f   :  { %v1638_v50 = vsel %vm355_vm3, %v1630_v33, %v1637_v59 }
0x1160   :  { %1978 = vmatpush.msk.msra.mxu1 %vm342_vm2, %v1638_v50 }
0x1161   :  { %1979 = vmatmul.msk.f32.vlgmr.msra.gmra.mxu1 %vm3511_vm4, %v3116_v21 }
0x11de   :  { %v1659_v45 = vpop.f32.mrf.mxu1 }
0x11df   :  { %v1662_v51 = vmul.f32 0.0009765625, %v1659_v45 }
0x11e1   :  { %v1663_v54 = vmul.f32 %v1662_v51, %v1662_v51 }
0x11e3   :  { %1665 = vrot.lane.b32.xlu2 %v1663_v54, %s2372_s11 }
0x11eb   :  { %1682 = vperm.xlu2 %2017, %v1662_v51  }
0x11f3   :  { %2018 = vset.pattern.permute.xlu2 %v2373_v42 }
0x123d   :  { %v1666_v57 = vpop.permute.xlu2 %1665 }
0x123e   :  { %v1668_v34 = vsub.f32 %v1662_v51, %v1666_v57 }
0x1240   :  { %v1669_v40 = vadd.f32 1e-05, %v1668_v34 }
0x1242   :  { %2032 = vrsqrt.f32 %v1669_v40  ;;  %vm1676_vm7 = vweird.f32 %v1669_v40 }
0x1245   :  { %v1683_v12 = vpop.permute.xlu2 %1682 }
0x1246   :  { %v1685_v60 = vsub.f32 %v1604_v9, %v1683_v12  ;;  %v1686_v61 = vsub.f32 %v1624_v24, %v1683_v12 }
0x1248   :  { %v2033_v53 = vpop.eup %2032 }
0x1249   :  { %v1671_v1 = vmul.f32 %v2033_v53, %v1669_v40  ;;  %vm1677_vm8 = vweird.f32 %v2033_v53 }
0x124a   :  { %vm1678_vm9 = vmor %vm1676_vm7, %vm1677_vm8 }
0x124b   :  { %v1672_v62 = vmul.f32 %v2033_v53, %v1671_v1 }
0x124d   :  { %v1673_v63 = vmul.f32 0.5, %v1672_v62 }
0x124f   :  { %v1674_v4 = vsub.f32 1.5, %v1673_v63 }
0x1251   :  { %v1675_v5 = vmul.f32 %v2033_v53, %v1674_v4 }
0x1253   :  { %v1679_v6 = vsel %vm1678_vm9, %v2033_v53, %v1675_v5 }
0x1254   :  { %v1687_v8 = vmul.f32 %v1679_v6, %v2941_v30 }
0x1256   :  { %1690 = vperm.xlu2 %2018, %v1687_v8  }
0x12b0   :  { %v1691_v42 = vpop.permute.xlu2 %1690 }
0x12b1   :  { %v1693_v13 = vmul.f32 %v1691_v42, %v1685_v60  ;;  %v1694_v52 = vmul.f32 %v1691_v42, %v1686_v61 }
0x12b3   :  { %v1695_v20 = vadd.f32 %v1693_v13, %v2945_v41  ;;  %v1696_v48 = vadd.f32 %v1694_v52, %v2945_v41  ;;  %v3354_v41 = vmul.f32 0.0009765625, %v3124_v37 }
0x12b5   :  { %vm1697_vm0 = vcmp.ge.f32.partialorder %v1695_v20, 0.0  ;;  %v1699_v7 = vmul.f32 0.01, %v1695_v20  ;;  %v1700_v30 = vmul.f32 0.01, %v1696_v48  ;;  %vm1698_vm4 = vcmp.ge.f32.partialorder %v1696_v48, 0.0 }
0x12b6   :  { %v1093_v24 = vmul.f32 %v3354_v41, %v3354_v41 }
0x12b7   :  { %v1701_v31 = vsel %vm1697_vm0, %v1695_v20, %v1699_v7  ;;  %v1702_v9 = vsel %vm1698_vm4, %v1696_v48, %v1700_v30 }
0x12b8   :  { %1735 = vrot.lane.b32.xlu1 %v1701_v31, %s2375_s16  ;;  %1759 = vrot.lane.b32.xlu0 %v1701_v31, %s2374_s7 }
0x12b9   :  { %1751 = vrot.lane.b32.xlu2 %v1701_v31, %s2376_s18 }
0x12c0   :  { %1729 = vrot.lane.b32.xlu1 %v1702_v9, %s2372_s11  ;;  %1745 = vrot.lane.b32.xlu0 %v1702_v9, %s2378_s19 }
0x12c1   :  { %1753 = vrot.lane.b32.xlu2 %v1702_v9, %s2376_s18 }
0x12c8   :  { %1719 = vrot.lane.b32.xlu1 %v1701_v31, %s2377_s1  ;;  %1711 = vrot.lane.b32.xlu0 %v1701_v31, %s2380_s2 }
0x12c9   :  { %1761 = vrot.lane.b32.xlu2 %v1702_v9, %s2374_s7 }
0x12d0   :  { %1705 = vrot.lane.b32.xlu1 %v1702_v9, %s2379_s20  ;;  %1721 = vrot.lane.b32.xlu0 %v1702_v9, %s2377_s1 }
0x12d1   :  { %1737 = vrot.lane.b32.xlu2 %v1702_v9, %s2375_s16 }
0x12d8   :  { %1095 = vrot.lane.b32.xlu1 %v1093_v24, %s2372_s11 }
0x12d9   :  { %1743 = vrot.lane.b32.xlu2 %v1701_v31, %s2378_s19 }
0x12e1   :  { %1727 = vrot.lane.b32.xlu2 %v1701_v31, %s2372_s11 }
0x12e9   :  { %1713 = vrot.lane.b32.xlu2 %v1702_v9, %s2380_s2 }
0x12f1   :  { %1703 = vrot.lane.b32.xlu2 %v1701_v31, %s2379_s20 }
0x1313   :  { %v1752_v26 = vpop.permute.xlu2 %1751 }
0x131b   :  { %v1754_v17 = vpop.permute.xlu2 %1753 }
0x131c   :  { %v1755_v45 = vsel %vm516_vm11, %v1752_v26, %v1754_v17  ;;  %v1756_v51 = vsel %vm516_vm11, %v1754_v17, %v1752_v26 }
0x1323   :  { %v1762_v32 = vpop.permute.xlu2 %1761 }
0x132a   :  { %v1760_v25 = vpop.permute.xlu0 %1759  ;;  %v1736_v35 = vpop.permute.xlu1 %1735 }
0x132b   :  { %v1763_v37 = vsel %vm527_vm10, %v1760_v25, %v1762_v32  ;;  %v1764_v19 = vsel %vm527_vm10, %v1762_v32, %v1760_v25  ;;  %v1738_v33 = vpop.permute.xlu2 %1737  ;;  %vm3512_vm10 = vcmask 31744  }
0x132c   :  { %v1765_v59 = vmul.f32 %v3156_v36, %v1763_v37  ;;  %v1766_v50 = vmul.f32 %v3162_v49, %v1764_v19  ;;  %v1739_v54 = vsel %vm494_vm12, %v1736_v35, %v1738_v33  ;;  %v1740_v57 = vsel %vm494_vm12, %v1738_v33, %v1736_v35 }
0x132d   :  { %v1757_v36 = vmul.f32 %v1755_v45, %v2699_v28  ;;  %v1758_v49 = vmul.f32 %v1756_v51, %v2702_v29  ;;  %v1741_v34 = vmul.f32 %v1739_v54, %v2719_v43  ;;  %v1742_v40 = vmul.f32 %v1740_v57, %v2722_v44 }
0x132e   :  { %1980 = vmatpush.msk.msrb.mxu2 %vm342_vm2, %v1765_v59  ;;  %1982 = vmatpush.msk.msra.mxu3 %vm342_vm2, %v1766_v50 }
0x132f   :  { %v1787_v62 = vrot.slane %v1757_v36, 4  ;;  %v1788_v63 = vrot.slane %v1758_v49, 4  ;;  %v1781_v6 = vrot.slane %v1741_v34, 4  ;;  %v1782_v8 = vrot.slane %v1742_v40, 4 }
0x1331   :  { %v1795_v60 = vsel %vm342_vm2, %v1701_v31, %v1781_v6  ;;  %v1796_v42 = vsel %vm342_vm2, %v1702_v9, %v1782_v8 }
0x1332   :  { %v1746_v53 = vpop.permute.xlu0 %1745  ;;  %v1730_v12 = vpop.permute.xlu1 %1729 }
0x1333   :  { %v1744_v1 = vpop.permute.xlu2 %1743 }
0x1334   :  { %v1747_v4 = vsel %vm505_vm13, %v1744_v1, %v1746_v53  ;;  %v1748_v5 = vsel %vm505_vm13, %v1746_v53, %v1744_v1 }
0x1335   :  { %v1749_v28 = vmul.f32 %v1747_v4, %v2713_v38  ;;  %v1750_v29 = vmul.f32 %v1748_v5, %v2716_v39 }
0x1337   :  { %v1797_v43 = vsel %vm342_vm2, %v1749_v28, %v1787_v62  ;;  %v1798_v44 = vsel %vm342_vm2, %v1750_v29, %v1788_v63  ;;  %v266_v28 = vld [vmem:[#allocation18] sm:$0xf]  ;;  %v267_v29 = vld [vmem:[#allocation19] sm:$0xf] }
0x1338   :  { %1817 = vmatpush.msrb.mxu2 %v1797_v43  ;;  %1837 = vmatpush.msra.mxu3 %v1798_v44 }
0x133a   :  { %1818 = vmatpush.msrb.mxu2 %v1795_v60  ;;  %1838 = vmatpush.msra.mxu3 %v1796_v42  ;;  %v1712_v61 = vpop.permute.xlu0 %1711  ;;  %v1720_v7 = vpop.permute.xlu1 %1719 }
0x133b   :  { %v1728_v13 = vpop.permute.xlu2 %1727 }
0x133c   :  { %v1731_v38 = vsel %vm483_vm14, %v1728_v13, %v1730_v12  ;;  %v1732_v39 = vsel %vm483_vm14, %v1730_v12, %v1728_v13 }
0x133d   :  { %v1733_v52 = vmul.f32 %v1732_v39, %v2738_v55  ;;  %v1734_v20 = vmul.f32 %v1731_v38, %v2741_v56 }
0x133f   :  { %v1775_v24 = vrot.slane %v1733_v52, 4  ;;  %v1776_v26 = vrot.slane %v1734_v20, 4 }
0x1342   :  { %v1722_v48 = vpop.permute.xlu0 %1721  ;;  %v1706_v33 = vpop.permute.xlu1 %1705 }
0x1343   :  { %v1723_v31 = vsel %vm472_vm15, %v1720_v7, %v1722_v48  ;;  %v1724_v30 = vsel %vm472_vm15, %v1722_v48, %v1720_v7  ;;  %v1714_v9 = vpop.permute.xlu2 %1713 }
0x1344   :  { %v1725_v17 = vmul.f32 %v1724_v30, %v2753_v0  ;;  %v1726_v32 = vmul.f32 %v1723_v31, %v2756_v2  ;;  %v1715_v55 = vsel %vm461_vm6, %v1712_v61, %v1714_v9  ;;  %v1716_v56 = vsel %vm461_vm6, %v1714_v9, %v1712_v61 }
0x1345   :  { %v1717_v37 = vmul.f32 %v1716_v56, %v2767_v10  ;;  %v1718_v19 = vmul.f32 %v1715_v55, %v2770_v11 }
0x1346   :  { %v1793_v25 = vsel %vm342_vm2, %v1725_v17, %v1775_v24  ;;  %v1794_v35 = vsel %vm342_vm2, %v1726_v32, %v1776_v26 }
0x1347   :  { %1819 = vmatpush.msrb.mxu2 %v1793_v25  ;;  %1839 = vmatpush.msra.mxu3 %v1794_v35  ;;  %v1769_v50 = vrot.slane %v1717_v37, 4  ;;  %v1770_v45 = vrot.slane %v1718_v19, 4 }
0x134a   :  { %v1096_v12 = vpop.permute.xlu1 %1095 }
0x134b   :  { %v1704_v0 = vpop.permute.xlu2 %1703  ;;  %v1098_v43 = vsub.f32 %v3354_v41, %v1096_v12 }
0x134c   :  { %v1707_v2 = vsel %vm450_vm5, %v1704_v0, %v1706_v33  ;;  %v1708_v59 = vsel %vm450_vm5, %v1706_v33, %v1704_v0 }
0x134d   :  { %v1709_v51 = vmul.f32 %v1708_v59, %v2773_v14  ;;  %v1710_v54 = vmul.f32 %v1707_v2, %v2776_v16  ;;  %v1099_v44 = vadd.f32 1e-05, %v1098_v43 }
0x134f   :  { %v1791_v57 = vsel %vm342_vm2, %v1709_v51, %v1769_v50  ;;  %v1792_v10 = vsel %vm342_vm2, %v1710_v54, %v1770_v45  ;;  %2034 = vrsqrt.f32 %v1099_v44  ;;  %vm1106_vm11 = vweird.f32 %v1099_v44 }
0x1350   :  { %1820 = vmatpush.msrb.mxu2 %v1791_v57  ;;  %1840 = vmatpush.msra.mxu3 %v1792_v10 }
0x1351   :  { %1981 = vmatmul.msk.f32.vlgmr.msrb.gmra.mxu2 %vm770_vm1, %v3029_v58  ;;  %1983 = vmatmul.msk.f32.vlgmr.msra.gmra.mxu3 %vm770_vm1, %v3029_v58 }
0x1355   :  { %v2035_v60 = vpop.eup %2034 }
0x13d4   :  { %v1822_v15 = vpop.f32.mrf.mxu2  ;;  %v1842_v11 = vpop.f32.mrf.mxu3 }
0x13d5   :  { %v3426_v36 = vadd.f32 %v1822_v15, %v3087_v18  ;;  %v3429_v14 = vadd.f32 %v1842_v11, %v3087_v18 }
0x13d7   :  { %v1850_v16 = vmul.f32 %v3426_v36, %v3426_v36  ;;  %v1851_v49 = vmul.f32 %v3429_v14, %v3429_v14  ;;  %v1845_v34 = vsel %vm342_vm2, %v3426_v36, 0.0  ;;  %v1846_v58 = vsel %vm342_vm2, %v3429_v14, 0.0 }
0x13d8   :  { %v1847_v40 = vadd.f32 %v1846_v58, %v1845_v34 }
0x13d9   :  { %v1852_v53 = vsel %vm342_vm2, %v1850_v16, 0.0  ;;  %v1853_v1 = vsel %vm342_vm2, %v1851_v49, 0.0 }
0x13da   :  { %1848 = vadd.xlane.f32.xlu0 %v1847_v40  ;;  %v1854_v18 = vadd.f32 %v1853_v1, %v1852_v53 }
0x13dc   :  { %1855 = vadd.xlane.f32.xlu2 %v1854_v18 }
0x144d   :  { %v1849_v62 = vpop.xlane.xlu0 %1848 }
0x144f   :  { %v1856_v63 = vpop.xlane.xlu2 %1855 }
0x1450   :  { %v1857_v4 = vsel %vm355_vm3, %v1849_v62, %v1856_v63  ;;  %vm1107_vm3 = vweird.f32 %v2035_v60 }
0x1451   :  { %1984 = vmatpush.msk.msrb.mxu0 %vm342_vm2, %v1857_v4  ;;  %vm1108_vm12 = vmor %vm1106_vm11, %vm1107_vm3 }
0x1452   :  { %1985 = vmatmul.msk.f32.vlgmr.msrb.gmra.mxu0 %vm3512_vm10, %v3116_v21  ;;  %v1101_v21 = vmul.f32 %v2035_v60, %v1099_v44 }
0x1454   :  { %v1102_v42 = vmul.f32 %v2035_v60, %v1101_v21 }
0x1456   :  { %v1103_v61 = vmul.f32 0.5, %v1102_v42 }
0x1458   :  { %v1104_v13 = vsub.f32 1.5, %v1103_v61 }
0x145a   :  { %v1105_v20 = vmul.f32 %v2035_v60, %v1104_v13 }
0x145c   :  { %v1109_v7 = vsel %vm1108_vm12, %v2035_v60, %v1105_v20 }
0x14cf   :  { %v1878_v5 = vpop.f32.mrf.mxu0 }
0x14d0   :  { %v1881_v6 = vmul.f32 0.0009765625, %v1878_v5 }
0x14d2   :  { %v1882_v8 = vmul.f32 %v1881_v6, %v1881_v6 }
0x14d4   :  { %1884 = vrot.lane.b32.xlu1 %v1882_v8, %s2372_s11 }
0x14dc   :  { %1118 = vrot.lane.b32.xlu1 %v266_v28, %s2372_s11 }
0x14e4   :  { %1112 = vperm.xlu1 %2019, %v3354_v41  }
0x14ec   :  { %1901 = vperm.xlu1 %2019, %v1881_v6  }
0x14f4   :  { %1131 = vperm.xlu1 %2019, %v267_v29  }
0x1546   :  { %v1885_v38 = vpop.permute.xlu1 %1884 }
0x1547   :  { %v1887_v39 = vsub.f32 %v1881_v6, %v1885_v38 }
0x1549   :  { %v1888_v52 = vadd.f32 1e-05, %v1887_v39 }
0x154b   :  { %2036 = vrsqrt.f32 %v1888_v52  ;;  %vm1895_vm14 = vweird.f32 %v1888_v52 }
0x154e   :  { %v1119_v48 = vpop.permute.xlu1 %1118 }
0x154f   :  { %v1121_v31 = vmul.f32 %v1119_v48, %v1109_v7 }
0x1551   :  { %v2037_v30 = vpop.eup %2036  ;;  %1124 = vperm.xlu0 %2016, %v1121_v31  }
0x1552   :  { %v1890_v41 = vmul.f32 %v2037_v30, %v1888_v52  ;;  %vm1896_vm13 = vweird.f32 %v2037_v30 }
0x1553   :  { %vm1897_vm15 = vmor %vm1895_vm14, %vm1896_vm13 }
0x1554   :  { %v1891_v9 = vmul.f32 %v2037_v30, %v1890_v41 }
0x1556   :  { %v1892_v24 = vmul.f32 0.5, %v1891_v9  ;;  %v1113_v56 = vpop.permute.xlu1 %1112 }
0x1557   :  { %v1115_v15 = vsub.f32 %v3090_v23, %v1113_v56  ;;  %v1116_v11 = vsub.f32 %v3093_v27, %v1113_v56 }
0x1558   :  { %v1893_v26 = vsub.f32 1.5, %v1892_v24 }
0x155a   :  { %v1894_v17 = vmul.f32 %v2037_v30, %v1893_v26 }
0x155c   :  { %v1898_v32 = vsel %vm1897_vm15, %v2037_v30, %v1894_v17 }
0x155d   :  { %v1906_v55 = vmul.f32 %v1898_v32, %v1119_v48 }
0x155e   :  { %v1902_v25 = vpop.permute.xlu1 %1901 }
0x155f   :  { %1909 = vperm.xlu2 %2018, %v1906_v55   ;;  %v1904_v35 = vsub.f32 %v3426_v36, %v1902_v25  ;;  %v1905_v37 = vsub.f32 %v3429_v14, %v1902_v25 }
0x1566   :  { %v1132_v2 = vpop.permute.xlu1 %1131 }
0x15b9   :  { %v1910_v19 = vpop.permute.xlu2 %1909 }
0x15ba   :  { %v1912_v33 = vmul.f32 %v1910_v19, %v1904_v35  ;;  %v1913_v0 = vmul.f32 %v1910_v19, %v1905_v37 }
0x15bc   :  { %v1914_v59 = vadd.f32 %v1912_v33, %v1132_v2  ;;  %v1915_v50 = vadd.f32 %v1913_v0, %v1132_v2 }
0x15be   :  { %vm1916_vm5 = vcmp.ge.f32.partialorder %v1914_v59, 0.0  ;;  %vm1917_vm6 = vcmp.ge.f32.partialorder %v1915_v50, 0.0  ;;  %v1918_v45 = vmul.f32 0.01, %v1914_v59  ;;  %v1919_v51 = vmul.f32 0.01, %v1915_v50 }
0x15c0   :  { %v1920_v54 = vsel %vm1916_vm5, %v1914_v59, %v1918_v45  ;;  %v1921_v57 = vsel %vm1917_vm6, %v1915_v50, %v1919_v51 }
0x15c1   :  { %v1923_v10 = vadd.f32 %v1921_v57, %v3228_v3  ;;  %v1922_v36 = vadd.f32 %v1920_v54, %v3226_v22 }
0x15c3   :  { %v1926_v14 = vrot.slane %v1923_v10, 4  ;;  %v1125_v16 = vpop.permute.xlu0 %1124 }
0x15c4   :  { %v1127_v49 = vmul.f32 %v1125_v16, %v1115_v15  ;;  %v1128_v34 = vmul.f32 %v1125_v16, %v1116_v11 }
0x15c5   :  { %v1927_v58 = vsel %vm342_vm2, %v1922_v36, %v1926_v14 }
0x15c6   :  { %1986 = vst [vmem:[%s3486_s21 + $0x8] sm:$0xff] %v1927_v58  ;;  %v1134_v40 = vadd.f32 %v1132_v2, %v1127_v49  ;;  %v1135_v53 = vadd.f32 %v1132_v2, %v1128_v34 }
0x15c8   :  { %vm1136_vm1 = vcmp.ge.f32.partialorder %v1134_v40, 0.0  ;;  %vm1137_vm8 = vcmp.ge.f32.partialorder %v1135_v53, 0.0  ;;  %v1138_v3 = vmul.f32 0.01, %v1134_v40  ;;  %v1139_v23 = vmul.f32 0.01, %v1135_v53 }
0x15ca   :  { %v1140_v1 = vsel %vm1136_vm1, %v1134_v40, %v1138_v3  ;;  %v1141_v27 = vsel %vm1137_vm8, %v1135_v53, %v1139_v23 }
0x15cb   :  { %v1143_v22 = vadd.f32 %v1141_v27, %v2823_v47  ;;  %v1142_v18 = vadd.f32 %v1140_v1, %v2821_v46 }
0x15cd   :  { %v1146_v62 = vrot.slane %v1143_v22, 4 }
0x15cf   :  { %v1147_v63 = vsel %vm342_vm2, %v1142_v18, %v1146_v62 }
0x15d0   :  { %1149 = vst [vmem:[%s3486_s21] sm:$0xff] %v1147_v63 }
0x15d1   :  { %1935 = vsyncpa [#allocation3], 1 }
0x15d2   :  { %1936 = vsyncpa [#allocation5], 1 }
0x15d3   :  { %1937 = vsyncpa [#allocation8], 1 }
0x15d4   :  { %1938 = vsyncpa [#allocation11], 1 }
0x15d5   :  { %1939 = vsyncpa [#allocation14], 1 }
0x15d6   :  { %1940 = vsyncpa [#allocation17], 1 }
0x15d7   :  { %1941 = vsyncpa [#allocation20], 1 }

</bundles_post_ra>
